<compile_context>
chip_gen: v7x
topology: tpu7x:2x2x1
jax: 0.10.0
libtpu: 0.0.40
codegen_flags: <defaults>
</compile_context>

<pallas_src>
import numpy as np

import jax
import jax.numpy as jnp
from jax.experimental import pallas as pl
from jax.experimental.pallas import tpu as pltpu

# 3x3 tap offsets; tap index t corresponds to weight element [dy+1, dx+1].
TAPS = tuple((dy, dx) for dy in (-1, 0, 1) for dx in (-1, 0, 1))

# Matmul operand dtype (accumulation is always f32).
MM_DTYPE = jnp.bfloat16

# Column layout of the packed per-channel parameter matrix "chan" (2C, NCOL).
# Rows 0..C-1 hold the "a" stream params, rows C..2C-1 the "b" stream params.
COL_CV_B, COL_CV_S = 0, 1          # converta/convertb folded bias, PReLU slope
COL_EY_B = 2                       # conve / convy conv bias
COL_S1_B, COL_S1_S = 3, 4          # convs1a/convs1b folded bias, slope
COL_S2_B, COL_S2_S = 5, 6          # convs2a/convs2b
COL_S3_B, COL_S3_S = 7, 8          # convs3a/convs3b
COL_SC_B = 9                       # scorea/scoreb conv bias
NCOL = 10


# ----------------------------------------------------------------------------
# Host-side densification of grouped convs (group structure -> zero padding)
# ----------------------------------------------------------------------------
def dense_1x1(w, cin, groups):
    """Grouped 1x1 weight (Cout, in_pg) -> dense (Cout, cin)."""
    cout, in_pg = w.shape
    out_pg = cout // groups
    dense = np.zeros((cout, cin), np.float32)
    for c in range(cout):
        g = c // out_pg
        dense[c, g * in_pg:(g + 1) * in_pg] = w[c]
    return dense


def dense_taps(w, cin, groups):
    """Grouped 3x3 weight (Cout, in_pg, 3, 3) -> dense per-tap (9, Cout, cin)."""
    cout, in_pg = w.shape[0], w.shape[1]
    out_pg = cout // groups
    dense = np.zeros((9, cout, cin), np.float32)
    for c in range(cout):
        g = c // out_pg
        for j in range(in_pg):
            dense[:, c, g * in_pg + j] = w[c, j].reshape(9)   # index ky*3+kx == tap t
    return dense


def build_raw_params(in_channel, C, E, egroups, seed=0):
    """Synthetic per-layer dense weights (BN scale already folded in), biases,
    PReLU slopes.  Consumed by both the pure-JAX reference and the packer."""
    rng = np.random.default_rng(seed)

    def rnd(shape, s=0.2):
        return rng.normal(0.0, s, size=shape).astype(np.float32)

    def bn(n):   # folded BN: scale, bias, plus PReLU slope
        return (1.0 + rnd((n,), 0.1), rnd((n,), 0.1), np.full((n,), 0.25, np.float32))

    raw = {}
    # converta / convertb : Conv2d(in_channel, C, 1, groups=C, bias=False)+BN+PReLU
    for tag in ("a", "b"):
        scale, bias, slope = bn(C)
        raw[f"cv_{tag}_w"] = dense_1x1(rnd((C, in_channel // C)), in_channel, C) * scale[:, None]
        raw[f"cv_{tag}_b"] = bias
        raw[f"cv_{tag}_s"] = slope
    # ChannelAttention fc weights
    raw["ca1_w"] = rnd((C,))
    raw["ca2_w"] = rnd((C,))
    # conve / convy : Conv2d(E, C, 3, groups=egroups, padding=1) + bias
    e_ipg = E // egroups
    for tag in ("e", "y"):
        raw[f"{tag}_w"] = dense_taps(rnd((C, e_ipg, 3, 3)), E, egroups)
        raw[f"{tag}_b"] = rnd((C,), 0.1)
    # convs1a..convs3b : Conv2d(2C, C, 3, groups=C, bias=False)+BN+PReLU
    for name in ("s1a", "s1b", "s2a", "s2b", "s3a", "s3b"):
        scale, bias, slope = bn(C)
        raw[f"{name}_w"] = dense_taps(rnd((C, 2, 3, 3)), 2 * C, C) * scale[None, :, None]
        raw[f"{name}_b"] = bias
        raw[f"{name}_s"] = slope
    # scorea / scoreb : depthwise Conv2d(C, C, 3, groups=C, padding=1) + bias
    for tag in ("sa", "sb"):
        raw[f"{tag}_w"] = dense_taps(rnd((C, 1, 3, 3)), C, C)
        raw[f"{tag}_b"] = rnd((C,), 0.1)
    return raw


def pack_kernel_params(raw, in_channel, C, E, HW, mm_dtype):
    """Pack per-layer dense weights into fused / tap-stacked kernel matrices."""

    def pack_taps(specs, n_out, n_in):
        # specs: list of (dense (9, cout, cin), out_row_offset, in_row_map)
        # Kernel tap stack row index = t * n_in + work_row.
        w = np.zeros((n_out, 9 * n_in), np.float32)
        for dense, ooff, rmap in specs:
            _, cout, cin = dense.shape
            for t in range(9):
                for j in range(cin):
                    w[ooff:ooff + cout, t * n_in + rmap[j]] = dense[t, :, j]
        return w

    rows_a = list(range(0, C))
    rows_b = list(range(C, 2 * C))
    rows_e = list(range(2 * C, 3 * C))
    rows_y = list(range(3 * C, 4 * C))

    wd = {}
    # fused converta/convertb (1x1): (2C, in_channel)
    wd["w_cv"] = np.concatenate([raw["cv_a_w"], raw["cv_b_w"]], axis=0)
    # fused conve/convy : input rows [e(0..E-1), y(E..2E-1)] -> (2C, 9*2E)
    wd["w_ey"] = pack_taps(
        [(raw["e_w"], 0, list(range(E))),
         (raw["y_w"], C, list(range(E, 2 * E)))], 2 * C, 2 * E)
    # fused convs1a/convs1b over work rows [xa | xb | e_c | y_c] -> (2C, 9*4C)
    wd["w_s1"] = pack_taps(
        [(raw["s1a_w"], 0, rows_a + rows_e),
         (raw["s1b_w"], C, rows_b + rows_y)], 2 * C, 4 * C)
    # convs2a/convs2b/convs3a/convs3b over work rows [xa | xb] -> (C, 9*2C)
    for name in ("s2a", "s2b", "s3a", "s3b"):
        wd["w_" + name] = pack_taps([(raw[name + "_w"], 0, rows_a + rows_b)], C, 2 * C)
    # fused scorea/scoreb (depthwise) over [xa | xb] -> (2C, 9*2C)
    wd["w_sc"] = pack_taps(
        [(raw["sa_w"], 0, rows_a), (raw["sb_w"], C, rows_b)], 2 * C, 2 * C)

    chan = np.zeros((2 * C, NCOL), np.float32)
    chan[0:C, COL_CV_B], chan[C:, COL_CV_B] = raw["cv_a_b"], raw["cv_b_b"]
    chan[0:C, COL_CV_S], chan[C:, COL_CV_S] = raw["cv_a_s"], raw["cv_b_s"]
    chan[0:C, COL_EY_B], chan[C:, COL_EY_B] = raw["e_b"], raw["y_b"]
    chan[0:C, COL_S1_B], chan[C:, COL_S1_B] = raw["s1a_b"], raw["s1b_b"]
    chan[0:C, COL_S1_S], chan[C:, COL_S1_S] = raw["s1a_s"], raw["s1b_s"]
    chan[0:C, COL_S2_B], chan[C:, COL_S2_B] = raw["s2a_b"], raw["s2b_b"]
    chan[0:C, COL_S2_S], chan[C:, COL_S2_S] = raw["s2a_s"], raw["s2b_s"]
    chan[0:C, COL_S3_B], chan[C:, COL_S3_B] = raw["s3a_b"], raw["s3b_b"]
    chan[0:C, COL_S3_S], chan[C:, COL_S3_S] = raw["s3a_s"], raw["s3b_s"]
    chan[0:C, COL_SC_B], chan[C:, COL_SC_B] = raw["sa_b"], raw["sb_b"]

    # Channel-attention weights pre-divided by HW (mean), per-half block diag.
    ca_w = np.zeros((2, 2 * C), np.float32)
    ca_w[0, 0:C] = raw["ca1_w"] / float(HW)
    ca_w[1, C:2 * C] = raw["ca2_w"] / float(HW)

    kp = {k: jnp.asarray(v, mm_dtype) for k, v in wd.items()}
    kp["chan"] = jnp.asarray(chan)     # f32 (elementwise params)
    kp["ca_w"] = jnp.asarray(ca_w)     # f32
    return kp


def build_masks(H, W, bt):
    """(9, 1, bt*HW) f32 validity masks for the 9 zero-padded 3x3 taps,
    tiled over the bt images folded into the lane axis."""
    HW = H * W
    rows = np.arange(HW) // W
    cols = np.arange(HW) % W
    m = np.zeros((9, 1, HW), np.float32)
    for t, (dy, dx) in enumerate(TAPS):
        ok = ((rows + dy >= 0) & (rows + dy < H) &
              (cols + dx >= 0) & (cols + dx < W))
        m[t, 0, :] = ok.astype(np.float32)
    return jnp.asarray(np.tile(m, (1, 1, bt)))


def build_seg(HW, bt):
    """Per-image lane indicator (bt, bt*HW) and its transpose."""
    seg = np.zeros((bt, bt * HW), np.float32)
    for b in range(bt):
        seg[b, b * HW:(b + 1) * HW] = 1.0
    return jnp.asarray(seg), jnp.asarray(seg.T)


# ----------------------------------------------------------------------------
# Kernel
# ----------------------------------------------------------------------------
def make_kernel(C, E, H, W, bt, mm_dtype):
    HW = H * W
    L = bt * HW
    C2 = 2 * C

    def kernel(mask_ref, chan_ref, caw_ref, seg_ref, segT_ref,
               wcv_ref, wey_ref, ws1_ref, ws2a_ref, ws2b_ref, ws3a_ref,
               ws3b_ref, wsc_ref, x_ref, ey_ref, out_ref, work_ref):

        def col(idx, lo=0, hi=C2):   # (rows, 1) f32 per-channel column
            return chan_ref[lo:hi, idx:idx + 1]

        def taps(p):
            # p: (K, L) f32.  Returns the (9K, L) stacked, masked SAME-pad taps
            # in the matmul dtype: ONE dot per conv consumes it (review item).
            pieces = []
            for t, (dy, dx) in enumerate(TAPS):
                if dy == 0 and dx == 0:
                    pieces.append(p)
                else:
                    shift = (-(dy * W + dx)) % L
                    pieces.append(pltpu.roll(p, shift, axis=1) * mask_ref[t])
            return jnp.concatenate(pieces, axis=0).astype(mm_dtype)

        def bias_prelu(v, bcol, scol):
            v = v + bcol
            return jnp.where(v >= 0.0, v, scol * v)

        # ---- converta / convertb: fused 1x1 matmul (BN scale folded in) ----
        ab = jnp.dot(wcv_ref[...], x_ref[...],
                     preferred_element_type=jnp.float32)            # (2C, L)
        ab = bias_prelu(ab, col(COL_CV_B), col(COL_CV_S))

        # ---- ca1 / ca2: reduce-first channel attention, per folded image ----
        pooled = jnp.dot(caw_ref[...], ab,
                         preferred_element_type=jnp.float32)        # (2, L)
        z = jnp.dot(pooled, segT_ref[...],
                    preferred_element_type=jnp.float32)             # (2, bt)
        gates = 1.0 / (1.0 + jnp.exp(-z))
        glanes = jnp.dot(gates, seg_ref[...],
                         preferred_element_type=jnp.float32)        # (2, L)
        rows = jax.lax.broadcasted_iota(jnp.int32, (C2, 1), 0)
        ab = ab * jnp.where(rows < C, glanes[0:1, :], glanes[1:2, :])
        work_ref[0:C2, :] = ab                                      # [xa | xb]

        # ---- conve / convy fused (residual terms), stream to output now ----
        ey = jnp.dot(wey_ref[...], taps(ey_ref[...].astype(jnp.float32)),
                     preferred_element_type=jnp.float32)            # (2C, L)
        ey = ey + col(COL_EY_B)
        out_ref[...] = ey                                           # [e_c | y_c]
        work_ref[C2:2 * C2, :] = ey

        # ---- convs1a / convs1b fused (block-diag over [xa|xb|e_c|y_c]) ----
        v = jnp.dot(ws1_ref[...], taps(work_ref[...]),
                    preferred_element_type=jnp.float32)             # (2C, L)
        v = bias_prelu(v, col(COL_S1_B), col(COL_S1_S))
        work_ref[0:C2, :] = v

        # ---- convs2a/convs2b/convs3a/convs3b: sequential half-slab updates ----
        def half(w_ref, bcol_idx, scol_idx, lo):
            tp = taps(work_ref[0:C2, :])
            hv = jnp.dot(w_ref[...], tp, preferred_element_type=jnp.float32)
            hv = bias_prelu(hv, col(bcol_idx, lo, lo + C), col(scol_idx, lo, lo + C))
            work_ref[lo:lo + C, :] = hv

        half(ws2a_ref, COL_S2_B, COL_S2_S, 0)
        half(ws2b_ref, COL_S2_B, COL_S2_S, C)
        half(ws3a_ref, COL_S3_B, COL_S3_S, 0)
        half(ws3b_ref, COL_S3_B, COL_S3_S, C)

        # ---- scorea / scoreb fused + residual accumulate into the output ----
        sc = jnp.dot(wsc_ref[...], taps(work_ref[0:C2, :]),
                     preferred_element_type=jnp.float32)            # (2C, L)
        out_ref[...] = out_ref[...] + sc + col(COL_SC_B)

    return kernel


# ----------------------------------------------------------------------------
# Wrapper
# ----------------------------------------------------------------------------
def _auto_batch_tile(B, HW):
    # Widen lanes (amortize per-step overhead / feed the MXU N dim) while
    # keeping the lane block 128-aligned.  On v7x with larger B one may prefer
    # bt = B // 2 so both TensorCores get grid steps.
    best = 1
    for bt in range(1, B + 1):
        if B % bt:
            continue
        if bt * HW > 2048:
            break
        if bt < B and (bt * HW) % 128 != 0:
            continue
        best = bt
    return best


def alternate_guidance(kparams, x, y, e, channel, *, batch_tile=None,
                       mm_dtype=MM_DTYPE):
    B, in_channel, H, W = x.shape
    E = y.shape[1]
    C = channel
    HW = H * W
    bt = batch_tile if batch_tile is not None else _auto_batch_tile(B, HW)
    assert B % bt == 0
    L = bt * HW
    assert bt == B or L % 128 == 0, "lane block must be 128-aligned"

    # Fold batch into the lane axis: (B, ch, H, W) -> (ch, B*HW).
    def fold(a):
        ch = a.shape[1]
        return jnp.transpose(a.reshape(B, ch, HW), (1, 0, 2)).reshape(ch, B * HW)

    x_l = fold(x).astype(mm_dtype)
    ey_l = fold(jnp.concatenate([e, y], axis=1)).astype(mm_dtype)   # rows [e | y]

    masks = build_masks(H, W, bt)
    seg, segT = build_seg(HW, bt)

    const_arrays = [masks, kparams["chan"], kparams["ca_w"], seg, segT,
                    kparams["w_cv"], kparams["w_ey"], kparams["w_s1"],
                    kparams["w_s2a"], kparams["w_s2b"], kparams["w_s3a"],
                    kparams["w_s3b"], kparams["w_sc"]]

    def const_spec(a):
        zeros = (0,) * a.ndim
        return pl.BlockSpec(a.shape, lambda b: zeros)

    in_specs = [const_spec(a) for a in const_arrays] + [
        pl.BlockSpec((in_channel, L), lambda b: (0, b)),   # x
        pl.BlockSpec((2 * E, L), lambda b: (0, b)),        # [e | y]
    ]
    out_spec = pl.BlockSpec((2 * C, L), lambda b: (0, b))  # [e_out | y_out]

    kernel = make_kernel(C, E, H, W, bt, mm_dtype)
    out = pl.pallas_call(
        kernel,
        out_shape=jax.ShapeDtypeStruct((2 * C, B * HW), jnp.float32),
        grid=(B // bt,),
        in_specs=in_specs,
        out_specs=out_spec,
        scratch_shapes=[pltpu.VMEM((4 * C, L), jnp.float32)],   # [xa|xb|e_c|y_c]
        compiler_params=pltpu.CompilerParams(
            dimension_semantics=("parallel",),   # batch steps are independent
            # 48 MiB is safe on every generation (<= 64 MiB physical on v7x,
            # well below 128 MiB on v5e/v6e); demo usage is far smaller.
            vmem_limit_bytes=48 * 1024 * 1024),
    )(*const_arrays, x_l, ey_l)

    out = out.reshape(2 * C, B, HW).transpose(1, 0, 2)       # (B, 2C, HW)
    e_out = out[:, 0:C].reshape(B, C, H, W)
    y_out = out[:, C:2 * C].reshape(B, C, H, W)
    return y_out, e_out                                      # PyTorch returns (y, e)


# ----------------------------------------------------------------------------
# Pure-JAX f32 reference (independent code path: explicit pad + shift convs)
# ----------------------------------------------------------------------------
def reference_forward(raw, x, y, e):
    def conv1x1(p, w):
        return jnp.einsum("ck,bkhw->bchw", jnp.asarray(w), p)

    def conv3x3(p, dense):
        _, _, H, W = p.shape
        pp = jnp.pad(p, ((0, 0), (0, 0), (1, 1), (1, 1)))
        out = 0.0
        for t, (dy, dx) in enumerate(TAPS):
            sh = pp[:, :, 1 + dy:1 + dy + H, 1 + dx:1 + dx + W]
            out = out + jnp.einsum("ck,bkhw->bchw", jnp.asarray(dense[t]), sh)
        return out

    def bias(v, b):
        return v + jnp.asarray(b).reshape(1, -1, 1, 1)

    def prelu(v, s):
        s = jnp.asarray(s).reshape(1, -1, 1, 1)
        return jnp.where(v >= 0, v, s * v)

    def gate(v, w):
        m = v.mean(axis=(2, 3))                                  # (B, C)
        z = (m * jnp.asarray(w)[None, :]).sum(axis=1)            # (B,)
        return jax.nn.sigmoid(z).reshape(-1, 1, 1, 1)

    cat = lambda a, b: jnp.concatenate([a, b], axis=1)

    xa = prelu(bias(conv1x1(x, raw["cv_a_w"]), raw["cv_a_b"]), raw["cv_a_s"])
    xb = prelu(bias(conv1x1(x, raw["cv_b_w"]), raw["cv_b_b"]), raw["cv_b_s"])
    xa = xa * gate(xa, raw["ca1_w"])
    xb = xb * gate(xb, raw["ca2_w"])
    e_c = bias(conv3x3(e, raw["e_w"]), raw["e_b"])
    y_c = bias(conv3x3(y, raw["y_w"]), raw["y_b"])
    xa = prelu(bias(conv3x3(cat(xa, e_c), raw["s1a_w"]), raw["s1a_b"]), raw["s1a_s"])
    xb = prelu(bias(conv3x3(cat(xb, y_c), raw["s1b_w"]), raw["s1b_b"]), raw["s1b_s"])
    xa = prelu(bias(conv3x3(cat(xa, xb), raw["s2a_w"]), raw["s2a_b"]), raw["s2a_s"])
    xb = prelu(bias(conv3x3(cat(xa, xb), raw["s2b_w"]), raw["s2b_b"]), raw["s2b_s"])
    xa = prelu(bias(conv3x3(cat(xa, xb), raw["s3a_w"]), raw["s3a_b"]), raw["s3a_s"])
    xb = prelu(bias(conv3x3(cat(xa, xb), raw["s3b_w"]), raw["s3b_b"]), raw["s3b_s"])
    e_out = bias(conv3x3(xa, raw["sa_w"]), raw["sa_b"]) + e_c
    y_out = bias(conv3x3(xb, raw["sb_w"]), raw["sb_b"]) + y_c
    return y_out, e_out


if __name__ == "__main__":
    B, H, W = 2, 16, 16
    in_channel, channel, echannel, egroups = 8, 4, 4, 2

    raw = build_raw_params(in_channel, channel, echannel, egroups, seed=0)
    kparams = pack_kernel_params(raw, in_channel, channel, echannel, H * W, MM_DTYPE)

    key = jax.random.PRNGKey(0)
    kx, ky, ke = jax.random.split(key, 3)
    x = jax.random.normal(kx, (B, in_channel, H, W), jnp.float32)
    y = jax.random.normal(ky, (B, echannel, H, W), jnp.float32)
    e = jax.random.normal(ke, (B, echannel, H, W), jnp.float32)

    out_y, out_e = alternate_guidance(kparams, x, y, e, channel, mm_dtype=MM_DTYPE)
    jax.block_until_ready((out_y, out_e))

    assert out_y.shape == (B, channel, H, W)
    assert out_e.shape == (B, channel, H, W)

    ref_y, ref_e = reference_forward(raw, x, y, e)
    err = max(
        float(jnp.max(jnp.abs(out_y - ref_y) / (1.0 + jnp.abs(ref_y)))),
        float(jnp.max(jnp.abs(out_e - ref_e) / (1.0 + jnp.abs(ref_e)))),
    )
    tol = 1e-1 if MM_DTYPE == jnp.bfloat16 else 1e-4
    assert np.isfinite(err) and err < tol, f"mismatch vs reference: {err}"
    print("KERNEL_OK")
</pallas_src>

<mosaic_0001>
module attributes {stable_mosaic.version = 11 : i64} {
  func.func @kernel(%arg0: i32, %arg1: memref<9x1x512xf32, #tpu.memory_space<vmem>>, %arg2: memref<8x10xf32, #tpu.memory_space<vmem>>, %arg3: memref<2x8xf32, #tpu.memory_space<vmem>>, %arg4: memref<2x512xf32, #tpu.memory_space<vmem>>, %arg5: memref<512x2xf32, #tpu.memory_space<vmem>>, %arg6: memref<8x8xbf16, #tpu.memory_space<vmem>>, %arg7: memref<8x72xbf16, #tpu.memory_space<vmem>>, %arg8: memref<8x144xbf16, #tpu.memory_space<vmem>>, %arg9: memref<4x72xbf16, #tpu.memory_space<vmem>>, %arg10: memref<4x72xbf16, #tpu.memory_space<vmem>>, %arg11: memref<4x72xbf16, #tpu.memory_space<vmem>>, %arg12: memref<4x72xbf16, #tpu.memory_space<vmem>>, %arg13: memref<8x72xbf16, #tpu.memory_space<vmem>>, %arg14: memref<8x512xbf16, #tpu.memory_space<vmem>>, %arg15: memref<8x512xbf16, #tpu.memory_space<vmem>>, %arg16: memref<8x512xf32, #tpu.memory_space<vmem>>, %arg17: memref<16x512xf32, #tpu.memory_space<vmem>>) attributes {dimension_semantics = [#tpu.dimension_semantics<parallel>], iteration_bounds = array<i64: 1>, scalar_prefetch = 0 : i64, scratch_operands = 1 : i64, tpu.core_type = #tpu.core_type<tc>, window_params = [{pipeline_mode = #tpu.pipeline_mode<synchronous>, transform_indices = @transform_0, window_bounds = array<i64: 9, 1, 512>}, {pipeline_mode = #tpu.pipeline_mode<synchronous>, transform_indices = @transform_1, window_bounds = array<i64: 8, 10>}, {pipeline_mode = #tpu.pipeline_mode<synchronous>, transform_indices = @transform_2, window_bounds = array<i64: 2, 8>}, {pipeline_mode = #tpu.pipeline_mode<synchronous>, transform_indices = @transform_3, window_bounds = array<i64: 2, 512>}, {pipeline_mode = #tpu.pipeline_mode<synchronous>, transform_indices = @transform_4, window_bounds = array<i64: 512, 2>}, {pipeline_mode = #tpu.pipeline_mode<synchronous>, transform_indices = @transform_5, window_bounds = array<i64: 8, 8>}, {pipeline_mode = #tpu.pipeline_mode<synchronous>, transform_indices = @transform_6, window_bounds = array<i64: 8, 72>}, {pipeline_mode = #tpu.pipeline_mode<synchronous>, transform_indices = @transform_7, window_bounds = array<i64: 8, 144>}, {pipeline_mode = #tpu.pipeline_mode<synchronous>, transform_indices = @transform_8, window_bounds = array<i64: 4, 72>}, {pipeline_mode = #tpu.pipeline_mode<synchronous>, transform_indices = @transform_9, window_bounds = array<i64: 4, 72>}, {pipeline_mode = #tpu.pipeline_mode<synchronous>, transform_indices = @transform_10, window_bounds = array<i64: 4, 72>}, {pipeline_mode = #tpu.pipeline_mode<synchronous>, transform_indices = @transform_11, window_bounds = array<i64: 4, 72>}, {pipeline_mode = #tpu.pipeline_mode<synchronous>, transform_indices = @transform_12, window_bounds = array<i64: 8, 72>}, {transform_indices = @transform_13, window_bounds = array<i64: 8, 512>}, {transform_indices = @transform_14, window_bounds = array<i64: 8, 512>}, {transform_indices = @transform_15, window_bounds = array<i64: 8, 512>}]} {
    %c0 = arith.constant 0 : index
    %c0_0 = arith.constant 0 : index
    %0 = vector.load %arg6[%c0, %c0_0] : memref<8x8xbf16, #tpu.memory_space<vmem>>, vector<8x8xbf16>
    %c0_1 = arith.constant 0 : index
    %c0_2 = arith.constant 0 : index
    %1 = vector.load %arg14[%c0_1, %c0_2] : memref<8x512xbf16, #tpu.memory_space<vmem>>, vector<8x512xbf16>
    %cst = arith.constant dense<0.000000e+00> : vector<8x512xf32>
    %2 = tpu.matmul %0, %1, %cst {dimension_numbers = #tpu.dot_dimension_numbers<[1], [0], [0], [1], [0, 0, 1, 1], [], []>} : vector<8x8xbf16>, vector<8x512xbf16>, vector<8x512xf32> -> vector<8x512xf32>
    %c0_3 = arith.constant 0 : index
    %c0_4 = arith.constant 0 : index
    %3 = vector.load %arg2[%c0_3, %c0_4] : memref<8x10xf32, #tpu.memory_space<vmem>>, vector<8x1xf32>
    %c0_5 = arith.constant 0 : index
    %c1 = arith.constant 1 : index
    %4 = vector.load %arg2[%c0_5, %c1] : memref<8x10xf32, #tpu.memory_space<vmem>>, vector<8x1xf32>
    %5 = vector.broadcast %3 : vector<8x1xf32> to vector<8x512xf32>
    %6 = arith.addf %2, %5 : vector<8x512xf32>
    %cst_6 = arith.constant 0.000000e+00 : f32
    %7 = vector.broadcast %cst_6 : f32 to vector<8x512xf32>
    %8 = arith.cmpf oge, %6, %7 : vector<8x512xf32>
    %9 = vector.broadcast %4 : vector<8x1xf32> to vector<8x512xf32>
    %10 = arith.mulf %9, %6 : vector<8x512xf32>
    %11 = arith.select %8, %6, %10 : vector<8x512xi1>, vector<8x512xf32>
    %c0_7 = arith.constant 0 : index
    %c0_8 = arith.constant 0 : index
    %12 = vector.load %arg3[%c0_7, %c0_8] : memref<2x8xf32, #tpu.memory_space<vmem>>, vector<2x8xf32>
    %cst_9 = arith.constant dense<0.000000e+00> : vector<2x512xf32>
    %13 = tpu.matmul %12, %11, %cst_9 {dimension_numbers = #tpu.dot_dimension_numbers<[1], [0], [0], [1], [0, 0, 1, 1], [], []>} : vector<2x8xf32>, vector<8x512xf32>, vector<2x512xf32> -> vector<2x512xf32>
    %c0_10 = arith.constant 0 : index
    %c0_11 = arith.constant 0 : index
    %14 = vector.load %arg5[%c0_10, %c0_11] : memref<512x2xf32, #tpu.memory_space<vmem>>, vector<512x2xf32>
    %cst_12 = arith.constant dense<0.000000e+00> : vector<2x2xf32>
    %15 = tpu.matmul %13, %14, %cst_12 {dimension_numbers = #tpu.dot_dimension_numbers<[1], [0], [0], [1], [0, 0, 1, 1], [], []>} : vector<2x512xf32>, vector<512x2xf32>, vector<2x2xf32> -> vector<2x2xf32>
    %cst_13 = arith.constant 0.000000e+00 : f32
    %16 = vector.broadcast %cst_13 : f32 to vector<2x2xf32>
    %17 = arith.subf %16, %15 : vector<2x2xf32>
    %18 = math.exp %17 : vector<2x2xf32>
    %cst_14 = arith.constant 1.000000e+00 : f32
    %19 = vector.broadcast %cst_14 : f32 to vector<2x2xf32>
    %20 = arith.addf %19, %18 : vector<2x2xf32>
    %cst_15 = arith.constant 1.000000e+00 : f32
    %21 = vector.broadcast %cst_15 : f32 to vector<2x2xf32>
    %22 = arith.divf %21, %20 : vector<2x2xf32>
    %c0_16 = arith.constant 0 : index
    %c0_17 = arith.constant 0 : index
    %23 = vector.load %arg4[%c0_16, %c0_17] : memref<2x512xf32, #tpu.memory_space<vmem>>, vector<2x512xf32>
    %cst_18 = arith.constant dense<0.000000e+00> : vector<2x512xf32>
    %24 = tpu.matmul %22, %23, %cst_18 {dimension_numbers = #tpu.dot_dimension_numbers<[1], [0], [0], [1], [0, 0, 1, 1], [], []>} : vector<2x2xf32>, vector<2x512xf32>, vector<2x512xf32> -> vector<2x512xf32>
    %25 = tpu.iota {dimensions = array<i32: 0>} : vector<8x1xi32>
    %c4_i32 = arith.constant 4 : i32
    %26 = vector.broadcast %c4_i32 : i32 to vector<8x1xi32>
    %27 = arith.cmpi slt, %25, %26 : vector<8x1xi32>
    %28 = vector.extract_strided_slice %24 {offsets = [0, 0], sizes = [1, 512], strides = [1, 1]} : vector<2x512xf32> to vector<1x512xf32>
    %29 = vector.extract_strided_slice %24 {offsets = [1, 0], sizes = [1, 512], strides = [1, 1]} : vector<2x512xf32> to vector<1x512xf32>
    %30 = vector.shape_cast %27 : vector<8x1xi1> to vector<8x1xi1>
    %31 = vector.broadcast %30 : vector<8x1xi1> to vector<8x512xi1>
    %32 = vector.shape_cast %28 : vector<1x512xf32> to vector<1x512xf32>
    %33 = vector.broadcast %32 : vector<1x512xf32> to vector<8x512xf32>
    %34 = vector.shape_cast %29 : vector<1x512xf32> to vector<1x512xf32>
    %35 = vector.broadcast %34 : vector<1x512xf32> to vector<8x512xf32>
    %36 = arith.select %31, %33, %35 : vector<8x512xi1>, vector<8x512xf32>
    %37 = arith.mulf %11, %36 : vector<8x512xf32>
    %c0_19 = arith.constant 0 : index
    %c0_20 = arith.constant 0 : index
    %38 = vector.load %arg17[%c0_19, %c0_20] : memref<16x512xf32, #tpu.memory_space<vmem>>, vector<8x512xf32>
    tpu.vector_store %arg17[%c0_19, %c0_20], %37 {strides = array<i32>} : memref<16x512xf32, #tpu.memory_space<vmem>>, vector<8x512xf32>,
    %c0_21 = arith.constant 0 : index
    %c0_22 = arith.constant 0 : index
    %39 = vector.load %arg7[%c0_21, %c0_22] : memref<8x72xbf16, #tpu.memory_space<vmem>>, vector<8x72xbf16>
    %c0_23 = arith.constant 0 : index
    %c0_24 = arith.constant 0 : index
    %40 = vector.load %arg15[%c0_23, %c0_24] : memref<8x512xbf16, #tpu.memory_space<vmem>>, vector<8x512xbf16>
    %41 = arith.extf %40 : vector<8x512xbf16> to vector<8x512xf32>
    %c17_i32 = arith.constant 17 : i32
    %42 = tpu.dynamic_rotate %41 by %c17_i32 dim 1 : vector<8x512xf32>, i32 -> vector<8x512xf32>
    %c0_25 = arith.constant 0 : index
    %c0_26 = arith.constant 0 : index
    %c0_27 = arith.constant 0 : index
    %43 = vector.load %arg1[%c0_25, %c0_26, %c0_27] : memref<9x1x512xf32, #tpu.memory_space<vmem>>, vector<1x1x512xf32>
    %44 = vector.shape_cast %43 : vector<1x1x512xf32> to vector<1x512xf32>
    %45 = vector.broadcast %44 : vector<1x512xf32> to vector<8x512xf32>
    %46 = arith.mulf %42, %45 : vector<8x512xf32>
    %c16_i32 = arith.constant 16 : i32
    %47 = tpu.dynamic_rotate %41 by %c16_i32 dim 1 : vector<8x512xf32>, i32 -> vector<8x512xf32>
    %c1_28 = arith.constant 1 : index
    %c0_29 = arith.constant 0 : index
    %c0_30 = arith.constant 0 : index
    %48 = vector.load %arg1[%c1_28, %c0_29, %c0_30] : memref<9x1x512xf32, #tpu.memory_space<vmem>>, vector<1x1x512xf32>
    %49 = vector.shape_cast %48 : vector<1x1x512xf32> to vector<1x512xf32>
    %50 = vector.broadcast %49 : vector<1x512xf32> to vector<8x512xf32>
    %51 = arith.mulf %47, %50 : vector<8x512xf32>
    %c15_i32 = arith.constant 15 : i32
    %52 = tpu.dynamic_rotate %41 by %c15_i32 dim 1 : vector<8x512xf32>, i32 -> vector<8x512xf32>
    %c2 = arith.constant 2 : index
    %c0_31 = arith.constant 0 : index
    %c0_32 = arith.constant 0 : index
    %53 = vector.load %arg1[%c2, %c0_31, %c0_32] : memref<9x1x512xf32, #tpu.memory_space<vmem>>, vector<1x1x512xf32>
    %54 = vector.shape_cast %53 : vector<1x1x512xf32> to vector<1x512xf32>
    %55 = vector.broadcast %54 : vector<1x512xf32> to vector<8x512xf32>
    %56 = arith.mulf %52, %55 : vector<8x512xf32>
    %c1_i32 = arith.constant 1 : i32
    %57 = tpu.dynamic_rotate %41 by %c1_i32 dim 1 : vector<8x512xf32>, i32 -> vector<8x512xf32>
    %c3 = arith.constant 3 : index
    %c0_33 = arith.constant 0 : index
    %c0_34 = arith.constant 0 : index
    %58 = vector.load %arg1[%c3, %c0_33, %c0_34] : memref<9x1x512xf32, #tpu.memory_space<vmem>>, vector<1x1x512xf32>
    %59 = vector.shape_cast %58 : vector<1x1x512xf32> to vector<1x512xf32>
    %60 = vector.broadcast %59 : vector<1x512xf32> to vector<8x512xf32>
    %61 = arith.mulf %57, %60 : vector<8x512xf32>
    %c511_i32 = arith.constant 511 : i32
    %62 = tpu.dynamic_rotate %41 by %c511_i32 dim 1 : vector<8x512xf32>, i32 -> vector<8x512xf32>
    %c5 = arith.constant 5 : index
    %c0_35 = arith.constant 0 : index
    %c0_36 = arith.constant 0 : index
    %63 = vector.load %arg1[%c5, %c0_35, %c0_36] : memref<9x1x512xf32, #tpu.memory_space<vmem>>, vector<1x1x512xf32>
    %64 = vector.shape_cast %63 : vector<1x1x512xf32> to vector<1x512xf32>
    %65 = vector.broadcast %64 : vector<1x512xf32> to vector<8x512xf32>
    %66 = arith.mulf %62, %65 : vector<8x512xf32>
    %c497_i32 = arith.constant 497 : i32
    %67 = tpu.dynamic_rotate %41 by %c497_i32 dim 1 : vector<8x512xf32>, i32 -> vector<8x512xf32>
    %c6 = arith.constant 6 : index
    %c0_37 = arith.constant 0 : index
    %c0_38 = arith.constant 0 : index
    %68 = vector.load %arg1[%c6, %c0_37, %c0_38] : memref<9x1x512xf32, #tpu.memory_space<vmem>>, vector<1x1x512xf32>
    %69 = vector.shape_cast %68 : vector<1x1x512xf32> to vector<1x512xf32>
    %70 = vector.broadcast %69 : vector<1x512xf32> to vector<8x512xf32>
    %71 = arith.mulf %67, %70 : vector<8x512xf32>
    %c496_i32 = arith.constant 496 : i32
    %72 = tpu.dynamic_rotate %41 by %c496_i32 dim 1 : vector<8x512xf32>, i32 -> vector<8x512xf32>
    %c7 = arith.constant 7 : index
    %c0_39 = arith.constant 0 : index
    %c0_40 = arith.constant 0 : index
    %73 = vector.load %arg1[%c7, %c0_39, %c0_40] : memref<9x1x512xf32, #tpu.memory_space<vmem>>, vector<1x1x512xf32>
    %74 = vector.shape_cast %73 : vector<1x1x512xf32> to vector<1x512xf32>
    %75 = vector.broadcast %74 : vector<1x512xf32> to vector<8x512xf32>
    %76 = arith.mulf %72, %75 : vector<8x512xf32>
    %c495_i32 = arith.constant 495 : i32
    %77 = tpu.dynamic_rotate %41 by %c495_i32 dim 1 : vector<8x512xf32>, i32 -> vector<8x512xf32>
    %c8 = arith.constant 8 : index
    %c0_41 = arith.constant 0 : index
    %c0_42 = arith.constant 0 : index
    %78 = vector.load %arg1[%c8, %c0_41, %c0_42] : memref<9x1x512xf32, #tpu.memory_space<vmem>>, vector<1x1x512xf32>
    %79 = vector.shape_cast %78 : vector<1x1x512xf32> to vector<1x512xf32>
    %80 = vector.broadcast %79 : vector<1x512xf32> to vector<8x512xf32>
    %81 = arith.mulf %77, %80 : vector<8x512xf32>
    %82 = tpu.concatenate %46, %51, %56, %61, %41, %66, %71, %76, %81 in 0 : vector<8x512xf32>, vector<8x512xf32>, vector<8x512xf32>, vector<8x512xf32>, vector<8x512xf32>, vector<8x512xf32>, vector<8x512xf32>, vector<8x512xf32>, vector<8x512xf32> -> vector<72x512xf32>
    %83 = arith.truncf %82 : vector<72x512xf32> to vector<72x512xbf16>
    %cst_43 = arith.constant dense<0.000000e+00> : vector<8x512xf32>
    %84 = tpu.matmul %39, %83, %cst_43 {dimension_numbers = #tpu.dot_dimension_numbers<[1], [0], [0], [1], [0, 0, 1, 1], [], []>} : vector<8x72xbf16>, vector<72x512xbf16>, vector<8x512xf32> -> vector<8x512xf32>
    %c0_44 = arith.constant 0 : index
    %c2_45 = arith.constant 2 : index
    %85 = vector.load %arg2[%c0_44, %c2_45] : memref<8x10xf32, #tpu.memory_space<vmem>>, vector<8x1xf32>
    %86 = vector.broadcast %85 : vector<8x1xf32> to vector<8x512xf32>
    %87 = arith.addf %84, %86 : vector<8x512xf32>
    %c0_46 = arith.constant 0 : index
    %c0_47 = arith.constant 0 : index
    %88 = vector.load %arg16[%c0_46, %c0_47] : memref<8x512xf32, #tpu.memory_space<vmem>>, vector<8x512xf32>
    tpu.vector_store %arg16[%c0_46, %c0_47], %87 {strides = array<i32>} : memref<8x512xf32, #tpu.memory_space<vmem>>, vector<8x512xf32>,
    %c8_48 = arith.constant 8 : index
    %c0_49 = arith.constant 0 : index
    %89 = vector.load %arg17[%c8_48, %c0_49] : memref<16x512xf32, #tpu.memory_space<vmem>>, vector<8x512xf32>
    tpu.vector_store %arg17[%c8_48, %c0_49], %87 {strides = array<i32>} : memref<16x512xf32, #tpu.memory_space<vmem>>, vector<8x512xf32>,
    %c0_50 = arith.constant 0 : index
    %c0_51 = arith.constant 0 : index
    %90 = vector.load %arg8[%c0_50, %c0_51] : memref<8x144xbf16, #tpu.memory_space<vmem>>, vector<8x144xbf16>
    %c0_52 = arith.constant 0 : index
    %c0_53 = arith.constant 0 : index
    %91 = vector.load %arg17[%c0_52, %c0_53] : memref<16x512xf32, #tpu.memory_space<vmem>>, vector<16x512xf32>
    %c17_i32_54 = arith.constant 17 : i32
    %92 = tpu.dynamic_rotate %91 by %c17_i32_54 dim 1 : vector<16x512xf32>, i32 -> vector<16x512xf32>
    %c0_55 = arith.constant 0 : index
    %c0_56 = arith.constant 0 : index
    %c0_57 = arith.constant 0 : index
    %93 = vector.load %arg1[%c0_55, %c0_56, %c0_57] : memref<9x1x512xf32, #tpu.memory_space<vmem>>, vector<1x1x512xf32>
    %94 = vector.shape_cast %93 : vector<1x1x512xf32> to vector<1x512xf32>
    %95 = vector.broadcast %94 : vector<1x512xf32> to vector<16x512xf32>
    %96 = arith.mulf %92, %95 : vector<16x512xf32>
    %c16_i32_58 = arith.constant 16 : i32
    %97 = tpu.dynamic_rotate %91 by %c16_i32_58 dim 1 : vector<16x512xf32>, i32 -> vector<16x512xf32>
    %c1_59 = arith.constant 1 : index
    %c0_60 = arith.constant 0 : index
    %c0_61 = arith.constant 0 : index
    %98 = vector.load %arg1[%c1_59, %c0_60, %c0_61] : memref<9x1x512xf32, #tpu.memory_space<vmem>>, vector<1x1x512xf32>
    %99 = vector.shape_cast %98 : vector<1x1x512xf32> to vector<1x512xf32>
    %100 = vector.broadcast %99 : vector<1x512xf32> to vector<16x512xf32>
    %101 = arith.mulf %97, %100 : vector<16x512xf32>
    %c15_i32_62 = arith.constant 15 : i32
    %102 = tpu.dynamic_rotate %91 by %c15_i32_62 dim 1 : vector<16x512xf32>, i32 -> vector<16x512xf32>
    %c2_63 = arith.constant 2 : index
    %c0_64 = arith.constant 0 : index
    %c0_65 = arith.constant 0 : index
    %103 = vector.load %arg1[%c2_63, %c0_64, %c0_65] : memref<9x1x512xf32, #tpu.memory_space<vmem>>, vector<1x1x512xf32>
    %104 = vector.shape_cast %103 : vector<1x1x512xf32> to vector<1x512xf32>
    %105 = vector.broadcast %104 : vector<1x512xf32> to vector<16x512xf32>
    %106 = arith.mulf %102, %105 : vector<16x512xf32>
    %c1_i32_66 = arith.constant 1 : i32
    %107 = tpu.dynamic_rotate %91 by %c1_i32_66 dim 1 : vector<16x512xf32>, i32 -> vector<16x512xf32>
    %c3_67 = arith.constant 3 : index
    %c0_68 = arith.constant 0 : index
    %c0_69 = arith.constant 0 : index
    %108 = vector.load %arg1[%c3_67, %c0_68, %c0_69] : memref<9x1x512xf32, #tpu.memory_space<vmem>>, vector<1x1x512xf32>
    %109 = vector.shape_cast %108 : vector<1x1x512xf32> to vector<1x512xf32>
    %110 = vector.broadcast %109 : vector<1x512xf32> to vector<16x512xf32>
    %111 = arith.mulf %107, %110 : vector<16x512xf32>
    %c511_i32_70 = arith.constant 511 : i32
    %112 = tpu.dynamic_rotate %91 by %c511_i32_70 dim 1 : vector<16x512xf32>, i32 -> vector<16x512xf32>
    %c5_71 = arith.constant 5 : index
    %c0_72 = arith.constant 0 : index
    %c0_73 = arith.constant 0 : index
    %113 = vector.load %arg1[%c5_71, %c0_72, %c0_73] : memref<9x1x512xf32, #tpu.memory_space<vmem>>, vector<1x1x512xf32>
    %114 = vector.shape_cast %113 : vector<1x1x512xf32> to vector<1x512xf32>
    %115 = vector.broadcast %114 : vector<1x512xf32> to vector<16x512xf32>
    %116 = arith.mulf %112, %115 : vector<16x512xf32>
    %c497_i32_74 = arith.constant 497 : i32
    %117 = tpu.dynamic_rotate %91 by %c497_i32_74 dim 1 : vector<16x512xf32>, i32 -> vector<16x512xf32>
    %c6_75 = arith.constant 6 : index
    %c0_76 = arith.constant 0 : index
    %c0_77 = arith.constant 0 : index
    %118 = vector.load %arg1[%c6_75, %c0_76, %c0_77] : memref<9x1x512xf32, #tpu.memory_space<vmem>>, vector<1x1x512xf32>
    %119 = vector.shape_cast %118 : vector<1x1x512xf32> to vector<1x512xf32>
    %120 = vector.broadcast %119 : vector<1x512xf32> to vector<16x512xf32>
    %121 = arith.mulf %117, %120 : vector<16x512xf32>
    %c496_i32_78 = arith.constant 496 : i32
    %122 = tpu.dynamic_rotate %91 by %c496_i32_78 dim 1 : vector<16x512xf32>, i32 -> vector<16x512xf32>
    %c7_79 = arith.constant 7 : index
    %c0_80 = arith.constant 0 : index
    %c0_81 = arith.constant 0 : index
    %123 = vector.load %arg1[%c7_79, %c0_80, %c0_81] : memref<9x1x512xf32, #tpu.memory_space<vmem>>, vector<1x1x512xf32>
    %124 = vector.shape_cast %123 : vector<1x1x512xf32> to vector<1x512xf32>
    %125 = vector.broadcast %124 : vector<1x512xf32> to vector<16x512xf32>
    %126 = arith.mulf %122, %125 : vector<16x512xf32>
    %c495_i32_82 = arith.constant 495 : i32
    %127 = tpu.dynamic_rotate %91 by %c495_i32_82 dim 1 : vector<16x512xf32>, i32 -> vector<16x512xf32>
    %c8_83 = arith.constant 8 : index
    %c0_84 = arith.constant 0 : index
    %c0_85 = arith.constant 0 : index
    %128 = vector.load %arg1[%c8_83, %c0_84, %c0_85] : memref<9x1x512xf32, #tpu.memory_space<vmem>>, vector<1x1x512xf32>
    %129 = vector.shape_cast %128 : vector<1x1x512xf32> to vector<1x512xf32>
    %130 = vector.broadcast %129 : vector<1x512xf32> to vector<16x512xf32>
    %131 = arith.mulf %127, %130 : vector<16x512xf32>
    %132 = tpu.concatenate %96, %101, %106, %111, %91, %116, %121, %126, %131 in 0 : vector<16x512xf32>, vector<16x512xf32>, vector<16x512xf32>, vector<16x512xf32>, vector<16x512xf32>, vector<16x512xf32>, vector<16x512xf32>, vector<16x512xf32>, vector<16x512xf32> -> vector<144x512xf32>
    %133 = arith.truncf %132 : vector<144x512xf32> to vector<144x512xbf16>
    %cst_86 = arith.constant dense<0.000000e+00> : vector<8x512xf32>
    %134 = tpu.matmul %90, %133, %cst_86 {dimension_numbers = #tpu.dot_dimension_numbers<[1], [0], [0], [1], [0, 0, 1, 1], [], []>} : vector<8x144xbf16>, vector<144x512xbf16>, vector<8x512xf32> -> vector<8x512xf32>
    %c0_87 = arith.constant 0 : index
    %c3_88 = arith.constant 3 : index
    %135 = vector.load %arg2[%c0_87, %c3_88] : memref<8x10xf32, #tpu.memory_space<vmem>>, vector<8x1xf32>
    %c0_89 = arith.constant 0 : index
    %c4 = arith.constant 4 : index
    %136 = vector.load %arg2[%c0_89, %c4] : memref<8x10xf32, #tpu.memory_space<vmem>>, vector<8x1xf32>
    %137 = vector.broadcast %135 : vector<8x1xf32> to vector<8x512xf32>
    %138 = arith.addf %134, %137 : vector<8x512xf32>
    %cst_90 = arith.constant 0.000000e+00 : f32
    %139 = vector.broadcast %cst_90 : f32 to vector<8x512xf32>
    %140 = arith.cmpf oge, %138, %139 : vector<8x512xf32>
    %141 = vector.broadcast %136 : vector<8x1xf32> to vector<8x512xf32>
    %142 = arith.mulf %141, %138 : vector<8x512xf32>
    %143 = arith.select %140, %138, %142 : vector<8x512xi1>, vector<8x512xf32>
    %c0_91 = arith.constant 0 : index
    %c0_92 = arith.constant 0 : index
    %144 = vector.load %arg17[%c0_91, %c0_92] : memref<16x512xf32, #tpu.memory_space<vmem>>, vector<8x512xf32>
    tpu.vector_store %arg17[%c0_91, %c0_92], %143 {strides = array<i32>} : memref<16x512xf32, #tpu.memory_space<vmem>>, vector<8x512xf32>,
    %c0_93 = arith.constant 0 : index
    %c0_94 = arith.constant 0 : index
    %145 = vector.load %arg17[%c0_93, %c0_94] : memref<16x512xf32, #tpu.memory_space<vmem>>, vector<8x512xf32>
    %c17_i32_95 = arith.constant 17 : i32
    %146 = tpu.dynamic_rotate %145 by %c17_i32_95 dim 1 : vector<8x512xf32>, i32 -> vector<8x512xf32>
    %c0_96 = arith.constant 0 : index
    %c0_97 = arith.constant 0 : index
    %c0_98 = arith.constant 0 : index
    %147 = vector.load %arg1[%c0_96, %c0_97, %c0_98] : memref<9x1x512xf32, #tpu.memory_space<vmem>>, vector<1x1x512xf32>
    %148 = vector.shape_cast %147 : vector<1x1x512xf32> to vector<1x512xf32>
    %149 = vector.broadcast %148 : vector<1x512xf32> to vector<8x512xf32>
    %150 = arith.mulf %146, %149 : vector<8x512xf32>
    %c16_i32_99 = arith.constant 16 : i32
    %151 = tpu.dynamic_rotate %145 by %c16_i32_99 dim 1 : vector<8x512xf32>, i32 -> vector<8x512xf32>
    %c1_100 = arith.constant 1 : index
    %c0_101 = arith.constant 0 : index
    %c0_102 = arith.constant 0 : index
    %152 = vector.load %arg1[%c1_100, %c0_101, %c0_102] : memref<9x1x512xf32, #tpu.memory_space<vmem>>, vector<1x1x512xf32>
    %153 = vector.shape_cast %152 : vector<1x1x512xf32> to vector<1x512xf32>
    %154 = vector.broadcast %153 : vector<1x512xf32> to vector<8x512xf32>
    %155 = arith.mulf %151, %154 : vector<8x512xf32>
    %c15_i32_103 = arith.constant 15 : i32
    %156 = tpu.dynamic_rotate %145 by %c15_i32_103 dim 1 : vector<8x512xf32>, i32 -> vector<8x512xf32>
    %c2_104 = arith.constant 2 : index
    %c0_105 = arith.constant 0 : index
    %c0_106 = arith.constant 0 : index
    %157 = vector.load %arg1[%c2_104, %c0_105, %c0_106] : memref<9x1x512xf32, #tpu.memory_space<vmem>>, vector<1x1x512xf32>
    %158 = vector.shape_cast %157 : vector<1x1x512xf32> to vector<1x512xf32>
    %159 = vector.broadcast %158 : vector<1x512xf32> to vector<8x512xf32>
    %160 = arith.mulf %156, %159 : vector<8x512xf32>
    %c1_i32_107 = arith.constant 1 : i32
    %161 = tpu.dynamic_rotate %145 by %c1_i32_107 dim 1 : vector<8x512xf32>, i32 -> vector<8x512xf32>
    %c3_108 = arith.constant 3 : index
    %c0_109 = arith.constant 0 : index
    %c0_110 = arith.constant 0 : index
    %162 = vector.load %arg1[%c3_108, %c0_109, %c0_110] : memref<9x1x512xf32, #tpu.memory_space<vmem>>, vector<1x1x512xf32>
    %163 = vector.shape_cast %162 : vector<1x1x512xf32> to vector<1x512xf32>
    %164 = vector.broadcast %163 : vector<1x512xf32> to vector<8x512xf32>
    %165 = arith.mulf %161, %164 : vector<8x512xf32>
    %c511_i32_111 = arith.constant 511 : i32
    %166 = tpu.dynamic_rotate %145 by %c511_i32_111 dim 1 : vector<8x512xf32>, i32 -> vector<8x512xf32>
    %c5_112 = arith.constant 5 : index
    %c0_113 = arith.constant 0 : index
    %c0_114 = arith.constant 0 : index
    %167 = vector.load %arg1[%c5_112, %c0_113, %c0_114] : memref<9x1x512xf32, #tpu.memory_space<vmem>>, vector<1x1x512xf32>
    %168 = vector.shape_cast %167 : vector<1x1x512xf32> to vector<1x512xf32>
    %169 = vector.broadcast %168 : vector<1x512xf32> to vector<8x512xf32>
    %170 = arith.mulf %166, %169 : vector<8x512xf32>
    %c497_i32_115 = arith.constant 497 : i32
    %171 = tpu.dynamic_rotate %145 by %c497_i32_115 dim 1 : vector<8x512xf32>, i32 -> vector<8x512xf32>
    %c6_116 = arith.constant 6 : index
    %c0_117 = arith.constant 0 : index
    %c0_118 = arith.constant 0 : index
    %172 = vector.load %arg1[%c6_116, %c0_117, %c0_118] : memref<9x1x512xf32, #tpu.memory_space<vmem>>, vector<1x1x512xf32>
    %173 = vector.shape_cast %172 : vector<1x1x512xf32> to vector<1x512xf32>
    %174 = vector.broadcast %173 : vector<1x512xf32> to vector<8x512xf32>
    %175 = arith.mulf %171, %174 : vector<8x512xf32>
    %c496_i32_119 = arith.constant 496 : i32
    %176 = tpu.dynamic_rotate %145 by %c496_i32_119 dim 1 : vector<8x512xf32>, i32 -> vector<8x512xf32>
    %c7_120 = arith.constant 7 : index
    %c0_121 = arith.constant 0 : index
    %c0_122 = arith.constant 0 : index
    %177 = vector.load %arg1[%c7_120, %c0_121, %c0_122] : memref<9x1x512xf32, #tpu.memory_space<vmem>>, vector<1x1x512xf32>
    %178 = vector.shape_cast %177 : vector<1x1x512xf32> to vector<1x512xf32>
    %179 = vector.broadcast %178 : vector<1x512xf32> to vector<8x512xf32>
    %180 = arith.mulf %176, %179 : vector<8x512xf32>
    %c495_i32_123 = arith.constant 495 : i32
    %181 = tpu.dynamic_rotate %145 by %c495_i32_123 dim 1 : vector<8x512xf32>, i32 -> vector<8x512xf32>
    %c8_124 = arith.constant 8 : index
    %c0_125 = arith.constant 0 : index
    %c0_126 = arith.constant 0 : index
    %182 = vector.load %arg1[%c8_124, %c0_125, %c0_126] : memref<9x1x512xf32, #tpu.memory_space<vmem>>, vector<1x1x512xf32>
    %183 = vector.shape_cast %182 : vector<1x1x512xf32> to vector<1x512xf32>
    %184 = vector.broadcast %183 : vector<1x512xf32> to vector<8x512xf32>
    %185 = arith.mulf %181, %184 : vector<8x512xf32>
    %186 = tpu.concatenate %150, %155, %160, %165, %145, %170, %175, %180, %185 in 0 : vector<8x512xf32>, vector<8x512xf32>, vector<8x512xf32>, vector<8x512xf32>, vector<8x512xf32>, vector<8x512xf32>, vector<8x512xf32>, vector<8x512xf32>, vector<8x512xf32> -> vector<72x512xf32>
    %187 = arith.truncf %186 : vector<72x512xf32> to vector<72x512xbf16>
    %c0_127 = arith.constant 0 : index
    %c0_128 = arith.constant 0 : index
    %188 = vector.load %arg9[%c0_127, %c0_128] : memref<4x72xbf16, #tpu.memory_space<vmem>>, vector<4x72xbf16>
    %cst_129 = arith.constant dense<0.000000e+00> : vector<4x512xf32>
    %189 = tpu.matmul %188, %187, %cst_129 {dimension_numbers = #tpu.dot_dimension_numbers<[1], [0], [0], [1], [0, 0, 1, 1], [], []>} : vector<4x72xbf16>, vector<72x512xbf16>, vector<4x512xf32> -> vector<4x512xf32>
    %c0_130 = arith.constant 0 : index
    %c5_131 = arith.constant 5 : index
    %190 = vector.load %arg2[%c0_130, %c5_131] : memref<8x10xf32, #tpu.memory_space<vmem>>, vector<4x1xf32>
    %c0_132 = arith.constant 0 : index
    %c6_133 = arith.constant 6 : index
    %191 = vector.load %arg2[%c0_132, %c6_133] : memref<8x10xf32, #tpu.memory_space<vmem>>, vector<4x1xf32>
    %192 = vector.broadcast %190 : vector<4x1xf32> to vector<4x512xf32>
    %193 = arith.addf %189, %192 : vector<4x512xf32>
    %cst_134 = arith.constant 0.000000e+00 : f32
    %194 = vector.broadcast %cst_134 : f32 to vector<4x512xf32>
    %195 = arith.cmpf oge, %193, %194 : vector<4x512xf32>
    %196 = vector.broadcast %191 : vector<4x1xf32> to vector<4x512xf32>
    %197 = arith.mulf %196, %193 : vector<4x512xf32>
    %198 = arith.select %195, %193, %197 : vector<4x512xi1>, vector<4x512xf32>
    %c0_135 = arith.constant 0 : index
    %c0_136 = arith.constant 0 : index
    %199 = vector.load %arg17[%c0_135, %c0_136] : memref<16x512xf32, #tpu.memory_space<vmem>>, vector<4x512xf32>
    tpu.vector_store %arg17[%c0_135, %c0_136], %198 {strides = array<i32>} : memref<16x512xf32, #tpu.memory_space<vmem>>, vector<4x512xf32>,
    %c0_137 = arith.constant 0 : index
    %c0_138 = arith.constant 0 : index
    %200 = vector.load %arg17[%c0_137, %c0_138] : memref<16x512xf32, #tpu.memory_space<vmem>>, vector<8x512xf32>
    %c17_i32_139 = arith.constant 17 : i32
    %201 = tpu.dynamic_rotate %200 by %c17_i32_139 dim 1 : vector<8x512xf32>, i32 -> vector<8x512xf32>
    %c0_140 = arith.constant 0 : index
    %c0_141 = arith.constant 0 : index
    %c0_142 = arith.constant 0 : index
    %202 = vector.load %arg1[%c0_140, %c0_141, %c0_142] : memref<9x1x512xf32, #tpu.memory_space<vmem>>, vector<1x1x512xf32>
    %203 = vector.shape_cast %202 : vector<1x1x512xf32> to vector<1x512xf32>
    %204 = vector.broadcast %203 : vector<1x512xf32> to vector<8x512xf32>
    %205 = arith.mulf %201, %204 : vector<8x512xf32>
    %c16_i32_143 = arith.constant 16 : i32
    %206 = tpu.dynamic_rotate %200 by %c16_i32_143 dim 1 : vector<8x512xf32>, i32 -> vector<8x512xf32>
    %c1_144 = arith.constant 1 : index
    %c0_145 = arith.constant 0 : index
    %c0_146 = arith.constant 0 : index
    %207 = vector.load %arg1[%c1_144, %c0_145, %c0_146] : memref<9x1x512xf32, #tpu.memory_space<vmem>>, vector<1x1x512xf32>
    %208 = vector.shape_cast %207 : vector<1x1x512xf32> to vector<1x512xf32>
    %209 = vector.broadcast %208 : vector<1x512xf32> to vector<8x512xf32>
    %210 = arith.mulf %206, %209 : vector<8x512xf32>
    %c15_i32_147 = arith.constant 15 : i32
    %211 = tpu.dynamic_rotate %200 by %c15_i32_147 dim 1 : vector<8x512xf32>, i32 -> vector<8x512xf32>
    %c2_148 = arith.constant 2 : index
    %c0_149 = arith.constant 0 : index
    %c0_150 = arith.constant 0 : index
    %212 = vector.load %arg1[%c2_148, %c0_149, %c0_150] : memref<9x1x512xf32, #tpu.memory_space<vmem>>, vector<1x1x512xf32>
    %213 = vector.shape_cast %212 : vector<1x1x512xf32> to vector<1x512xf32>
    %214 = vector.broadcast %213 : vector<1x512xf32> to vector<8x512xf32>
    %215 = arith.mulf %211, %214 : vector<8x512xf32>
    %c1_i32_151 = arith.constant 1 : i32
    %216 = tpu.dynamic_rotate %200 by %c1_i32_151 dim 1 : vector<8x512xf32>, i32 -> vector<8x512xf32>
    %c3_152 = arith.constant 3 : index
    %c0_153 = arith.constant 0 : index
    %c0_154 = arith.constant 0 : index
    %217 = vector.load %arg1[%c3_152, %c0_153, %c0_154] : memref<9x1x512xf32, #tpu.memory_space<vmem>>, vector<1x1x512xf32>
    %218 = vector.shape_cast %217 : vector<1x1x512xf32> to vector<1x512xf32>
    %219 = vector.broadcast %218 : vector<1x512xf32> to vector<8x512xf32>
    %220 = arith.mulf %216, %219 : vector<8x512xf32>
    %c511_i32_155 = arith.constant 511 : i32
    %221 = tpu.dynamic_rotate %200 by %c511_i32_155 dim 1 : vector<8x512xf32>, i32 -> vector<8x512xf32>
    %c5_156 = arith.constant 5 : index
    %c0_157 = arith.constant 0 : index
    %c0_158 = arith.constant 0 : index
    %222 = vector.load %arg1[%c5_156, %c0_157, %c0_158] : memref<9x1x512xf32, #tpu.memory_space<vmem>>, vector<1x1x512xf32>
    %223 = vector.shape_cast %222 : vector<1x1x512xf32> to vector<1x512xf32>
    %224 = vector.broadcast %223 : vector<1x512xf32> to vector<8x512xf32>
    %225 = arith.mulf %221, %224 : vector<8x512xf32>
    %c497_i32_159 = arith.constant 497 : i32
    %226 = tpu.dynamic_rotate %200 by %c497_i32_159 dim 1 : vector<8x512xf32>, i32 -> vector<8x512xf32>
    %c6_160 = arith.constant 6 : index
    %c0_161 = arith.constant 0 : index
    %c0_162 = arith.constant 0 : index
    %227 = vector.load %arg1[%c6_160, %c0_161, %c0_162] : memref<9x1x512xf32, #tpu.memory_space<vmem>>, vector<1x1x512xf32>
    %228 = vector.shape_cast %227 : vector<1x1x512xf32> to vector<1x512xf32>
    %229 = vector.broadcast %228 : vector<1x512xf32> to vector<8x512xf32>
    %230 = arith.mulf %226, %229 : vector<8x512xf32>
    %c496_i32_163 = arith.constant 496 : i32
    %231 = tpu.dynamic_rotate %200 by %c496_i32_163 dim 1 : vector<8x512xf32>, i32 -> vector<8x512xf32>
    %c7_164 = arith.constant 7 : index
    %c0_165 = arith.constant 0 : index
    %c0_166 = arith.constant 0 : index
    %232 = vector.load %arg1[%c7_164, %c0_165, %c0_166] : memref<9x1x512xf32, #tpu.memory_space<vmem>>, vector<1x1x512xf32>
    %233 = vector.shape_cast %232 : vector<1x1x512xf32> to vector<1x512xf32>
    %234 = vector.broadcast %233 : vector<1x512xf32> to vector<8x512xf32>
    %235 = arith.mulf %231, %234 : vector<8x512xf32>
    %c495_i32_167 = arith.constant 495 : i32
    %236 = tpu.dynamic_rotate %200 by %c495_i32_167 dim 1 : vector<8x512xf32>, i32 -> vector<8x512xf32>
    %c8_168 = arith.constant 8 : index
    %c0_169 = arith.constant 0 : index
    %c0_170 = arith.constant 0 : index
    %237 = vector.load %arg1[%c8_168, %c0_169, %c0_170] : memref<9x1x512xf32, #tpu.memory_space<vmem>>, vector<1x1x512xf32>
    %238 = vector.shape_cast %237 : vector<1x1x512xf32> to vector<1x512xf32>
    %239 = vector.broadcast %238 : vector<1x512xf32> to vector<8x512xf32>
    %240 = arith.mulf %236, %239 : vector<8x512xf32>
    %241 = tpu.concatenate %205, %210, %215, %220, %200, %225, %230, %235, %240 in 0 : vector<8x512xf32>, vector<8x512xf32>, vector<8x512xf32>, vector<8x512xf32>, vector<8x512xf32>, vector<8x512xf32>, vector<8x512xf32>, vector<8x512xf32>, vector<8x512xf32> -> vector<72x512xf32>
    %242 = arith.truncf %241 : vector<72x512xf32> to vector<72x512xbf16>
    %c0_171 = arith.constant 0 : index
    %c0_172 = arith.constant 0 : index
    %243 = vector.load %arg10[%c0_171, %c0_172] : memref<4x72xbf16, #tpu.memory_space<vmem>>, vector<4x72xbf16>
    %cst_173 = arith.constant dense<0.000000e+00> : vector<4x512xf32>
    %244 = tpu.matmul %243, %242, %cst_173 {dimension_numbers = #tpu.dot_dimension_numbers<[1], [0], [0], [1], [0, 0, 1, 1], [], []>} : vector<4x72xbf16>, vector<72x512xbf16>, vector<4x512xf32> -> vector<4x512xf32>
    %c4_174 = arith.constant 4 : index
    %c5_175 = arith.constant 5 : index
    %245 = vector.load %arg2[%c4_174, %c5_175] : memref<8x10xf32, #tpu.memory_space<vmem>>, vector<4x1xf32>
    %c4_176 = arith.constant 4 : index
    %c6_177 = arith.constant 6 : index
    %246 = vector.load %arg2[%c4_176, %c6_177] : memref<8x10xf32, #tpu.memory_space<vmem>>, vector<4x1xf32>
    %247 = vector.broadcast %245 : vector<4x1xf32> to vector<4x512xf32>
    %248 = arith.addf %244, %247 : vector<4x512xf32>
    %cst_178 = arith.constant 0.000000e+00 : f32
    %249 = vector.broadcast %cst_178 : f32 to vector<4x512xf32>
    %250 = arith.cmpf oge, %248, %249 : vector<4x512xf32>
    %251 = vector.broadcast %246 : vector<4x1xf32> to vector<4x512xf32>
    %252 = arith.mulf %251, %248 : vector<4x512xf32>
    %253 = arith.select %250, %248, %252 : vector<4x512xi1>, vector<4x512xf32>
    %c4_179 = arith.constant 4 : index
    %c0_180 = arith.constant 0 : index
    %254 = vector.load %arg17[%c4_179, %c0_180] : memref<16x512xf32, #tpu.memory_space<vmem>>, vector<4x512xf32>
    tpu.vector_store %arg17[%c4_179, %c0_180], %253 {strides = array<i32>} : memref<16x512xf32, #tpu.memory_space<vmem>>, vector<4x512xf32>,
    %c0_181 = arith.constant 0 : index
    %c0_182 = arith.constant 0 : index
    %255 = vector.load %arg17[%c0_181, %c0_182] : memref<16x512xf32, #tpu.memory_space<vmem>>, vector<8x512xf32>
    %c17_i32_183 = arith.constant 17 : i32
    %256 = tpu.dynamic_rotate %255 by %c17_i32_183 dim 1 : vector<8x512xf32>, i32 -> vector<8x512xf32>
    %c0_184 = arith.constant 0 : index
    %c0_185 = arith.constant 0 : index
    %c0_186 = arith.constant 0 : index
    %257 = vector.load %arg1[%c0_184, %c0_185, %c0_186] : memref<9x1x512xf32, #tpu.memory_space<vmem>>, vector<1x1x512xf32>
    %258 = vector.shape_cast %257 : vector<1x1x512xf32> to vector<1x512xf32>
    %259 = vector.broadcast %258 : vector<1x512xf32> to vector<8x512xf32>
    %260 = arith.mulf %256, %259 : vector<8x512xf32>
    %c16_i32_187 = arith.constant 16 : i32
    %261 = tpu.dynamic_rotate %255 by %c16_i32_187 dim 1 : vector<8x512xf32>, i32 -> vector<8x512xf32>
    %c1_188 = arith.constant 1 : index
    %c0_189 = arith.constant 0 : index
    %c0_190 = arith.constant 0 : index
    %262 = vector.load %arg1[%c1_188, %c0_189, %c0_190] : memref<9x1x512xf32, #tpu.memory_space<vmem>>, vector<1x1x512xf32>
    %263 = vector.shape_cast %262 : vector<1x1x512xf32> to vector<1x512xf32>
    %264 = vector.broadcast %263 : vector<1x512xf32> to vector<8x512xf32>
    %265 = arith.mulf %261, %264 : vector<8x512xf32>
    %c15_i32_191 = arith.constant 15 : i32
    %266 = tpu.dynamic_rotate %255 by %c15_i32_191 dim 1 : vector<8x512xf32>, i32 -> vector<8x512xf32>
    %c2_192 = arith.constant 2 : index
    %c0_193 = arith.constant 0 : index
    %c0_194 = arith.constant 0 : index
    %267 = vector.load %arg1[%c2_192, %c0_193, %c0_194] : memref<9x1x512xf32, #tpu.memory_space<vmem>>, vector<1x1x512xf32>
    %268 = vector.shape_cast %267 : vector<1x1x512xf32> to vector<1x512xf32>
    %269 = vector.broadcast %268 : vector<1x512xf32> to vector<8x512xf32>
    %270 = arith.mulf %266, %269 : vector<8x512xf32>
    %c1_i32_195 = arith.constant 1 : i32
    %271 = tpu.dynamic_rotate %255 by %c1_i32_195 dim 1 : vector<8x512xf32>, i32 -> vector<8x512xf32>
    %c3_196 = arith.constant 3 : index
    %c0_197 = arith.constant 0 : index
    %c0_198 = arith.constant 0 : index
    %272 = vector.load %arg1[%c3_196, %c0_197, %c0_198] : memref<9x1x512xf32, #tpu.memory_space<vmem>>, vector<1x1x512xf32>
    %273 = vector.shape_cast %272 : vector<1x1x512xf32> to vector<1x512xf32>
    %274 = vector.broadcast %273 : vector<1x512xf32> to vector<8x512xf32>
    %275 = arith.mulf %271, %274 : vector<8x512xf32>
    %c511_i32_199 = arith.constant 511 : i32
    %276 = tpu.dynamic_rotate %255 by %c511_i32_199 dim 1 : vector<8x512xf32>, i32 -> vector<8x512xf32>
    %c5_200 = arith.constant 5 : index
    %c0_201 = arith.constant 0 : index
    %c0_202 = arith.constant 0 : index
    %277 = vector.load %arg1[%c5_200, %c0_201, %c0_202] : memref<9x1x512xf32, #tpu.memory_space<vmem>>, vector<1x1x512xf32>
    %278 = vector.shape_cast %277 : vector<1x1x512xf32> to vector<1x512xf32>
    %279 = vector.broadcast %278 : vector<1x512xf32> to vector<8x512xf32>
    %280 = arith.mulf %276, %279 : vector<8x512xf32>
    %c497_i32_203 = arith.constant 497 : i32
    %281 = tpu.dynamic_rotate %255 by %c497_i32_203 dim 1 : vector<8x512xf32>, i32 -> vector<8x512xf32>
    %c6_204 = arith.constant 6 : index
    %c0_205 = arith.constant 0 : index
    %c0_206 = arith.constant 0 : index
    %282 = vector.load %arg1[%c6_204, %c0_205, %c0_206] : memref<9x1x512xf32, #tpu.memory_space<vmem>>, vector<1x1x512xf32>
    %283 = vector.shape_cast %282 : vector<1x1x512xf32> to vector<1x512xf32>
    %284 = vector.broadcast %283 : vector<1x512xf32> to vector<8x512xf32>
    %285 = arith.mulf %281, %284 : vector<8x512xf32>
    %c496_i32_207 = arith.constant 496 : i32
    %286 = tpu.dynamic_rotate %255 by %c496_i32_207 dim 1 : vector<8x512xf32>, i32 -> vector<8x512xf32>
    %c7_208 = arith.constant 7 : index
    %c0_209 = arith.constant 0 : index
    %c0_210 = arith.constant 0 : index
    %287 = vector.load %arg1[%c7_208, %c0_209, %c0_210] : memref<9x1x512xf32, #tpu.memory_space<vmem>>, vector<1x1x512xf32>
    %288 = vector.shape_cast %287 : vector<1x1x512xf32> to vector<1x512xf32>
    %289 = vector.broadcast %288 : vector<1x512xf32> to vector<8x512xf32>
    %290 = arith.mulf %286, %289 : vector<8x512xf32>
    %c495_i32_211 = arith.constant 495 : i32
    %291 = tpu.dynamic_rotate %255 by %c495_i32_211 dim 1 : vector<8x512xf32>, i32 -> vector<8x512xf32>
    %c8_212 = arith.constant 8 : index
    %c0_213 = arith.constant 0 : index
    %c0_214 = arith.constant 0 : index
    %292 = vector.load %arg1[%c8_212, %c0_213, %c0_214] : memref<9x1x512xf32, #tpu.memory_space<vmem>>, vector<1x1x512xf32>
    %293 = vector.shape_cast %292 : vector<1x1x512xf32> to vector<1x512xf32>
    %294 = vector.broadcast %293 : vector<1x512xf32> to vector<8x512xf32>
    %295 = arith.mulf %291, %294 : vector<8x512xf32>
    %296 = tpu.concatenate %260, %265, %270, %275, %255, %280, %285, %290, %295 in 0 : vector<8x512xf32>, vector<8x512xf32>, vector<8x512xf32>, vector<8x512xf32>, vector<8x512xf32>, vector<8x512xf32>, vector<8x512xf32>, vector<8x512xf32>, vector<8x512xf32> -> vector<72x512xf32>
    %297 = arith.truncf %296 : vector<72x512xf32> to vector<72x512xbf16>
    %c0_215 = arith.constant 0 : index
    %c0_216 = arith.constant 0 : index
    %298 = vector.load %arg11[%c0_215, %c0_216] : memref<4x72xbf16, #tpu.memory_space<vmem>>, vector<4x72xbf16>
    %cst_217 = arith.constant dense<0.000000e+00> : vector<4x512xf32>
    %299 = tpu.matmul %298, %297, %cst_217 {dimension_numbers = #tpu.dot_dimension_numbers<[1], [0], [0], [1], [0, 0, 1, 1], [], []>} : vector<4x72xbf16>, vector<72x512xbf16>, vector<4x512xf32> -> vector<4x512xf32>
    %c0_218 = arith.constant 0 : index
    %c7_219 = arith.constant 7 : index
    %300 = vector.load %arg2[%c0_218, %c7_219] : memref<8x10xf32, #tpu.memory_space<vmem>>, vector<4x1xf32>
    %c0_220 = arith.constant 0 : index
    %c8_221 = arith.constant 8 : index
    %301 = vector.load %arg2[%c0_220, %c8_221] : memref<8x10xf32, #tpu.memory_space<vmem>>, vector<4x1xf32>
    %302 = vector.broadcast %300 : vector<4x1xf32> to vector<4x512xf32>
    %303 = arith.addf %299, %302 : vector<4x512xf32>
    %cst_222 = arith.constant 0.000000e+00 : f32
    %304 = vector.broadcast %cst_222 : f32 to vector<4x512xf32>
    %305 = arith.cmpf oge, %303, %304 : vector<4x512xf32>
    %306 = vector.broadcast %301 : vector<4x1xf32> to vector<4x512xf32>
    %307 = arith.mulf %306, %303 : vector<4x512xf32>
    %308 = arith.select %305, %303, %307 : vector<4x512xi1>, vector<4x512xf32>
    %c0_223 = arith.constant 0 : index
    %c0_224 = arith.constant 0 : index
    %309 = vector.load %arg17[%c0_223, %c0_224] : memref<16x512xf32, #tpu.memory_space<vmem>>, vector<4x512xf32>
    tpu.vector_store %arg17[%c0_223, %c0_224], %308 {strides = array<i32>} : memref<16x512xf32, #tpu.memory_space<vmem>>, vector<4x512xf32>,
    %c0_225 = arith.constant 0 : index
    %c0_226 = arith.constant 0 : index
    %310 = vector.load %arg17[%c0_225, %c0_226] : memref<16x512xf32, #tpu.memory_space<vmem>>, vector<8x512xf32>
    %c17_i32_227 = arith.constant 17 : i32
    %311 = tpu.dynamic_rotate %310 by %c17_i32_227 dim 1 : vector<8x512xf32>, i32 -> vector<8x512xf32>
    %c0_228 = arith.constant 0 : index
    %c0_229 = arith.constant 0 : index
    %c0_230 = arith.constant 0 : index
    %312 = vector.load %arg1[%c0_228, %c0_229, %c0_230] : memref<9x1x512xf32, #tpu.memory_space<vmem>>, vector<1x1x512xf32>
    %313 = vector.shape_cast %312 : vector<1x1x512xf32> to vector<1x512xf32>
    %314 = vector.broadcast %313 : vector<1x512xf32> to vector<8x512xf32>
    %315 = arith.mulf %311, %314 : vector<8x512xf32>
    %c16_i32_231 = arith.constant 16 : i32
    %316 = tpu.dynamic_rotate %310 by %c16_i32_231 dim 1 : vector<8x512xf32>, i32 -> vector<8x512xf32>
    %c1_232 = arith.constant 1 : index
    %c0_233 = arith.constant 0 : index
    %c0_234 = arith.constant 0 : index
    %317 = vector.load %arg1[%c1_232, %c0_233, %c0_234] : memref<9x1x512xf32, #tpu.memory_space<vmem>>, vector<1x1x512xf32>
    %318 = vector.shape_cast %317 : vector<1x1x512xf32> to vector<1x512xf32>
    %319 = vector.broadcast %318 : vector<1x512xf32> to vector<8x512xf32>
    %320 = arith.mulf %316, %319 : vector<8x512xf32>
    %c15_i32_235 = arith.constant 15 : i32
    %321 = tpu.dynamic_rotate %310 by %c15_i32_235 dim 1 : vector<8x512xf32>, i32 -> vector<8x512xf32>
    %c2_236 = arith.constant 2 : index
    %c0_237 = arith.constant 0 : index
    %c0_238 = arith.constant 0 : index
    %322 = vector.load %arg1[%c2_236, %c0_237, %c0_238] : memref<9x1x512xf32, #tpu.memory_space<vmem>>, vector<1x1x512xf32>
    %323 = vector.shape_cast %322 : vector<1x1x512xf32> to vector<1x512xf32>
    %324 = vector.broadcast %323 : vector<1x512xf32> to vector<8x512xf32>
    %325 = arith.mulf %321, %324 : vector<8x512xf32>
    %c1_i32_239 = arith.constant 1 : i32
    %326 = tpu.dynamic_rotate %310 by %c1_i32_239 dim 1 : vector<8x512xf32>, i32 -> vector<8x512xf32>
    %c3_240 = arith.constant 3 : index
    %c0_241 = arith.constant 0 : index
    %c0_242 = arith.constant 0 : index
    %327 = vector.load %arg1[%c3_240, %c0_241, %c0_242] : memref<9x1x512xf32, #tpu.memory_space<vmem>>, vector<1x1x512xf32>
    %328 = vector.shape_cast %327 : vector<1x1x512xf32> to vector<1x512xf32>
    %329 = vector.broadcast %328 : vector<1x512xf32> to vector<8x512xf32>
    %330 = arith.mulf %326, %329 : vector<8x512xf32>
    %c511_i32_243 = arith.constant 511 : i32
    %331 = tpu.dynamic_rotate %310 by %c511_i32_243 dim 1 : vector<8x512xf32>, i32 -> vector<8x512xf32>
    %c5_244 = arith.constant 5 : index
    %c0_245 = arith.constant 0 : index
    %c0_246 = arith.constant 0 : index
    %332 = vector.load %arg1[%c5_244, %c0_245, %c0_246] : memref<9x1x512xf32, #tpu.memory_space<vmem>>, vector<1x1x512xf32>
    %333 = vector.shape_cast %332 : vector<1x1x512xf32> to vector<1x512xf32>
    %334 = vector.broadcast %333 : vector<1x512xf32> to vector<8x512xf32>
    %335 = arith.mulf %331, %334 : vector<8x512xf32>
    %c497_i32_247 = arith.constant 497 : i32
    %336 = tpu.dynamic_rotate %310 by %c497_i32_247 dim 1 : vector<8x512xf32>, i32 -> vector<8x512xf32>
    %c6_248 = arith.constant 6 : index
    %c0_249 = arith.constant 0 : index
    %c0_250 = arith.constant 0 : index
    %337 = vector.load %arg1[%c6_248, %c0_249, %c0_250] : memref<9x1x512xf32, #tpu.memory_space<vmem>>, vector<1x1x512xf32>
    %338 = vector.shape_cast %337 : vector<1x1x512xf32> to vector<1x512xf32>
    %339 = vector.broadcast %338 : vector<1x512xf32> to vector<8x512xf32>
    %340 = arith.mulf %336, %339 : vector<8x512xf32>
    %c496_i32_251 = arith.constant 496 : i32
    %341 = tpu.dynamic_rotate %310 by %c496_i32_251 dim 1 : vector<8x512xf32>, i32 -> vector<8x512xf32>
    %c7_252 = arith.constant 7 : index
    %c0_253 = arith.constant 0 : index
    %c0_254 = arith.constant 0 : index
    %342 = vector.load %arg1[%c7_252, %c0_253, %c0_254] : memref<9x1x512xf32, #tpu.memory_space<vmem>>, vector<1x1x512xf32>
    %343 = vector.shape_cast %342 : vector<1x1x512xf32> to vector<1x512xf32>
    %344 = vector.broadcast %343 : vector<1x512xf32> to vector<8x512xf32>
    %345 = arith.mulf %341, %344 : vector<8x512xf32>
    %c495_i32_255 = arith.constant 495 : i32
    %346 = tpu.dynamic_rotate %310 by %c495_i32_255 dim 1 : vector<8x512xf32>, i32 -> vector<8x512xf32>
    %c8_256 = arith.constant 8 : index
    %c0_257 = arith.constant 0 : index
    %c0_258 = arith.constant 0 : index
    %347 = vector.load %arg1[%c8_256, %c0_257, %c0_258] : memref<9x1x512xf32, #tpu.memory_space<vmem>>, vector<1x1x512xf32>
    %348 = vector.shape_cast %347 : vector<1x1x512xf32> to vector<1x512xf32>
    %349 = vector.broadcast %348 : vector<1x512xf32> to vector<8x512xf32>
    %350 = arith.mulf %346, %349 : vector<8x512xf32>
    %351 = tpu.concatenate %315, %320, %325, %330, %310, %335, %340, %345, %350 in 0 : vector<8x512xf32>, vector<8x512xf32>, vector<8x512xf32>, vector<8x512xf32>, vector<8x512xf32>, vector<8x512xf32>, vector<8x512xf32>, vector<8x512xf32>, vector<8x512xf32> -> vector<72x512xf32>
    %352 = arith.truncf %351 : vector<72x512xf32> to vector<72x512xbf16>
    %c0_259 = arith.constant 0 : index
    %c0_260 = arith.constant 0 : index
    %353 = vector.load %arg12[%c0_259, %c0_260] : memref<4x72xbf16, #tpu.memory_space<vmem>>, vector<4x72xbf16>
    %cst_261 = arith.constant dense<0.000000e+00> : vector<4x512xf32>
    %354 = tpu.matmul %353, %352, %cst_261 {dimension_numbers = #tpu.dot_dimension_numbers<[1], [0], [0], [1], [0, 0, 1, 1], [], []>} : vector<4x72xbf16>, vector<72x512xbf16>, vector<4x512xf32> -> vector<4x512xf32>
    %c4_262 = arith.constant 4 : index
    %c7_263 = arith.constant 7 : index
    %355 = vector.load %arg2[%c4_262, %c7_263] : memref<8x10xf32, #tpu.memory_space<vmem>>, vector<4x1xf32>
    %c4_264 = arith.constant 4 : index
    %c8_265 = arith.constant 8 : index
    %356 = vector.load %arg2[%c4_264, %c8_265] : memref<8x10xf32, #tpu.memory_space<vmem>>, vector<4x1xf32>
    %357 = vector.broadcast %355 : vector<4x1xf32> to vector<4x512xf32>
    %358 = arith.addf %354, %357 : vector<4x512xf32>
    %cst_266 = arith.constant 0.000000e+00 : f32
    %359 = vector.broadcast %cst_266 : f32 to vector<4x512xf32>
    %360 = arith.cmpf oge, %358, %359 : vector<4x512xf32>
    %361 = vector.broadcast %356 : vector<4x1xf32> to vector<4x512xf32>
    %362 = arith.mulf %361, %358 : vector<4x512xf32>
    %363 = arith.select %360, %358, %362 : vector<4x512xi1>, vector<4x512xf32>
    %c4_267 = arith.constant 4 : index
    %c0_268 = arith.constant 0 : index
    %364 = vector.load %arg17[%c4_267, %c0_268] : memref<16x512xf32, #tpu.memory_space<vmem>>, vector<4x512xf32>
    tpu.vector_store %arg17[%c4_267, %c0_268], %363 {strides = array<i32>} : memref<16x512xf32, #tpu.memory_space<vmem>>, vector<4x512xf32>,
    %c0_269 = arith.constant 0 : index
    %c0_270 = arith.constant 0 : index
    %365 = vector.load %arg13[%c0_269, %c0_270] : memref<8x72xbf16, #tpu.memory_space<vmem>>, vector<8x72xbf16>
    %c0_271 = arith.constant 0 : index
    %c0_272 = arith.constant 0 : index
    %366 = vector.load %arg17[%c0_271, %c0_272] : memref<16x512xf32, #tpu.memory_space<vmem>>, vector<8x512xf32>
    %c17_i32_273 = arith.constant 17 : i32
    %367 = tpu.dynamic_rotate %366 by %c17_i32_273 dim 1 : vector<8x512xf32>, i32 -> vector<8x512xf32>
    %c0_274 = arith.constant 0 : index
    %c0_275 = arith.constant 0 : index
    %c0_276 = arith.constant 0 : index
    %368 = vector.load %arg1[%c0_274, %c0_275, %c0_276] : memref<9x1x512xf32, #tpu.memory_space<vmem>>, vector<1x1x512xf32>
    %369 = vector.shape_cast %368 : vector<1x1x512xf32> to vector<1x512xf32>
    %370 = vector.broadcast %369 : vector<1x512xf32> to vector<8x512xf32>
    %371 = arith.mulf %367, %370 : vector<8x512xf32>
    %c16_i32_277 = arith.constant 16 : i32
    %372 = tpu.dynamic_rotate %366 by %c16_i32_277 dim 1 : vector<8x512xf32>, i32 -> vector<8x512xf32>
    %c1_278 = arith.constant 1 : index
    %c0_279 = arith.constant 0 : index
    %c0_280 = arith.constant 0 : index
    %373 = vector.load %arg1[%c1_278, %c0_279, %c0_280] : memref<9x1x512xf32, #tpu.memory_space<vmem>>, vector<1x1x512xf32>
    %374 = vector.shape_cast %373 : vector<1x1x512xf32> to vector<1x512xf32>
    %375 = vector.broadcast %374 : vector<1x512xf32> to vector<8x512xf32>
    %376 = arith.mulf %372, %375 : vector<8x512xf32>
    %c15_i32_281 = arith.constant 15 : i32
    %377 = tpu.dynamic_rotate %366 by %c15_i32_281 dim 1 : vector<8x512xf32>, i32 -> vector<8x512xf32>
    %c2_282 = arith.constant 2 : index
    %c0_283 = arith.constant 0 : index
    %c0_284 = arith.constant 0 : index
    %378 = vector.load %arg1[%c2_282, %c0_283, %c0_284] : memref<9x1x512xf32, #tpu.memory_space<vmem>>, vector<1x1x512xf32>
    %379 = vector.shape_cast %378 : vector<1x1x512xf32> to vector<1x512xf32>
    %380 = vector.broadcast %379 : vector<1x512xf32> to vector<8x512xf32>
    %381 = arith.mulf %377, %380 : vector<8x512xf32>
    %c1_i32_285 = arith.constant 1 : i32
    %382 = tpu.dynamic_rotate %366 by %c1_i32_285 dim 1 : vector<8x512xf32>, i32 -> vector<8x512xf32>
    %c3_286 = arith.constant 3 : index
    %c0_287 = arith.constant 0 : index
    %c0_288 = arith.constant 0 : index
    %383 = vector.load %arg1[%c3_286, %c0_287, %c0_288] : memref<9x1x512xf32, #tpu.memory_space<vmem>>, vector<1x1x512xf32>
    %384 = vector.shape_cast %383 : vector<1x1x512xf32> to vector<1x512xf32>
    %385 = vector.broadcast %384 : vector<1x512xf32> to vector<8x512xf32>
    %386 = arith.mulf %382, %385 : vector<8x512xf32>
    %c511_i32_289 = arith.constant 511 : i32
    %387 = tpu.dynamic_rotate %366 by %c511_i32_289 dim 1 : vector<8x512xf32>, i32 -> vector<8x512xf32>
    %c5_290 = arith.constant 5 : index
    %c0_291 = arith.constant 0 : index
    %c0_292 = arith.constant 0 : index
    %388 = vector.load %arg1[%c5_290, %c0_291, %c0_292] : memref<9x1x512xf32, #tpu.memory_space<vmem>>, vector<1x1x512xf32>
    %389 = vector.shape_cast %388 : vector<1x1x512xf32> to vector<1x512xf32>
    %390 = vector.broadcast %389 : vector<1x512xf32> to vector<8x512xf32>
    %391 = arith.mulf %387, %390 : vector<8x512xf32>
    %c497_i32_293 = arith.constant 497 : i32
    %392 = tpu.dynamic_rotate %366 by %c497_i32_293 dim 1 : vector<8x512xf32>, i32 -> vector<8x512xf32>
    %c6_294 = arith.constant 6 : index
    %c0_295 = arith.constant 0 : index
    %c0_296 = arith.constant 0 : index
    %393 = vector.load %arg1[%c6_294, %c0_295, %c0_296] : memref<9x1x512xf32, #tpu.memory_space<vmem>>, vector<1x1x512xf32>
    %394 = vector.shape_cast %393 : vector<1x1x512xf32> to vector<1x512xf32>
    %395 = vector.broadcast %394 : vector<1x512xf32> to vector<8x512xf32>
    %396 = arith.mulf %392, %395 : vector<8x512xf32>
    %c496_i32_297 = arith.constant 496 : i32
    %397 = tpu.dynamic_rotate %366 by %c496_i32_297 dim 1 : vector<8x512xf32>, i32 -> vector<8x512xf32>
    %c7_298 = arith.constant 7 : index
    %c0_299 = arith.constant 0 : index
    %c0_300 = arith.constant 0 : index
    %398 = vector.load %arg1[%c7_298, %c0_299, %c0_300] : memref<9x1x512xf32, #tpu.memory_space<vmem>>, vector<1x1x512xf32>
    %399 = vector.shape_cast %398 : vector<1x1x512xf32> to vector<1x512xf32>
    %400 = vector.broadcast %399 : vector<1x512xf32> to vector<8x512xf32>
    %401 = arith.mulf %397, %400 : vector<8x512xf32>
    %c495_i32_301 = arith.constant 495 : i32
    %402 = tpu.dynamic_rotate %366 by %c495_i32_301 dim 1 : vector<8x512xf32>, i32 -> vector<8x512xf32>
    %c8_302 = arith.constant 8 : index
    %c0_303 = arith.constant 0 : index
    %c0_304 = arith.constant 0 : index
    %403 = vector.load %arg1[%c8_302, %c0_303, %c0_304] : memref<9x1x512xf32, #tpu.memory_space<vmem>>, vector<1x1x512xf32>
    %404 = vector.shape_cast %403 : vector<1x1x512xf32> to vector<1x512xf32>
    %405 = vector.broadcast %404 : vector<1x512xf32> to vector<8x512xf32>
    %406 = arith.mulf %402, %405 : vector<8x512xf32>
    %407 = tpu.concatenate %371, %376, %381, %386, %366, %391, %396, %401, %406 in 0 : vector<8x512xf32>, vector<8x512xf32>, vector<8x512xf32>, vector<8x512xf32>, vector<8x512xf32>, vector<8x512xf32>, vector<8x512xf32>, vector<8x512xf32>, vector<8x512xf32> -> vector<72x512xf32>
    %408 = arith.truncf %407 : vector<72x512xf32> to vector<72x512xbf16>
    %cst_305 = arith.constant dense<0.000000e+00> : vector<8x512xf32>
    %409 = tpu.matmul %365, %408, %cst_305 {dimension_numbers = #tpu.dot_dimension_numbers<[1], [0], [0], [1], [0, 0, 1, 1], [], []>} : vector<8x72xbf16>, vector<72x512xbf16>, vector<8x512xf32> -> vector<8x512xf32>
    %c0_306 = arith.constant 0 : index
    %c0_307 = arith.constant 0 : index
    %410 = vector.load %arg16[%c0_306, %c0_307] : memref<8x512xf32, #tpu.memory_space<vmem>>, vector<8x512xf32>
    %411 = arith.addf %410, %409 : vector<8x512xf32>
    %c0_308 = arith.constant 0 : index
    %c9 = arith.constant 9 : index
    %412 = vector.load %arg2[%c0_308, %c9] : memref<8x10xf32, #tpu.memory_space<vmem>>, vector<8x1xf32>
    %413 = vector.broadcast %412 : vector<8x1xf32> to vector<8x512xf32>
    %414 = arith.addf %411, %413 : vector<8x512xf32>
    %c0_309 = arith.constant 0 : index
    %c0_310 = arith.constant 0 : index
    %415 = vector.load %arg16[%c0_309, %c0_310] : memref<8x512xf32, #tpu.memory_space<vmem>>, vector<8x512xf32>
    tpu.vector_store %arg16[%c0_309, %c0_310], %414 {strides = array<i32>} : memref<8x512xf32, #tpu.memory_space<vmem>>, vector<8x512xf32>,
    return
  }
  func.func @transform_0(%arg0: i32) -> (i32, i32, i32) {
    %c0_i32 = arith.constant 0 : i32
    %c0_i32_0 = arith.constant 0 : i32
    %c0_i32_1 = arith.constant 0 : i32
    %c0_i32_2 = arith.constant 0 : i32
    return %c0_i32, %c0_i32_0, %c0_i32_1 : i32, i32, i32
  }
  func.func @transform_1(%arg0: i32) -> (i32, i32) {
    %c0_i32 = arith.constant 0 : i32
    %c0_i32_0 = arith.constant 0 : i32
    %c0_i32_1 = arith.constant 0 : i32
    return %c0_i32, %c0_i32_0 : i32, i32
  }
  func.func @transform_2(%arg0: i32) -> (i32, i32) {
    %c0_i32 = arith.constant 0 : i32
    %c0_i32_0 = arith.constant 0 : i32
    %c0_i32_1 = arith.constant 0 : i32
    return %c0_i32, %c0_i32_0 : i32, i32
  }
  func.func @transform_3(%arg0: i32) -> (i32, i32) {
    %c0_i32 = arith.constant 0 : i32
    %c0_i32_0 = arith.constant 0 : i32
    %c0_i32_1 = arith.constant 0 : i32
    return %c0_i32, %c0_i32_0 : i32, i32
  }
  func.func @transform_4(%arg0: i32) -> (i32, i32) {
    %c0_i32 = arith.constant 0 : i32
    %c0_i32_0 = arith.constant 0 : i32
    %c0_i32_1 = arith.constant 0 : i32
    return %c0_i32, %c0_i32_0 : i32, i32
  }
  func.func @transform_5(%arg0: i32) -> (i32, i32) {
    %c0_i32 = arith.constant 0 : i32
    %c0_i32_0 = arith.constant 0 : i32
    %c0_i32_1 = arith.constant 0 : i32
    return %c0_i32, %c0_i32_0 : i32, i32
  }
  func.func @transform_6(%arg0: i32) -> (i32, i32) {
    %c0_i32 = arith.constant 0 : i32
    %c0_i32_0 = arith.constant 0 : i32
    %c0_i32_1 = arith.constant 0 : i32
    return %c0_i32, %c0_i32_0 : i32, i32
  }
  func.func @transform_7(%arg0: i32) -> (i32, i32) {
    %c0_i32 = arith.constant 0 : i32
    %c0_i32_0 = arith.constant 0 : i32
    %c0_i32_1 = arith.constant 0 : i32
    return %c0_i32, %c0_i32_0 : i32, i32
  }
  func.func @transform_8(%arg0: i32) -> (i32, i32) {
    %c0_i32 = arith.constant 0 : i32
    %c0_i32_0 = arith.constant 0 : i32
    %c0_i32_1 = arith.constant 0 : i32
    return %c0_i32, %c0_i32_0 : i32, i32
  }
  func.func @transform_9(%arg0: i32) -> (i32, i32) {
    %c0_i32 = arith.constant 0 : i32
    %c0_i32_0 = arith.constant 0 : i32
    %c0_i32_1 = arith.constant 0 : i32
    return %c0_i32, %c0_i32_0 : i32, i32
  }
  func.func @transform_10(%arg0: i32) -> (i32, i32) {
    %c0_i32 = arith.constant 0 : i32
    %c0_i32_0 = arith.constant 0 : i32
    %c0_i32_1 = arith.constant 0 : i32
    return %c0_i32, %c0_i32_0 : i32, i32
  }
  func.func @transform_11(%arg0: i32) -> (i32, i32) {
    %c0_i32 = arith.constant 0 : i32
    %c0_i32_0 = arith.constant 0 : i32
    %c0_i32_1 = arith.constant 0 : i32
    return %c0_i32, %c0_i32_0 : i32, i32
  }
  func.func @transform_12(%arg0: i32) -> (i32, i32) {
    %c0_i32 = arith.constant 0 : i32
    %c0_i32_0 = arith.constant 0 : i32
    %c0_i32_1 = arith.constant 0 : i32
    return %c0_i32, %c0_i32_0 : i32, i32
  }
  func.func @transform_13(%arg0: i32) -> (i32, i32) {
    %c0_i32 = arith.constant 0 : i32
    %c0_i32_0 = arith.constant 0 : i32
    return %c0_i32, %arg0 : i32, i32
  }
  func.func @transform_14(%arg0: i32) -> (i32, i32) {
    %c0_i32 = arith.constant 0 : i32
    %c0_i32_0 = arith.constant 0 : i32
    return %c0_i32, %arg0 : i32, i32
  }
  func.func @transform_15(%arg0: i32) -> (i32, i32) {
    %c0_i32 = arith.constant 0 : i32
    %c0_i32_0 = arith.constant 0 : i32
    return %c0_i32, %arg0 : i32, i32
  }
}

</mosaic_0001>

<bundles_post_ra>
// kernel: tpu_custom_call.1
= control target key start
LH: loop header
LB: loop body
LE: loop exit
PB: predicated region body
PF: predicated region fallthrough
CT: control target
= control target key end

     0   :  { %vm75_vm0 = vcmask 1043456   ;;  %v6768_v6 = vmov 0   ;;  %s6750_s0 = inlined_call_operand.vmem [shape: f32[9,1,512], index: 0, kind: input, shape index: {}]   ;;  %s6751_s1 = inlined_call_operand.vmem [shape: f32[8,10], index: 1, kind: input, shape index: {}]   ;;  %s6752_s2 = inlined_call_operand.vmem [shape: f32[2,8], index: 2, kind: input, shape index: {}]   ;;  %s6753_s3 = inlined_call_operand.vmem [shape: f32[2,512], index: 3, kind: input, shape index: {}]   ;;  %s6754_s4 = inlined_call_operand.vmem [shape: f32[512,2], index: 4, kind: input, shape index: {}]   ;;  %s6755_s5 = inlined_call_operand.vmem [shape: bf16[8,8], index: 5, kind: input, shape index: {}]   ;;  %s6756_s6 = inlined_call_operand.vmem [shape: bf16[8,72], index: 6, kind: input, shape index: {}]   ;;  %s6757_s7 = inlined_call_operand.vmem [shape: bf16[8,144], index: 7, kind: input, shape index: {}]   ;;  %s6758_s8 = inlined_call_operand.vmem [shape: bf16[4,72], index: 8, kind: input, shape index: {}]   ;;  %s6759_s9 = inlined_call_operand.vmem [shape: bf16[4,72], index: 9, kind: input, shape index: {}]   ;;  %s6760_s10 = inlined_call_operand.vmem [shape: bf16[4,72], index: 10, kind: input, shape index: {}]   ;;  %s6761_s11 = inlined_call_operand.vmem [shape: bf16[4,72], index: 11, kind: input, shape index: {}]   ;;  %s6762_s12 = inlined_call_operand.vmem [shape: bf16[8,72], index: 12, kind: input, shape index: {}]   ;;  %s6763_s13 = inlined_call_operand.vmem [shape: bf16[8,512], index: 13, kind: input, shape index: {}]   ;;  %s6764_s14 = inlined_call_operand.vmem [shape: bf16[8,512], index: 14, kind: input, shape index: {}]   ;;  %s6765_s15 = inlined_call_operand.hbm [shape: f32[8,512], index: 15, kind: output, shape index: {}]  }
   0x1   :  { %v53_v0 = vld [vmem:[%s6763_s13] sm:$0xff]  ;;  %v54_v1 = vld [vmem:[%s6763_s13 + $0x8] sm:$0xff]  ;;  %120 = vmatprep.mubr.bf16.mxu0 %v6768_v6 }
   0x2   :  { %v4115_v2 = vcombine.high %v53_v0, %v53_v0  ;;  %v4117_v3 = vcombine.high %v54_v1, %v54_v1  ;;  %v4114_v4 = vcombine.low %v53_v0, %v53_v0  ;;  %v4116_v5 = vcombine.low %v54_v1, %v54_v1 }
   0x3   :  { %20 = vsyncpa [#allocation4], 0  ;;  %161 = vmatprep.mubr.bf16.mxu1 %v6768_v6  ;;  %4362 = vset.pattern.permute.xlu0 %v6768_v6  ;;  %v4605_v7 = vld [vmem:[%s6751_s1] sm:$0xff]  ;;  %vm71_vm1 = vcmask 64512   ;;  %v4493_v11 = vmov 1   ;;  %v4494_v12 = vmov 0.0  }
   0x4   :  { %4118 = vmatprep.subr.msk.bf16.mxu0 %vm75_vm0, %v4115_v2  ;;  %4120 = vmatprep.subr.msk.bf16.mxu1 %vm75_vm0, %v4117_v3  ;;  %v77_v8 = vsel %vm75_vm0, %v4114_v4, 0  ;;  %v83_v9 = vsel %vm75_vm0, %v4116_v5, 0  ;;  %v52_v10 = vld [vmem:[%s6755_s5] sm:$0xf]  ;;  %v349_v26 = vld [vmem:[%s6754_s4 + $0x88] sm:$0xff]  ;;  %v350_v39 = vld [vmem:[%s6754_s4 + $0x90] sm:$0xff] }
   0x5   :  { %89 = vmatpush1.bf16.msra.mxu0 %v77_v8  ;;  %130 = vmatpush1.bf16.msra.mxu1 %v83_v9  ;;  %v348_v21 = vld [vmem:[%s6754_s4 + $0x80] sm:$0xff]  ;;  %v381_v28 = vld [vmem:[%s6754_s4 + $0x188] sm:$0xff]  ;;  %v351_v41 = vld [vmem:[%s6754_s4 + $0x98] sm:$0xff]  ;;  %s4497_s18 = smov 15   ;;  %s4498_s19 = smov 1   ;;  %vm565_vm8 = vcmask 1041408  }
   0x6   :  { %58 = vperm.xlu0 %4362, %v4605_v7   ;;  %v380_v27 = vld [vmem:[%s6754_s4 + $0x180] sm:$0xff]  ;;  %v333_v34 = vld [vmem:[%s6754_s4 + $0x8] sm:$0xff]  ;;  %v4277_v40 = vpack.c.bf16 %v349_v26, %v348_v21  ;;  %v382_v42 = vld [vmem:[%s6754_s4 + $0x190] sm:$0xff]  ;;  %v4281_v54 = vpack.c.bf16 %v351_v41, %v350_v39  ;;  %s4499_s20 = smov 127   ;;  %s4500_s21 = smov 113   ;;  %vm561_vm15 = vcmask 15360  }
   0x7   :  { %v332_v33 = vld [vmem:[%s6754_s4] sm:$0xff]  ;;  %v365_v38 = vld [vmem:[%s6754_s4 + $0x108] sm:$0xff]  ;;  %v383_v43 = vld [vmem:[%s6754_s4 + $0x198] sm:$0xff]  ;;  %v4309_v47 = vpack.c.bf16 %v381_v28, %v380_v27  ;;  %s4502_s22 = smov 111  }
   0x8   :  { %4119 = vmatmul.mubr.msk.bf16.vlgmr.msra.gmra.mrb[0].mxu0 %vm71_vm1, %v52_v10  ;;  %4121 = vmatmul.mubr.msk.bf16.vlgmr.msra.gmra.mrb[0].mxu1 %vm71_vm1, %v52_v10  ;;  %v364_v37 = vld [vmem:[%s6754_s4 + $0x100] sm:$0xff]  ;;  %v4279_v48 = vpack.c.bf16 %v333_v34, %v332_v33  ;;  %v334_v52 = vld [vmem:[%s6754_s4 + $0x10] sm:$0xff]  ;;  %v335_v53 = vld [vmem:[%s6754_s4 + $0x18] sm:$0xff]  ;;  %v4313_v55 = vpack.c.bf16 %v383_v43, %v382_v42 }
   0x9   :  { %254 = vmatprep.mubr.f32.mxu0 %v4494_v12  ;;  %325 = vmatprep.mubr.f32.mxu1 %v4494_v12  ;;  %v186_v46 = vld [vmem:[%s6752_s2] sm:$0x3]  ;;  %v4311_v51 = vpack.c.bf16 %v365_v38, %v364_v37  ;;  %v366_v56 = vld [vmem:[%s6754_s4 + $0x110] sm:$0xff]  ;;  %v367_v57 = vld [vmem:[%s6754_s4 + $0x118] sm:$0xff]  ;;  %v4283_v62 = vpack.c.bf16 %v335_v53, %v334_v52  ;;  %s4501_s2 = smov 112  }
   0xa   :  { %4363 = vset.pattern.permute.xlu0 %v4493_v11  ;;  %v352_v58 = vld [vmem:[%s6754_s4 + $0xa0] sm:$0xff]  ;;  %v353_v59 = vld [vmem:[%s6754_s4 + $0xa8] sm:$0xff]  ;;  %v4315_v63 = vpack.c.bf16 %v367_v57, %v366_v56  ;;  %v354_v8 = vld [vmem:[%s6754_s4 + $0xb0] sm:$0xff] }
   0xb   :  { %175 = vperm.xlu0 %4363, %v4605_v7   ;;  %v384_v60 = vld [vmem:[%s6754_s4 + $0x1a0] sm:$0xff]  ;;  %v385_v61 = vld [vmem:[%s6754_s4 + $0x1a8] sm:$0xff]  ;;  %v4285_v2 = vpack.c.bf16 %v353_v59, %v352_v58  ;;  %v355_v9 = vld [vmem:[%s6754_s4 + $0xb8] sm:$0xff] }
   0xc   :  { %v336_v0 = vld [vmem:[%s6754_s4 + $0x20] sm:$0xff]  ;;  %v337_v1 = vld [vmem:[%s6754_s4 + $0x28] sm:$0xff]  ;;  %v4317_v3 = vpack.c.bf16 %v385_v61, %v384_v60  ;;  %v386_v10 = vld [vmem:[%s6754_s4 + $0x1b0] sm:$0xff] }
   0xd   :  { %v368_v4 = vld [vmem:[%s6754_s4 + $0x120] sm:$0xff]  ;;  %v369_v5 = vld [vmem:[%s6754_s4 + $0x128] sm:$0xff]  ;;  %v387_v11 = vld [vmem:[%s6754_s4 + $0x1b8] sm:$0xff] }
   0xe   :  { %v356_v21 = vld [vmem:[%s6754_s4 + $0xc0] sm:$0xff]  ;;  %v341_v28 = vld [vmem:[%s6754_s4 + $0x48] sm:$0xff]  ;;  %v358_v33 = vld [vmem:[%s6754_s4 + $0xd0] sm:$0xff] }
   0xf   :  { %v340_v27 = vld [vmem:[%s6754_s4 + $0x40] sm:$0xff]  ;;  %v359_v34 = vld [vmem:[%s6754_s4 + $0xd8] sm:$0xff]  ;;  %v342_v39 = vld [vmem:[%s6754_s4 + $0x50] sm:$0xff] }
  0x10   :  { %v4295_v37 = vpack.c.bf16 %v341_v28, %v340_v27  ;;  %v4297_v41 = vpack.c.bf16 %v359_v34, %v358_v33  ;;  %v374_v43 = vld [vmem:[%s6754_s4 + $0x150] sm:$0xff]  ;;  %v393_v52 = vld [vmem:[%s6754_s4 + $0x1e8] sm:$0xff]  ;;  %v376_v59 = vld [vmem:[%s6754_s4 + $0x160] sm:$0xff]  ;;  %v548_v28 = vlaneseq }
  0x11   :  { %v345_v56 = vld [vmem:[%s6754_s4 + $0x68] sm:$0xff]  ;;  %v362_v61 = vld [vmem:[%s6754_s4 + $0xf0] sm:$0xff] }
  0x12   :  { %v377_v60 = vld [vmem:[%s6754_s4 + $0x168] sm:$0xff]  ;;  %v4876_v34 = vand.u32 127, %v548_v28 }
  0x14   :  { %vm782_vm6 = vcmp.lt.s32.totalorder %v4876_v34, 17  ;;  %vm821_vm7 = vcmp.lt.s32.totalorder %v4876_v34, 16  ;;  %vm861_vm9 = vcmp.lt.s32.totalorder %v4876_v34, 15  ;;  %vm901_vm10 = vcmp.lt.s32.totalorder %v4876_v34, 1 }
  0x15   :  { %vm941_vm11 = vcmp.lt.s32.totalorder %v4876_v34, 127  ;;  %vm981_vm12 = vcmp.lt.s32.totalorder %v4876_v34, 113  ;;  %vm1021_vm13 = vcmp.lt.s32.totalorder %v4876_v34, 112  ;;  %vm1061_vm14 = vcmp.lt.s32.totalorder %v4876_v34, 111 }
  0x85   :  { %v59_v13 = vpop.permute.xlu0 %58 }
  0x8a   :  { %v176_v14 = vpop.permute.xlu0 %175 }
  0xdb   :  { %v122_v15 = vpop.f32.mrb[0].mxu0  ;;  %v163_v16 = vpop.f32.mrb[0].mxu1 }
  0xdc   :  { %v123_v17 = vadd.f32 %v122_v15, %v59_v13  ;;  %v164_v18 = vadd.f32 %v163_v16, %v59_v13  ;;  %v124_v19 = vpop.f32.mrb[1].mxu0  ;;  %v165_v20 = vpop.f32.mrb[1].mxu1  ;;  %v338_v15 = vld [vmem:[%s6754_s4 + $0x30] sm:$0xff]  ;;  %v339_v16 = vld [vmem:[%s6754_s4 + $0x38] sm:$0xff] }
  0xdd   :  { %v125_v22 = vadd.f32 %v124_v19, %v59_v13  ;;  %v166_v23 = vadd.f32 %v165_v20, %v59_v13  ;;  %v126_v24 = vpop.f32.mrb[2].mxu0  ;;  %v167_v25 = vpop.f32.mrb[2].mxu1  ;;  %v4287_v13 = vpack.c.bf16 %v337_v1, %v336_v0  ;;  %v370_v19 = vld [vmem:[%s6754_s4 + $0x130] sm:$0xff]  ;;  %v371_v20 = vld [vmem:[%s6754_s4 + $0x138] sm:$0xff] }
  0xde   :  { %vm170_vm2 = vcmp.ge.f32.partialorder %v123_v17, 0.0  ;;  %vm172_vm3 = vcmp.ge.f32.partialorder %v164_v18, 0.0  ;;  %v127_v29 = vpop.f32.mrb[3].mxu0  ;;  %v168_v30 = vpop.f32.mrb[3].mxu1  ;;  %v178_v31 = vmul.f32 %v176_v14, %v123_v17  ;;  %v180_v32 = vmul.f32 %v176_v14, %v164_v18  ;;  %v389_v24 = vld [vmem:[%s6754_s4 + $0x1c8] sm:$0xff]  ;;  %v395_v0 = vld [vmem:[%s6754_s4 + $0x1f8] sm:$0xff] }
  0xdf   :  { %vm171_vm4 = vcmp.ge.f32.partialorder %v125_v22, 0.0  ;;  %v179_v35 = vmul.f32 %v176_v14, %v125_v22  ;;  %vm173_vm5 = vcmp.ge.f32.partialorder %v166_v23, 0.0  ;;  %v181_v36 = vmul.f32 %v176_v14, %v166_v23 }
  0xe0   :  { %v4666_v49 = vsel %vm170_vm2, %v123_v17, %v178_v31  ;;  %v4669_v50 = vsel %vm172_vm3, %v164_v18, %v180_v32  ;;  %v4319_v14 = vpack.c.bf16 %v369_v5, %v368_v4  ;;  %v4289_v17 = vpack.c.bf16 %v355_v9, %v354_v8  ;;  %v372_v31 = vld [vmem:[%s6754_s4 + $0x140] sm:$0xff]  ;;  %v373_v32 = vld [vmem:[%s6754_s4 + $0x148] sm:$0xff]  ;;  %v346_v5 = vld [vmem:[%s6754_s4 + $0x70] sm:$0xff] }
  0xe1   :  { %v4656_v44 = vsel %vm171_vm4, %v125_v22, %v179_v35  ;;  %v4658_v45 = vsel %vm173_vm5, %v166_v23, %v181_v36  ;;  %v4321_v18 = vpack.c.bf16 %v387_v11, %v386_v10  ;;  %v357_v22 = vld [vmem:[%s6754_s4 + $0xc8] sm:$0xff]  ;;  %v388_v23 = vld [vmem:[%s6754_s4 + $0x1c0] sm:$0xff]  ;;  %v4291_v25 = vpack.c.bf16 %v339_v16, %v338_v15  ;;  %v390_v35 = vld [vmem:[%s6754_s4 + $0x1d0] sm:$0xff] }
  0xe2   :  { %190 = vmatprep.subr.mxu0 %v4656_v44  ;;  %261 = vmatprep.subr.mxu1 %v4658_v45  ;;  %v4323_v26 = vpack.c.bf16 %v371_v20, %v370_v19  ;;  %v4293_v29 = vpack.c.bf16 %v357_v22, %v356_v21  ;;  %v4325_v30 = vpack.c.bf16 %v389_v24, %v388_v23  ;;  %v391_v36 = vld [vmem:[%s6754_s4 + $0x1d8] sm:$0xff]  ;;  %v378_v9 = vld [vmem:[%s6754_s4 + $0x170] sm:$0xff]  ;;  %v4839_v15 = vld [vmem:[%s6764_s14 + $0x8] sm:$0xff]  ;;  %vm1714_vm3 = vcmask 130048  }
  0xe3   :  { %191 = vmatpush1.msra.mxu0 %v4666_v49  ;;  %262 = vmatpush1.msra.mxu1 %v4669_v50  ;;  %v4327_v38 = vpack.c.bf16 %v373_v32, %v372_v31  ;;  %v4329_v42 = vpack.c.bf16 %v391_v36, %v390_v35  ;;  %v347_v8 = vld [vmem:[%s6754_s4 + $0x78] sm:$0xff]  ;;  %v771_v19 = vunpack.c.h.bf16 %v4839_v15  ;;  %v4871_v31 = vshrl.u32 %v548_v28, 7 }
  0xe4   :  { %4122 = vmatmul.mubr.msk.f32.vlgmr.msra.gmra.mrb[4].mxu0 %vm71_vm1, %v186_v46  ;;  %4123 = vmatmul.mubr.msk.f32.vlgmr.msra.gmra.mrb[4].mxu1 %vm71_vm1, %v186_v46  ;;  %v375_v46 = vld [vmem:[%s6754_s4 + $0x158] sm:$0xff]  ;;  %v4307_v10 = vpack.c.bf16 %v347_v8, %v346_v5  ;;  %vm1119_vm1 = vcmask 588800  }
  0xe5   :  { %4278 = vmatprep.subr.bf16.mxu0 %v4277_v40  ;;  %4310 = vmatprep.subr.bf16.mxu1 %v4309_v47  ;;  %v343_v40 = vld [vmem:[%s6754_s4 + $0x58] sm:$0xff]  ;;  %v360_v47 = vld [vmem:[%s6754_s4 + $0xe0] sm:$0xff]  ;;  %v4874_v33 = vsub.s32 0, %v4871_v31  ;;  %v4879_v35 = vsub.s32 2, %v4871_v31  ;;  %vm718_vm2 = vcmp.lt.s32.totalorder %v4871_v31, 4 }
  0xe6   :  { %4280 = vmatpush3.bf16.msra.mxu0 %v4279_v48  ;;  %4312 = vmatpush3.bf16.msra.mxu1 %v4311_v51  ;;  %v361_v48 = vld [vmem:[%s6754_s4 + $0xe8] sm:$0xff]  ;;  %v392_v51 = vld [vmem:[%s6754_s4 + $0x1e0] sm:$0xff]  ;;  %v4299_v53 = vpack.c.bf16 %v343_v40, %v342_v39  ;;  %v379_v11 = vld [vmem:[%s6754_s4 + $0x178] sm:$0xff] }
  0xe7   :  { %4282 = vmatprep.subr.bf16.mxu0 %v4281_v54  ;;  %4314 = vmatprep.subr.bf16.mxu1 %v4313_v55  ;;  %v4331_v54 = vpack.c.bf16 %v375_v46, %v374_v43  ;;  %v344_v55 = vld [vmem:[%s6754_s4 + $0x60] sm:$0xff]  ;;  %v4301_v57 = vpack.c.bf16 %v361_v48, %v360_v47  ;;  %v4333_v58 = vpack.c.bf16 %v393_v52, %v392_v51 }
  0xe8   :  { %v4303_v1 = vpack.c.bf16 %v345_v56, %v344_v55  ;;  %v787_v39 = vld [vmem:[%s6750_s0] sm:$0xf] }
  0xe9   :  { %v792_v43 = vrot.slane %v787_v39, %v4874_v33  ;;  %v800_v46 = vrot.slane %v787_v39, %v4879_v35  ;;  %v542_v51 = vld [vmem:[%s6753_s3] sm:$0xff] }
  0xea   :  { %4284 = vmatpush3.bf16.msra.mxu0 %v4283_v62  ;;  %4316 = vmatpush3.bf16.msra.mxu1 %v4315_v63  ;;  %v363_v62 = vld [vmem:[%s6754_s4 + $0xf8] sm:$0xff]  ;;  %v394_v63 = vld [vmem:[%s6754_s4 + $0x1f0] sm:$0xff]  ;;  %s4495_s4 = smov 17   ;;  %v544_v5 = vcombine.high %v542_v51, %v542_v51 }
  0xeb   :  { %4286 = vmatprep.subr.bf16.mxu0 %v4285_v2  ;;  %4318 = vmatprep.subr.bf16.mxu1 %v4317_v3  ;;  %v4335_v2 = vpack.c.bf16 %v377_v60, %v376_v59  ;;  %v4305_v3 = vpack.c.bf16 %v363_v62, %v362_v61  ;;  %v4337_v4 = vpack.c.bf16 %v395_v0, %v394_v63  ;;  %v4906_v62 = vsub.s32 1, %v4871_v31 }
  0xec   :  { %v4909_v63 = vsub.s32 3, %v4871_v31 }
  0xee   :  { %4288 = vmatpush3.bf16.msra.mxu0 %v4287_v13  ;;  %4320 = vmatpush3.bf16.msra.mxu1 %v4319_v14  ;;  %v4339_v13 = vpack.c.bf16 %v379_v11, %v378_v9  ;;  %v4834_v14 = vld [vmem:[%s6764_s14] sm:$0xff]  ;;  %s4496_s14 = smov 16  }
  0xef   :  { %4290 = vmatprep.subr.bf16.mxu0 %v4289_v17  ;;  %4322 = vmatprep.subr.bf16.mxu1 %v4321_v18  ;;  %v6767_v16 = vunpack.c.l.bf16 %v4834_v14  ;;  %v769_v17 = vunpack.c.h.bf16 %v4834_v14  ;;  %v6766_v18 = vunpack.c.l.bf16 %v4839_v15 }
  0xf1   :  { %v4364_v20 = vpack.i.bf16 %v769_v17, %v6767_v16  ;;  %v4379_v21 = vpack.i.bf16 %v771_v19, %v6766_v18 }
  0xf2   :  { %4292 = vmatpush3.bf16.msra.mxu0 %v4291_v25  ;;  %4324 = vmatpush3.bf16.msra.mxu1 %v4323_v26 }
  0xf3   :  { %4294 = vmatprep.subr.bf16.mxu0 %v4293_v29  ;;  %4326 = vmatprep.subr.bf16.mxu1 %v4325_v30  ;;  %v4503_v29 = vmov 1983009808  }
  0xf4   :  { %4365 = vrot.lane.b32.xlu1 %v4364_v20, %s4495_s4  ;;  %4380 = vrot.lane.b32.xlu0 %v4379_v21, %s4496_s14  ;;  %v546_v30 = vunpack.c.l.s4 %v4503_v29 }
  0xf6   :  { %4296 = vmatpush3.bf16.msra.mxu0 %v4295_v37  ;;  %4328 = vmatpush3.bf16.msra.mxu1 %v4327_v38  ;;  %v547_v32 = vunpack.c.0.s8 %v546_v30 }
  0xf7   :  { %4298 = vmatprep.subr.bf16.mxu0 %v4297_v41  ;;  %4330 = vmatprep.subr.bf16.mxu1 %v4329_v42  ;;  %v4130_v42 = vld [vmem:[%s6750_s0 + $0x4] sm:$0xf] }
  0xf8   :  { %4370 = vrot.lane.b32.xlu1 %v4379_v21, %s4495_s4  ;;  %4390 = vrot.lane.b32.xlu0 %v4379_v21, %s4497_s18  ;;  %v550_v37 = vsub.s32 %v547_v32, %v4871_v31  ;;  %v836_v11 = vrot.slane %v4130_v42, %v4906_v62 }
  0xfa   :  { %4300 = vmatpush3.bf16.msra.mxu0 %v4299_v53  ;;  %4332 = vmatpush3.bf16.msra.mxu1 %v4331_v54  ;;  %v551_v61 = vrot.slane %v542_v51, %v550_v37 }
  0xfb   :  { %4302 = vmatprep.subr.bf16.mxu0 %v4301_v57  ;;  %4334 = vmatprep.subr.bf16.mxu1 %v4333_v58  ;;  %v832_v57 = vrot.slane %v4130_v42, %v4874_v33  ;;  %v840_v58 = vrot.slane %v4130_v42, %v4879_v35 }
  0xfc   :  { %4375 = vrot.lane.b32.xlu1 %v4364_v20, %s4496_s14  ;;  %4400 = vrot.lane.b32.xlu0 %v4379_v21, %s4498_s19 }
  0xfe   :  { %4304 = vmatpush3.bf16.msra.mxu0 %v4303_v1  ;;  %4336 = vmatpush3.bf16.msra.mxu1 %v4335_v2 }
  0xff   :  { %4306 = vmatprep.subr.bf16.mxu0 %v4305_v3  ;;  %4338 = vmatprep.subr.bf16.mxu1 %v4337_v4  ;;  %v559_v4 = vcombine.high %v551_v61, %v551_v61 }
 0x100   :  { %4385 = vrot.lane.b32.xlu1 %v4364_v20, %s4497_s18  ;;  %4410 = vrot.lane.b32.xlu0 %v4379_v21, %s4499_s20 }
 0x102   :  { %4308 = vmatpush3.bf16.msra.mxu0 %v4307_v10  ;;  %4340 = vmatpush3.bf16.msra.mxu1 %v4339_v13  ;;  %v796_v10 = vrot.slane %v787_v39, %v4906_v62  ;;  %v558_v13 = vrot.slane %v544_v5, %v550_v37  ;;  %v4504_v37 = vmov 2  }
 0x103   :  { %4124 = vmatprep.subr.msk.mxu0 %vm565_vm8, %v559_v4  ;;  %4444 = vset.pattern.permute.xlu1 %v4504_v37  ;;  %v5001_v37 = vld [vmem:[%s6750_s0 + $0x18] sm:$0xf] }
 0x104   :  { %4395 = vrot.lane.b32.xlu1 %v4364_v20, %s4498_s19  ;;  %4420 = vrot.lane.b32.xlu0 %v4379_v21, %s4500_s21 }
 0x108   :  { %4405 = vrot.lane.b32.xlu1 %v4364_v20, %s4499_s20  ;;  %4430 = vrot.lane.b32.xlu0 %v4379_v21, %s4501_s2 }
 0x10c   :  { %4415 = vrot.lane.b32.xlu1 %v4364_v20, %s4500_s21  ;;  %4440 = vrot.lane.b32.xlu0 %v4379_v21, %s4502_s22 }
 0x110   :  { %4425 = vrot.lane.b32.xlu1 %v4364_v20, %s4501_s2 }
 0x114   :  { %4435 = vrot.lane.b32.xlu1 %v4364_v20, %s4502_s22  ;;  %v804_v20 = vrot.slane %v787_v39, %v4909_v63 }
 0x118   :  { %1116 = vperm.xlu1 %4444, %v4605_v7  }
 0x166   :  { %v4366_v26 = vpop.permute.xlu1 %4365  ;;  %v4381_v48 = vpop.permute.xlu0 %4380 }
 0x167   :  { %v4367_v38 = vunpack.i.l.bf16 %v4366_v26  ;;  %v4383_v59 = vunpack.i.h.bf16 %v4381_v48  ;;  %v4382_v60 = vunpack.i.l.bf16 %v4381_v48 }
 0x16a   :  { %v4371_v27 = vpop.permute.xlu1 %4370 }
 0x16b   :  { %v4373_v40 = vunpack.i.h.bf16 %v4371_v27  ;;  %v4372_v41 = vunpack.i.l.bf16 %v4371_v27  ;;  %v822_v27 = vsel %vm821_vm7, %v4382_v60, %v4383_v59 }
 0x16d   :  { %v786_v53 = vsel %vm782_vm6, %v4373_v40, %v4367_v38 }
 0x16e   :  { %v4376_v36 = vpop.permute.xlu1 %4375  ;;  %v4899_v55 = vmul.f32 %v792_v43, %v786_v53 }
 0x16f   :  { %v4378_v47 = vunpack.i.h.bf16 %v4376_v36  ;;  %v4377_v54 = vunpack.i.l.bf16 %v4376_v36 }
 0x171   :  { %v824_v1 = vsel %vm821_vm7, %v4377_v54, %v4378_v47  ;;  %v825_v2 = vsel %vm821_vm7, %v4383_v59, %v4377_v54  ;;  %v823_v3 = vsel %vm821_vm7, %v4378_v47, %v4382_v60 }
 0x172   :  { %v4919_v8 = vmul.f32 %v832_v57, %v825_v2  ;;  %v4921_v9 = vmul.f32 %v840_v58, %v823_v3  ;;  %v4954_v58 = vld [vmem:[%s6750_s0 + $0x8] sm:$0xf]  ;;  %v4963_v2 = vld [vmem:[%s6750_s0 + $0xc] sm:$0xf] }
 0x173   :  { %v872_v5 = vrot.slane %v4954_v58, %v4874_v33 }
 0x1b7   :  { %v256_v22 = vpop.f32.mrb[4].mxu0  ;;  %v327_v23 = vpop.f32.mrb[4].mxu1 }
 0x1b8   :  { %v258_v24 = vpop.f32.mrb[5].mxu0  ;;  %v329_v25 = vpop.f32.mrb[5].mxu1 }
 0x1b9   :  { %460 = vmatprep.mubr.f32.mxu0 %v258_v24  ;;  %530 = vmatprep.mubr.f32.mxu1 %v329_v25  ;;  %v1093_v24 = vpack.c.bf16 %v4919_v8, %v4899_v55  ;;  %v560_v25 = vcombine.high %v558_v13, %v558_v13 }
 0x1ba   :  { %461 = vmatmul.mubr.f32.vlgmr.msra.gmra.mrb[6].mxu0 %v256_v22  ;;  %531 = vmatmul.mubr.f32.vlgmr.msra.gmra.mrb[6].mxu1 %v327_v23  ;;  %v850_v22 = vmul.f32 %v836_v11, %v824_v1  ;;  %v844_v23 = vrot.slane %v4130_v42, %v4909_v63 }
 0x1bb   :  { %638 = vmatprep.mubr.f32.mxu0 %v4494_v12  ;;  %709 = vmatprep.mubr.f32.mxu1 %v4494_v12  ;;  %v4368_v12 = vunpack.i.h.bf16 %v4366_v26  ;;  %v783_v26 = vsel %vm782_vm6, %v4372_v41, %v4373_v40 }
 0x1bc   :  { %4125 = vmatpush1.msk.msra.mxu0 %vm565_vm8, %v551_v61  ;;  %4127 = vmatprep.subr.msk.mxu1 %vm565_vm8, %v560_v25  ;;  %v812_v30 = vmul.f32 %v804_v20, %v783_v26  ;;  %v852_v32 = vmul.f32 %v844_v23, %v822_v27  ;;  %v912_v26 = vrot.slane %v4963_v2, %v4874_v33 }
 0x1bd   :  { %v784_v52 = vsel %vm782_vm6, %v4368_v12, %v4372_v41  ;;  %v785_v0 = vsel %vm782_vm6, %v4367_v38, %v4368_v12  ;;  %4128 = vmatpush1.msk.msra.mxu1 %vm565_vm8, %v558_v13  ;;  %v4940_v12 = vpop.permute.xlu1 %4385  ;;  %v4942_v38 = vpop.permute.xlu0 %4390  ;;  %v4977_v13 = vld [vmem:[%s6750_s0 + $0x14] sm:$0xf]  ;;  %v920_v27 = vrot.slane %v4963_v2, %v4879_v35 }
 0x1be   :  { %v4901_v56 = vmul.f32 %v800_v46, %v784_v52  ;;  %v810_v21 = vmul.f32 %v796_v10, %v785_v0  ;;  %v1096_v36 = vpack.c.bf16 %v852_v32, %v812_v30  ;;  %v4387_v7 = vunpack.i.l.bf16 %v4940_v12 }
 0x1bf   :  { %v4393_v59 = vunpack.i.h.bf16 %v4942_v38  ;;  %v4388_v60 = vunpack.i.h.bf16 %v4940_v12  ;;  %v4392_v61 = vunpack.i.l.bf16 %v4942_v38  ;;  %v880_v10 = vrot.slane %v4954_v58, %v4879_v35 }
 0x1c0   :  { %v1095_v28 = vpack.c.bf16 %v4921_v9, %v4901_v56  ;;  %v1094_v29 = vpack.c.bf16 %v850_v22, %v810_v21  ;;  %1176 = vmatprep.subr.bf16.mxu1 %v1096_v36  ;;  %v952_v12 = vrot.slane %v4977_v13, %v4874_v33 }
 0x1c1   :  { %v4396_v47 = vpop.permute.xlu1 %4395  ;;  %v4944_v48 = vpop.permute.xlu0 %4400  ;;  %v865_v11 = vsel %vm861_vm9, %v4393_v59, %v4387_v7  ;;  %v863_v25 = vsel %vm861_vm9, %v4388_v60, %v4392_v61 }
 0x1c2   :  { %1135 = vmatprep.subr.bf16.mxu0 %v1094_v29  ;;  %v4398_v0 = vunpack.i.h.bf16 %v4396_v47  ;;  %v4397_v1 = vunpack.i.l.bf16 %v4396_v47  ;;  %v4403_v3 = vunpack.i.h.bf16 %v4944_v48  ;;  %v4402_v4 = vunpack.i.l.bf16 %v4944_v48 }
 0x1c3   :  { %v5006_v38 = vmul.f32 %v872_v5, %v865_v11  ;;  %v992_v48 = vrot.slane %v5001_v37, %v4874_v33 }
 0x1c4   :  { %v905_v29 = vsel %vm901_vm10, %v4403_v3, %v4397_v1  ;;  %v903_v30 = vsel %vm901_vm10, %v4398_v0, %v4402_v4 }
 0x1c5   :  { %v4946_v54 = vpop.permute.xlu1 %4405  ;;  %v4948_v57 = vpop.permute.xlu0 %4410 }
 0x1c6   :  { %v4408_v20 = vunpack.i.h.bf16 %v4946_v54  ;;  %v4407_v21 = vunpack.i.l.bf16 %v4946_v54  ;;  %v4413_v32 = vunpack.i.h.bf16 %v4948_v57  ;;  %v4412_v36 = vunpack.i.l.bf16 %v4948_v57 }
 0x1c7   :  { %v916_v57 = vrot.slane %v4963_v2, %v4906_v62 }
 0x1c9   :  { %v4981_v22 = vpop.permute.xlu1 %4415  ;;  %v4983_v23 = vpop.permute.xlu0 %4420 }
 0x1ca   :  { %v4418_v47 = vunpack.i.h.bf16 %v4981_v22 }
 0x1cd   :  { %v5031_v5 = vpop.permute.xlu1 %4425 }
 0x28d   :  { %v4239_v39 = vpop.f32.mrb[6].mxu0  ;;  %v4274_v40 = vpop.f32.mrb[6].mxu1 }
 0x28e   :  { %v4240_v41 = vpop.f32.mrb[7].mxu0  ;;  %v4275_v42 = vpop.f32.mrb[7].mxu1 }
 0x28f   :  { %v4241_v43 = vadd.f32 %v4240_v41, %v4239_v39  ;;  %v4276_v46 = vadd.f32 %v4275_v42, %v4274_v40  ;;  %v5008_v39 = vmul.f32 %v880_v10, %v863_v25  ;;  %v944_v40 = vsel %vm941_vm11, %v4407_v21, %v4408_v20  ;;  %v5033_v10 = vpop.permute.xlu0 %4430 }
 0x290   :  { %v960_v41 = vrot.slane %v4977_v13, %v4879_v35  ;;  %v5035_v11 = vmul.f32 %v952_v12, %v944_v40  ;;  %v864_v25 = vsel %vm861_vm9, %v4387_v7, %v4388_v60  ;;  %v1000_v7 = vrot.slane %v5001_v37, %v4879_v35  ;;  %v4436_v40 = vpop.permute.xlu1 %4435 }
 0x291   :  { %v533_v51 = vadd.f32 %v4276_v46, %v4241_v43  ;;  %v5017_v43 = vmul.f32 %v912_v26, %v905_v29  ;;  %v5019_v46 = vmul.f32 %v920_v27, %v903_v30  ;;  %v904_v26 = vsel %vm901_vm10, %v4397_v1, %v4398_v0 }
 0x292   :  { %v884_v27 = vrot.slane %v4954_v58, %v4909_v63  ;;  %v4417_v29 = vunpack.i.l.bf16 %v4981_v22  ;;  %v862_v30 = vsel %vm861_vm9, %v4392_v61, %v4393_v59  ;;  %v4423_v60 = vunpack.i.h.bf16 %v4983_v23 }
 0x293   :  { %v536_v52 = vsub.f32 0.0, %v533_v51  ;;  %v902_v0 = vsel %vm901_vm10, %v4402_v4, %v4403_v3  ;;  %v930_v22 = vmul.f32 %v916_v57, %v904_v26  ;;  %v4441_v59 = vpop.permute.xlu0 %4440  ;;  %v956_v3 = vrot.slane %v4977_v13, %v4906_v62 }
 0x294   :  { %v892_v61 = vmul.f32 %v884_v27, %v862_v30  ;;  %v4438_v57 = vunpack.i.h.bf16 %v4436_v40  ;;  %v4443_v26 = vunpack.i.h.bf16 %v4441_v59  ;;  %v4442_v27 = vunpack.i.l.bf16 %v4441_v59 }
 0x295   :  { %v537_v53 = vmul.f32 1.442695, %v536_v52  ;;  %v942_v52 = vsel %vm941_vm11, %v4412_v36, %v4413_v32  ;;  %v984_v30 = vsel %vm981_vm12, %v4417_v29, %v4418_v47  ;;  %v1097_v16 = vpack.c.bf16 %v5017_v43, %v5006_v38 }
 0x296   :  { %v5048_v12 = vmul.f32 %v960_v41, %v942_v52  ;;  %v4428_v41 = vunpack.i.h.bf16 %v5031_v5  ;;  %v4432_v52 = vunpack.i.l.bf16 %v5033_v10  ;;  %v1063_v54 = vsel %vm1061_vm14, %v4438_v57, %v4442_v27 }
 0x297   :  { %4464 = vpow2.f32 %v537_v53  ;;  %v876_v53 = vrot.slane %v4954_v58, %v4906_v62  ;;  %v4422_v58 = vunpack.i.l.bf16 %v4983_v23  ;;  %v4433_v23 = vunpack.i.h.bf16 %v5033_v10 }
 0x298   :  { %v1062_v9 = vsel %vm1061_vm14, %v4442_v27, %v4443_v26 }
 0x299   :  { %v890_v1 = vmul.f32 %v876_v53, %v864_v25  ;;  %v943_v53 = vsel %vm941_vm11, %v4408_v20, %v4412_v36  ;;  %v4437_v25 = vunpack.i.l.bf16 %v4436_v40  ;;  %v945_v40 = vsel %vm941_vm11, %v4413_v32, %v4407_v21  ;;  %v4136_v32 = vld [vmem:[%s6750_s0 + $0x20] sm:$0xf] }
 0x29a   :  { %v970_v36 = vmul.f32 %v956_v3, %v943_v53  ;;  %v983_v21 = vsel %vm981_vm12, %v4418_v47, %v4422_v58  ;;  %v1080_v55 = vrot.slane %v4136_v32, %v4879_v35 }
 0x29b   :  { %v1098_v10 = vpack.c.bf16 %v930_v22, %v890_v1  ;;  %v1022_v1 = vsel %vm1021_vm13, %v4432_v52, %v4433_v23  ;;  %v1065_v22 = vsel %vm1061_vm14, %v4443_v26, %v4437_v25  ;;  %v1064_v8 = vsel %vm1061_vm14, %v4437_v25, %v4438_v57 }
 0x29c   :  { %v1102_v47 = vpack.c.bf16 %v970_v36, %v769_v17  ;;  %v1091_v25 = vmul.f32 %v1080_v55, %v1062_v9 }
 0x2a1   :  { %v4465_v42 = vpop.eup %4464 }
 0x2a2   :  { %v539_v51 = vadd.f32 1.0, %v4465_v42  ;;  %v924_v42 = vrot.slane %v4963_v2, %v4909_v63  ;;  %v5059_v2 = vld [vmem:[%s6750_s0 + $0x1c] sm:$0xf] }
 0x2a3   :  { %v1040_v20 = vrot.slane %v5059_v2, %v4879_v35  ;;  %v1044_v3 = vrot.slane %v5059_v2, %v4909_v63 }
 0x2a4   :  { %4466 = vrcp.f32 %v539_v51  ;;  %v4427_v51 = vunpack.i.l.bf16 %v5031_v5  ;;  %v932_v4 = vmul.f32 %v924_v42, %v902_v0  ;;  %v982_v5 = vsel %vm981_vm12, %v4422_v58, %v4423_v60 }
 0x2a5   :  { %v1032_v42 = vrot.slane %v5059_v2, %v4874_v33  ;;  %v964_v0 = vrot.slane %v4977_v13, %v4909_v63  ;;  %v1099_v13 = vpack.c.bf16 %v5019_v46, %v5008_v39  ;;  %v996_v39 = vrot.slane %v5001_v37, %v4906_v62 }
 0x2a6   :  { %v1100_v59 = vpack.c.bf16 %v932_v4, %v892_v61  ;;  %v1024_v18 = vsel %vm1021_vm13, %v4427_v51, %v4428_v41  ;;  %v1023_v46 = vsel %vm1021_vm13, %v4428_v41, %v4432_v52  ;;  %v1036_v61 = vrot.slane %v5059_v2, %v4906_v62 }
 0x2a7   :  { %v972_v43 = vmul.f32 %v964_v0, %v945_v40  ;;  %v1004_v58 = vrot.slane %v5001_v37, %v4909_v63  ;;  %v985_v41 = vsel %vm981_vm12, %v4423_v60, %v4417_v29  ;;  %v1025_v17 = vsel %vm1021_vm13, %v4433_v23, %v4427_v51 }
 0x2a8   :  { %v1076_v4 = vrot.slane %v4136_v32, %v4906_v62  ;;  %v1084_v2 = vrot.slane %v4136_v32, %v4909_v63  ;;  %v1072_v52 = vrot.slane %v4136_v32, %v4874_v33  ;;  %v1052_v60 = vmul.f32 %v1044_v3, %v1025_v17 }
 0x2a9   :  { %v1104_v56 = vpack.c.bf16 %v972_v43, %v771_v19  ;;  %v1012_v29 = vmul.f32 %v1004_v58, %v985_v41  ;;  %v1009_v51 = vmul.f32 %v992_v48, %v984_v30  ;;  %v1011_v19 = vmul.f32 %v1000_v7, %v982_v5 }
 0x2aa   :  { %v1090_v23 = vmul.f32 %v1076_v4, %v1063_v54  ;;  %v1092_v53 = vmul.f32 %v1084_v2, %v1065_v22  ;;  %v1089_v57 = vmul.f32 %v1072_v52, %v1064_v8  ;;  %v1049_v26 = vmul.f32 %v1032_v42, %v1024_v18 }
 0x2ab   :  { %v1051_v27 = vmul.f32 %v1040_v20, %v1022_v1  ;;  %v6778_v0 = vunpack.c.l.bf16 %v4834_v14  ;;  %v6779_v48 = vunpack.c.l.bf16 %v4839_v15  ;;  %v1108_v7 = vpack.c.bf16 %v1052_v60, %v1012_v29 }
 0x2ac   :  { %v1112_v5 = vpack.c.bf16 %v1092_v53, %v1092_v53  ;;  %v1109_v36 = vpack.c.bf16 %v1089_v57, %v1089_v57  ;;  %v1111_v40 = vpack.c.bf16 %v1091_v25, %v1091_v25  ;;  %v1105_v18 = vpack.c.bf16 %v1049_v26, %v1009_v51  ;;  %v5335_v57 = vld [vmem:[%s6757_s7] sm:$0xff] }
 0x2ad   :  { %v1103_v30 = vpack.c.bf16 %v5048_v12, %v6779_v48  ;;  %v1107_v42 = vpack.c.bf16 %v1051_v27, %v1011_v19  ;;  %6780 = vst [vmem:[#allocation6_spill] sm:$0xff] %v5335_v57  ;;  %v4149_v26 = vcombine.high %v5335_v57, %v5335_v57  ;;  %v1702_v48 = vld [vmem:[%s6751_s1] sm:$0xff] }
 0x2ae   :  { %v4467_v38 = vpop.eup %4466  ;;  %v1124_v14 = vsel %vm75_vm0, %v1109_v36, 0  ;;  %v1130_v15 = vsel %vm75_vm0, %v1111_v40, 0 }
 0x2af   :  { %4126 = vmatmul.mubr.msk.f32.vlgmr.msra.gmra.mrb[8].mxu0 %vm561_vm15, %v4467_v38  ;;  %4129 = vmatmul.mubr.msk.f32.vlgmr.msra.gmra.mrb[8].mxu1 %vm561_vm15, %v4467_v38 }
 0x2b0   :  { %1136 = vmatpush1.bf16.msra.mxu0 %v1093_v24  ;;  %1177 = vmatpush1.bf16.msra.mxu1 %v1095_v28  ;;  %v1010_v24 = vmul.f32 %v996_v39, %v983_v21  ;;  %v1050_v28 = vmul.f32 %v1036_v61, %v1023_v46 }
 0x2b1   :  { %1137 = vmatprep.subr.bf16.mxu0 %v1098_v10  ;;  %1178 = vmatprep.subr.bf16.mxu1 %v1100_v59  ;;  %v1101_v10 = vpack.c.bf16 %v5035_v11, %v6778_v0  ;;  %v765_v11 = vld [vmem:[%s6756_s6] sm:$0xf] }
 0x2b2   :  { %1167 = vmatprep.mubr.bf16.mxu0 %v6768_v6  ;;  %1208 = vmatprep.mubr.bf16.mxu1 %v6768_v6  ;;  %v1106_v37 = vpack.c.bf16 %v1050_v28, %v1010_v24 }
 0x2b4   :  { %1138 = vmatpush1.bf16.msra.mxu0 %v1097_v16  ;;  %1179 = vmatpush1.bf16.msra.mxu1 %v1099_v13  ;;  %v1110_v16 = vpack.c.bf16 %v1090_v23, %v1090_v23 }
 0x2b5   :  { %1139 = vmatprep.subr.bf16.mxu0 %v1102_v47  ;;  %1180 = vmatprep.subr.bf16.mxu1 %v1104_v56 }
 0x2b8   :  { %1140 = vmatpush1.bf16.msra.mxu0 %v1101_v10  ;;  %1181 = vmatpush1.bf16.msra.mxu1 %v1103_v30 }
 0x2b9   :  { %1141 = vmatprep.subr.bf16.mxu0 %v1106_v37  ;;  %1182 = vmatprep.subr.bf16.mxu1 %v1108_v7  ;;  %v4505_v37 = vmov 3   ;;  %v4506_v7 = vmov 4  }
 0x2ba   :  { %4445 = vset.pattern.permute.xlu0 %v4505_v37  ;;  %4446 = vset.pattern.permute.xlu1 %v4506_v7  ;;  %v4141_v37 = vld [vmem:[%s6750_s0 + $0x4] sm:$0xf] }
 0x2bc   :  { %1142 = vmatpush1.bf16.msra.mxu0 %v1105_v18  ;;  %1183 = vmatpush1.bf16.msra.mxu1 %v1107_v42 }
 0x2bd   :  { %4137 = vmatprep.subr.msk.bf16.mxu0 %vm75_vm0, %v1110_v16  ;;  %4139 = vmatprep.subr.msk.bf16.mxu1 %vm75_vm0, %v1112_v5 }
 0x2c0   :  { %1144 = vmatpush1.bf16.msra.mxu0 %v1124_v14  ;;  %1185 = vmatpush1.bf16.msra.mxu1 %v1130_v15 }
 0x2c3   :  { %4138 = vmatmul.mubr.msk.bf16.vlgmr.msra.gmra.mrb[12].mxu0 %vm1119_vm1, %v765_v11  ;;  %4140 = vmatmul.mubr.msk.bf16.vlgmr.msra.gmra.mrb[12].mxu1 %vm1119_vm1, %v765_v11 }
 0x2c4   :  { %4150 = vmatprep.mubr.msk.bf16.mxu0 %vm1714_vm3, %v4149_v26  ;;  %4151 = vmatprep.mubr.msk.bf16.mxu1 %vm1714_vm3, %v4149_v26 }
 0x382   :  { %v640_v12 = vpop.f32.mrb[8].mxu0  ;;  %v711_v20 = vpop.f32.mrb[8].mxu1 }
 0x383   :  { %v724_v59 = vrot.slane %v640_v12, %v4874_v33  ;;  %v740_v13 = vrot.slane %v640_v12, %v4906_v62  ;;  %v732_v1 = vrot.slane %v711_v20, %v4874_v33  ;;  %v748_v22 = vrot.slane %v711_v20, %v4906_v62  ;;  %v642_v54 = vpop.f32.mrb[9].mxu0  ;;  %v713_v21 = vpop.f32.mrb[9].mxu1 }
 0x384   :  { %v728_v32 = vrot.slane %v642_v54, %v4874_v33  ;;  %v744_v38 = vrot.slane %v642_v54, %v4906_v62  ;;  %v736_v43 = vrot.slane %v713_v21, %v4874_v33  ;;  %v752_v39 = vrot.slane %v713_v21, %v4906_v62 }
 0x385   :  { %v753_v46 = vsel %vm718_vm2, %v724_v59, %v740_v13  ;;  %v755_v3 = vsel %vm718_vm2, %v732_v1, %v748_v22 }
 0x386   :  { %v5169_v61 = vmul.f32 %v753_v46, %v4666_v49  ;;  %v754_v47 = vsel %vm718_vm2, %v728_v32, %v744_v38  ;;  %v756_v58 = vsel %vm718_vm2, %v736_v43, %v752_v39  ;;  %v5180_v41 = vmul.f32 %v755_v3, %v4669_v50  ;;  %v1117_v49 = vpop.permute.xlu1 %1116 }
 0x387   :  { %v5253_v51 = vmul.f32 %v754_v47, %v4656_v44  ;;  %v5260_v19 = vmul.f32 %v756_v58, %v4658_v45 }
 0x388   :  { %1234 = vrot.lane.b32.xlu0 %v5169_v61, %s4495_s4 }
 0x38c   :  { %1242 = vrot.lane.b32.xlu0 %v5180_v41, %s4495_s4 }
 0x390   :  { %1288 = vrot.lane.b32.xlu0 %v5169_v61, %s4496_s14 }
 0x394   :  { %1296 = vrot.lane.b32.xlu0 %v5180_v41, %s4496_s14 }
 0x396   :  { %v1169_v17 = vpop.f32.mrb[12].mxu0  ;;  %v1210_v4 = vpop.f32.mrb[12].mxu1 }
 0x397   :  { %v5188_v31 = vadd.f32 %v1169_v17, %v1117_v49  ;;  %v5190_v2 = vadd.f32 %v1210_v4, %v1117_v49  ;;  %v1171_v52 = vpop.f32.mrb[13].mxu0  ;;  %v1212_v55 = vpop.f32.mrb[13].mxu1 }
 0x398   :  { %v5192_v50 = vadd.f32 %v1171_v52, %v1117_v49  ;;  %v5194_v56 = vadd.f32 %v1212_v55, %v1117_v49  ;;  %v1173_v8 = vpop.f32.mrb[14].mxu0  ;;  %v1214_v9 = vpop.f32.mrb[14].mxu1  ;;  %1342 = vrot.lane.b32.xlu0 %v5169_v61, %s4497_s18  ;;  %v1258_v49 = vld [vmem:[%s6750_s0] sm:$0xf] }
 0x399   :  { %1217 = vst [vmem:[#allocation3] sm:$0xff] %v5188_v31  ;;  %1219 = vst [vmem:[#allocation3 + $0x10] sm:$0xff] %v5190_v2  ;;  %v1174_v24 = vpop.f32.mrb[15].mxu0  ;;  %v1215_v28 = vpop.f32.mrb[15].mxu1  ;;  %1236 = vrot.lane.b32.xlu1 %v5188_v31, %s4495_s4  ;;  %v1267_v52 = vrot.slane %v1258_v49, %v4906_v62  ;;  %v1271_v60 = vrot.slane %v1258_v49, %v4879_v35 }
 0x39a   :  { %1218 = vst [vmem:[#allocation3 + $0x8] sm:$0xff] %v5192_v50  ;;  %1220 = vst [vmem:[#allocation3 + $0x18] sm:$0xff] %v5194_v56  ;;  %v1263_v24 = vrot.slane %v1258_v49, %v4874_v33 }
 0x39c   :  { %1350 = vrot.lane.b32.xlu0 %v5180_v41, %s4497_s18 }
 0x39d   :  { %1244 = vrot.lane.b32.xlu1 %v5190_v2, %s4495_s4 }
 0x3a0   :  { %1396 = vrot.lane.b32.xlu0 %v5169_v61, %s4498_s19 }
 0x3a1   :  { %1290 = vrot.lane.b32.xlu1 %v5188_v31, %s4496_s14 }
 0x3a4   :  { %1404 = vrot.lane.b32.xlu0 %v5180_v41, %s4498_s19 }
 0x3a5   :  { %1298 = vrot.lane.b32.xlu1 %v5190_v2, %s4496_s14 }
 0x3a8   :  { %1450 = vrot.lane.b32.xlu0 %v5169_v61, %s4499_s20 }
 0x3a9   :  { %1344 = vrot.lane.b32.xlu1 %v5188_v31, %s4497_s18 }
 0x3ac   :  { %1458 = vrot.lane.b32.xlu0 %v5180_v41, %s4499_s20 }
 0x3ad   :  { %1352 = vrot.lane.b32.xlu1 %v5190_v2, %s4497_s18 }
 0x3b0   :  { %1504 = vrot.lane.b32.xlu0 %v5169_v61, %s4500_s21 }
 0x3b1   :  { %1398 = vrot.lane.b32.xlu1 %v5188_v31, %s4498_s19 }
 0x3b4   :  { %1512 = vrot.lane.b32.xlu0 %v5180_v41, %s4500_s21 }
 0x3b5   :  { %1406 = vrot.lane.b32.xlu1 %v5190_v2, %s4498_s19 }
 0x3b8   :  { %1558 = vrot.lane.b32.xlu0 %v5169_v61, %s4501_s2 }
 0x3b9   :  { %1452 = vrot.lane.b32.xlu1 %v5188_v31, %s4499_s20 }
 0x3bc   :  { %1566 = vrot.lane.b32.xlu0 %v5180_v41, %s4501_s2 }
 0x3bd   :  { %1460 = vrot.lane.b32.xlu1 %v5190_v2, %s4499_s20 }
 0x3c0   :  { %1612 = vrot.lane.b32.xlu0 %v5169_v61, %s4502_s22 }
 0x3c1   :  { %1506 = vrot.lane.b32.xlu1 %v5188_v31, %s4500_s21 }
 0x3c4   :  { %1620 = vrot.lane.b32.xlu0 %v5180_v41, %s4502_s22 }
 0x3c5   :  { %1514 = vrot.lane.b32.xlu1 %v5190_v2, %s4500_s21 }
 0x3c8   :  { %1238 = vrot.lane.b32.xlu0 %v5253_v51, %s4495_s4 }
 0x3c9   :  { %1560 = vrot.lane.b32.xlu1 %v5188_v31, %s4501_s2 }
 0x3cc   :  { %1246 = vrot.lane.b32.xlu0 %v5260_v19, %s4495_s4 }
 0x3cd   :  { %1568 = vrot.lane.b32.xlu1 %v5190_v2, %s4501_s2 }
 0x3d0   :  { %1292 = vrot.lane.b32.xlu0 %v5253_v51, %s4496_s14 }
 0x3d1   :  { %1614 = vrot.lane.b32.xlu1 %v5188_v31, %s4502_s22 }
 0x3d4   :  { %1300 = vrot.lane.b32.xlu0 %v5260_v19, %s4496_s14 }
 0x3d5   :  { %1622 = vrot.lane.b32.xlu1 %v5190_v2, %s4502_s22 }
 0x3d8   :  { %1346 = vrot.lane.b32.xlu0 %v5253_v51, %s4497_s18 }
 0x3d9   :  { %1240 = vrot.lane.b32.xlu1 %v5192_v50, %s4495_s4 }
 0x3dc   :  { %1354 = vrot.lane.b32.xlu0 %v5260_v19, %s4497_s18 }
 0x3dd   :  { %1248 = vrot.lane.b32.xlu1 %v5194_v56, %s4495_s4 }
 0x3e0   :  { %1400 = vrot.lane.b32.xlu0 %v5253_v51, %s4498_s19 }
 0x3e1   :  { %1294 = vrot.lane.b32.xlu1 %v5192_v50, %s4496_s14 }
 0x3e4   :  { %1408 = vrot.lane.b32.xlu0 %v5260_v19, %s4498_s19 }
 0x3e5   :  { %1302 = vrot.lane.b32.xlu1 %v5194_v56, %s4496_s14 }
 0x3e8   :  { %1454 = vrot.lane.b32.xlu0 %v5253_v51, %s4499_s20 }
 0x3e9   :  { %1348 = vrot.lane.b32.xlu1 %v5192_v50, %s4497_s18 }
 0x3ec   :  { %1462 = vrot.lane.b32.xlu0 %v5260_v19, %s4499_s20 }
 0x3ed   :  { %1356 = vrot.lane.b32.xlu1 %v5194_v56, %s4497_s18 }
 0x3f0   :  { %1508 = vrot.lane.b32.xlu0 %v5253_v51, %s4500_s21 }
 0x3f1   :  { %1402 = vrot.lane.b32.xlu1 %v5192_v50, %s4498_s19 }
 0x3f4   :  { %1516 = vrot.lane.b32.xlu0 %v5260_v19, %s4500_s21 }
 0x3f5   :  { %1410 = vrot.lane.b32.xlu1 %v5194_v56, %s4498_s19 }
 0x3f8   :  { %1562 = vrot.lane.b32.xlu0 %v5253_v51, %s4501_s2 }
 0x3f9   :  { %1456 = vrot.lane.b32.xlu1 %v5192_v50, %s4499_s20 }
 0x3fa   :  { %v5310_v44 = vpop.permute.xlu0 %1234 }
 0x3fc   :  { %1570 = vrot.lane.b32.xlu0 %v5260_v19, %s4501_s2 }
 0x3fd   :  { %1464 = vrot.lane.b32.xlu1 %v5194_v56, %s4499_s20 }
 0x3fe   :  { %v5316_v45 = vpop.permute.xlu0 %1242 }
 0x400   :  { %1616 = vrot.lane.b32.xlu0 %v5253_v51, %s4502_s22 }
 0x401   :  { %1510 = vrot.lane.b32.xlu1 %v5192_v50, %s4500_s21 }
 0x402   :  { %v5322_v23 = vpop.permute.xlu0 %1288 }
 0x404   :  { %1624 = vrot.lane.b32.xlu0 %v5260_v19, %s4502_s22 }
 0x405   :  { %1518 = vrot.lane.b32.xlu1 %v5194_v56, %s4500_s21 }
 0x406   :  { %v5328_v53 = vpop.permute.xlu0 %1296 }
 0x408   :  { %1705 = vperm.xlu0 %4445, %v1702_v48  }
 0x409   :  { %1564 = vrot.lane.b32.xlu1 %v5192_v50, %s4501_s2 }
 0x40a   :  { %v5337_v25 = vpop.permute.xlu0 %1342 }
 0x40b   :  { %v5341_v27 = vpop.permute.xlu1 %1236 }
 0x40d   :  { %1572 = vrot.lane.b32.xlu1 %v5194_v56, %s4501_s2 }
 0x40e   :  { %v5345_v0 = vpop.permute.xlu0 %1350 }
 0x40f   :  { %v1245_v10 = vpop.permute.xlu1 %1244 }
 0x411   :  { %1618 = vrot.lane.b32.xlu1 %v5192_v50, %s4502_s22 }
 0x412   :  { %v5352_v30 = vpop.permute.xlu0 %1396 }
 0x413   :  { %v5354_v16 = vpop.permute.xlu1 %1290 }
 0x415   :  { %1626 = vrot.lane.b32.xlu1 %v5194_v56, %s4502_s22 }
 0x416   :  { %v5358_v5 = vpop.permute.xlu0 %1404 }
 0x417   :  { %v5360_v36 = vpop.permute.xlu1 %1298 }
 0x419   :  { %1805 = vperm.xlu1 %4446, %v1702_v48   ;;  %v1275_v48 = vrot.slane %v1258_v49, %v4909_v63 }
 0x41a   :  { %v5362_v40 = vpop.permute.xlu0 %1450 }
 0x41b   :  { %v5364_v18 = vpop.permute.xlu1 %1344 }
 0x41e   :  { %v5366_v42 = vpop.permute.xlu0 %1458 }
 0x41f   :  { %v5368_v14 = vpop.permute.xlu1 %1352 }
 0x422   :  { %v5370_v15 = vpop.permute.xlu0 %1504 }
 0x423   :  { %v5372_v11 = vpop.permute.xlu1 %1398 }
 0x426   :  { %v5374_v12 = vpop.permute.xlu0 %1512 }
 0x427   :  { %v5376_v20 = vpop.permute.xlu1 %1406 }
 0x42a   :  { %v5378_v59 = vpop.permute.xlu0 %1558 }
 0x42b   :  { %6781 = vst [vmem:[#allocation7_spill] sm:$0xff] %v5378_v59  ;;  %v5380_v13 = vpop.permute.xlu1 %1452  ;;  %v1329_v59 = vrot.slane %v4141_v37, %v4909_v63 }
 0x42e   :  { %v5382_v1 = vpop.permute.xlu0 %1566 }
 0x42f   :  { %v5384_v22 = vpop.permute.xlu1 %1460 }
 0x432   :  { %v5386_v54 = vpop.permute.xlu0 %1612 }
 0x433   :  { %6782 = vst [vmem:[#allocation8_spill] sm:$0xff] %v5386_v54  ;;  %v5388_v21 = vpop.permute.xlu1 %1506 }
 0x436   :  { %v5390_v32 = vpop.permute.xlu0 %1620 }
 0x437   :  { %6783 = vst [vmem:[#allocation9_spill] sm:$0xff] %v5390_v32  ;;  %v5392_v38 = vpop.permute.xlu1 %1514 }
 0x43a   :  { %v1239_v43 = vpop.permute.xlu0 %1238 }
 0x43b   :  { %v5394_v39 = vpop.permute.xlu1 %1560  ;;  %v1254_v55 = vsel %vm782_vm6, %v5310_v44, %v1239_v43 }
 0x43c   :  { %6784 = vst [vmem:[#allocation10_spill] sm:$0xff] %v5394_v39  ;;  %v1281_v26 = vmul.f32 %v1267_v52, %v1254_v55 }
 0x43e   :  { %v1247_v46 = vpop.permute.xlu0 %1246 }
 0x43f   :  { %v5396_v47 = vpop.permute.xlu1 %1568  ;;  %v1250_v29 = vsel %vm782_vm6, %v5316_v45, %v1247_v46  ;;  %v1256_v55 = vsel %vm782_vm6, %v1247_v46, %v5310_v44 }
 0x440   :  { %6785 = vst [vmem:[#allocation11_spill] sm:$0xff] %v5396_v47  ;;  %v1280_v32 = vmul.f32 %v1263_v24, %v1256_v55  ;;  %v1283_v44 = vmul.f32 %v1275_v48, %v1250_v29 }
 0x442   :  { %v1293_v58 = vpop.permute.xlu0 %1292 }
 0x443   :  { %v5398_v3 = vpop.permute.xlu1 %1614 }
 0x444   :  { %6786 = vst [vmem:[#allocation12_spill] sm:$0xff] %v5398_v3  ;;  %v1252_v3 = vsel %vm782_vm6, %v1239_v43, %v5316_v45 }
 0x445   :  { %v1282_v47 = vmul.f32 %v1271_v60, %v1252_v3 }
 0x446   :  { %v1301_v17 = vpop.permute.xlu0 %1300 }
 0x447   :  { %v5403_v4 = vpop.permute.xlu1 %1622 }
 0x448   :  { %6787 = vst [vmem:[#allocation13_spill] sm:$0xff] %v5403_v4 }
 0x44a   :  { %v5409_v8 = vpop.permute.xlu0 %1346 }
 0x44b   :  { %v1241_v9 = vpop.permute.xlu1 %1240 }
 0x44c   :  { %v1255_v28 = vsel %vm782_vm6, %v5341_v27, %v1241_v9  ;;  %v1253_v7 = vsel %vm782_vm6, %v1241_v9, %v1245_v10 }
 0x44d   :  { %v1285_v6 = vmul.f32 %v1267_v52, %v1255_v28  ;;  %v1321_v52 = vrot.slane %v4141_v37, %v4906_v62  ;;  %v1286_v9 = vmul.f32 %v1271_v60, %v1253_v7  ;;  %v4142_v60 = vld [vmem:[%s6750_s0 + $0x8] sm:$0xf] }
 0x44e   :  { %v5428_v57 = vpop.permute.xlu0 %1354 }
 0x44f   :  { %v1249_v4 = vpop.permute.xlu1 %1248  ;;  %v1667_v54 = vpack.c.bf16 %v1285_v6, %v1281_v26  ;;  %v1308_v6 = vsel %vm821_vm7, %v5322_v23, %v1293_v58 }
 0x450   :  { %v1251_v49 = vsel %vm782_vm6, %v1245_v10, %v1249_v4  ;;  %v1257_v28 = vsel %vm782_vm6, %v1249_v4, %v5341_v27  ;;  %v1317_v10 = vrot.slane %v4141_v37, %v4874_v33  ;;  %v1668_v27 = vpack.c.bf16 %v1286_v9, %v1282_v47 }
 0x451   :  { %v1284_v46 = vmul.f32 %v1263_v24, %v1257_v28  ;;  %v1287_v39 = vmul.f32 %v1275_v48, %v1251_v49  ;;  %1718 = vmatprep.subr.bf16.mxu0 %v1667_v54  ;;  %v1335_v54 = vmul.f32 %v1321_v52, %v1308_v6  ;;  %v1304_v47 = vsel %vm821_vm7, %v5328_v53, %v1301_v17 }
 0x452   :  { %v5442_v45 = vpop.permute.xlu0 %1400  ;;  %v1310_v4 = vsel %vm821_vm7, %v1301_v17, %v5322_v23  ;;  %v1306_v48 = vsel %vm821_vm7, %v1293_v58, %v5328_v53  ;;  %v1375_v9 = vrot.slane %v4142_v60, %v4906_v62  ;;  %v1337_v28 = vmul.f32 %v1329_v59, %v1304_v47 }
 0x453   :  { %v1666_v43 = vpack.c.bf16 %v1284_v46, %v1280_v32  ;;  %v1295_v26 = vpop.permute.xlu1 %1294  ;;  %v1669_v7 = vpack.c.bf16 %v1287_v39, %v1283_v44  ;;  %v1325_v39 = vrot.slane %v4141_v37, %v4879_v35  ;;  %v1334_v17 = vmul.f32 %v1317_v10, %v1310_v4 }
 0x454   :  { %v1309_v29 = vsel %vm821_vm7, %v5354_v16, %v1295_v26  ;;  %v1307_v32 = vsel %vm821_vm7, %v1295_v26, %v5360_v36  ;;  %v1362_v53 = vsel %vm861_vm9, %v5337_v25, %v5409_v8  ;;  %v1364_v47 = vsel %vm861_vm9, %v5428_v57, %v5337_v25 }
 0x455   :  { %v1339_v3 = vmul.f32 %v1321_v52, %v1309_v29  ;;  %1719 = vmatpush1.bf16.msra.mxu0 %v1666_v43  ;;  %1759 = vmatprep.subr.bf16.mxu1 %v1669_v7  ;;  %v1340_v37 = vmul.f32 %v1325_v39, %v1307_v32  ;;  %v1336_v6 = vmul.f32 %v1325_v39, %v1306_v48  ;;  %v4143_v29 = vld [vmem:[%s6750_s0 + $0xc] sm:$0xf] }
 0x456   :  { %1760 = vmatpush1.bf16.msra.mxu1 %v1668_v27  ;;  %v5462_v24 = vpop.permute.xlu0 %1408  ;;  %v1371_v7 = vrot.slane %v4142_v60, %v4874_v33  ;;  %v1358_v39 = vsel %vm861_vm9, %v5345_v0, %v5428_v57  ;;  %v1360_v4 = vsel %vm861_vm9, %v5409_v8, %v5345_v0  ;;  %v1416_v8 = vsel %vm901_vm10, %v5352_v30, %v5442_v45 }
 0x457   :  { %v1303_v55 = vpop.permute.xlu1 %1302  ;;  %v1671_v52 = vpack.c.bf16 %v1339_v3, %v1335_v54  ;;  %v1672_v27 = vpack.c.bf16 %v1340_v37, %v1336_v6  ;;  %v1379_v3 = vrot.slane %v4142_v60, %v4879_v35  ;;  %v1437_v6 = vrot.slane %v4143_v29, %v4909_v63 }
 0x458   :  { %v1305_v49 = vsel %vm821_vm7, %v5360_v36, %v1303_v55  ;;  %v1311_v23 = vsel %vm821_vm7, %v1303_v55, %v5354_v16  ;;  %v1383_v16 = vrot.slane %v4142_v60, %v4909_v63  ;;  %v1388_v25 = vmul.f32 %v1371_v7, %v1364_v47 }
 0x459   :  { %v1338_v44 = vmul.f32 %v1317_v10, %v1311_v23  ;;  %v1341_v46 = vmul.f32 %v1329_v59, %v1305_v49  ;;  %1720 = vmatprep.subr.bf16.mxu0 %v1671_v52  ;;  %v1389_v10 = vmul.f32 %v1375_v9, %v1362_v53  ;;  %v1429_v52 = vrot.slane %v4143_v29, %v4906_v62 }
 0x45a   :  { %v5478_v58 = vpop.permute.xlu0 %1454  ;;  %v1391_v49 = vmul.f32 %v1383_v16, %v1358_v39  ;;  %v1390_v0 = vmul.f32 %v1379_v3, %v1360_v4 }
 0x45b   :  { %v1670_v43 = vpack.c.bf16 %v1338_v44, %v1334_v17  ;;  %v1349_v26 = vpop.permute.xlu1 %1348  ;;  %v1673_v36 = vpack.c.bf16 %v1341_v46, %v1337_v28 }
 0x45c   :  { %v1363_v59 = vsel %vm861_vm9, %v5364_v18, %v1349_v26  ;;  %v1361_v54 = vsel %vm861_vm9, %v1349_v26, %v5368_v14  ;;  %v4144_v26 = vld [vmem:[%s6750_s0 + $0x14] sm:$0xf] }
 0x45d   :  { %v1393_v32 = vmul.f32 %v1375_v9, %v1363_v59  ;;  %1721 = vmatpush1.bf16.msra.mxu0 %v1670_v43  ;;  %1761 = vmatprep.subr.bf16.mxu1 %v1673_v36  ;;  %v1394_v9 = vmul.f32 %v1379_v3, %v1361_v54  ;;  %v1443_v43 = vmul.f32 %v1429_v52, %v1416_v8 }
 0x45e   :  { %1762 = vmatpush1.bf16.msra.mxu1 %v1672_v27  ;;  %v5504_v55 = vpop.permute.xlu0 %1462  ;;  %v1433_v27 = vrot.slane %v4143_v29, %v4879_v35  ;;  %v1412_v59 = vsel %vm901_vm10, %v5358_v5, %v5462_v24  ;;  %v1414_v54 = vsel %vm901_vm10, %v5442_v45, %v5358_v5  ;;  %v1483_v39 = vrot.slane %v4144_v26, %v4906_v62 }
 0x45f   :  { %v1357_v48 = vpop.permute.xlu1 %1356  ;;  %v1675_v60 = vpack.c.bf16 %v1393_v32, %v1389_v10  ;;  %v1676_v53 = vpack.c.bf16 %v1394_v9, %v1390_v0  ;;  %v1418_v10 = vsel %vm901_vm10, %v5462_v24, %v5352_v30  ;;  %v1466_v8 = vsel %vm941_vm11, %v5366_v42, %v5504_v55 }
 0x460   :  { %v1359_v37 = vsel %vm861_vm9, %v5368_v14, %v1357_v48  ;;  %v1365_v57 = vsel %vm861_vm9, %v1357_v48, %v5364_v18  ;;  %v1425_v14 = vrot.slane %v4143_v29, %v4874_v33  ;;  %v1683_v29 = vpack.c.bf16 %v5192_v50, %v5253_v51 }
 0x461   :  { %v1392_v23 = vmul.f32 %v1371_v7, %v1365_v57  ;;  %v1395_v17 = vmul.f32 %v1383_v16, %v1359_v37  ;;  %1722 = vmatprep.subr.bf16.mxu0 %v1675_v60  ;;  %v1445_v48 = vmul.f32 %v1437_v6, %v1412_v59  ;;  %v1444_v45 = vmul.f32 %v1433_v27, %v1414_v54 }
 0x462   :  { %v1509_v16 = vpop.permute.xlu0 %1508  ;;  %v1442_v24 = vmul.f32 %v1425_v14, %v1418_v10  ;;  %v1468_v50 = vsel %vm941_vm11, %v5478_v58, %v5366_v42  ;;  %v1685_v51 = vpack.c.bf16 %v5194_v56, %v5260_v19  ;;  %v6788_v59 = vpack.c.bf16 %v5188_v31, %v5169_v61 }
 0x463   :  { %v1674_v28 = vpack.c.bf16 %v1392_v23, %v1388_v25  ;;  %v1403_v44 = vpop.permute.xlu1 %1402  ;;  %v1677_v46 = vpack.c.bf16 %v1395_v17, %v1391_v49  ;;  %v1470_v49 = vsel %vm941_vm11, %v5362_v40, %v5478_v58  ;;  %v4145_v17 = vld [vmem:[%s6750_s0 + $0x18] sm:$0xf]  ;;  %v1497_v0 = vmul.f32 %v1483_v39, %v1468_v50 }
 0x464   :  { %v1417_v18 = vsel %vm901_vm10, %v5372_v11, %v1403_v44  ;;  %v1415_v36 = vsel %vm901_vm10, %v1403_v44, %v5376_v20  ;;  %v1533_v44 = vrot.slane %v4145_v17, %v4874_v33  ;;  %v1541_v10 = vrot.slane %v4145_v17, %v4879_v35 }
 0x465   :  { %v1447_v7 = vmul.f32 %v1429_v52, %v1417_v18  ;;  %1723 = vmatpush1.bf16.msra.mxu0 %v1674_v28  ;;  %1763 = vmatprep.subr.bf16.mxu1 %v1677_v46  ;;  %v1448_v47 = vmul.f32 %v1433_v27, %v1415_v36  ;;  %v1479_v52 = vrot.slane %v4144_v26, %v4874_v33 }
 0x466   :  { %1764 = vmatpush1.bf16.msra.mxu1 %v1676_v53  ;;  %v1517_v37 = vpop.permute.xlu0 %1516  ;;  %v1472_v28 = vsel %vm941_vm11, %v5504_v55, %v5362_v40  ;;  %v1537_v46 = vrot.slane %v4145_v17, %v4906_v62 }
 0x467   :  { %v1411_v32 = vpop.permute.xlu1 %1410  ;;  %v1679_v3 = vpack.c.bf16 %v1447_v7, %v1443_v43  ;;  %v1680_v23 = vpack.c.bf16 %v1448_v47, %v1444_v45  ;;  %v1496_v18 = vmul.f32 %v1479_v52, %v1470_v49  ;;  %v1545_v47 = vrot.slane %v4145_v17, %v4909_v63 }
 0x468   :  { %v1413_v4 = vsel %vm901_vm10, %v5376_v20, %v1411_v32  ;;  %v1419_v30 = vsel %vm901_vm10, %v1411_v32, %v5372_v11  ;;  %v1487_v20 = vrot.slane %v4144_v26, %v4879_v35  ;;  %v1491_v11 = vrot.slane %v4144_v26, %v4909_v63 }
 0x469   :  { %v1446_v60 = vmul.f32 %v1425_v14, %v1419_v30  ;;  %v1449_v5 = vmul.f32 %v1437_v6, %v1413_v4  ;;  %1724 = vmatprep.subr.bf16.mxu0 %v1679_v3  ;;  %v1524_v26 = vsel %vm981_vm12, %v5370_v15, %v1509_v16  ;;  %v1520_v30 = vsel %vm981_vm12, %v5374_v12, %v1517_v37 }
 0x46a   :  { %v1498_v42 = vmul.f32 %v1487_v20, %v1466_v8  ;;  %v1499_v55 = vmul.f32 %v1491_v11, %v1472_v28  ;;  %v1563_v36 = vpop.permute.xlu0 %1562 }
 0x46b   :  { %v1678_v9 = vpack.c.bf16 %v1446_v60, %v1442_v24  ;;  %v1457_v57 = vpop.permute.xlu1 %1456  ;;  %v1681_v25 = vpack.c.bf16 %v1449_v5, %v1445_v48  ;;  %v1526_v24 = vsel %vm981_vm12, %v1517_v37, %v5370_v15  ;;  %v1576_v37 = vsel %vm1021_vm13, %v1563_v36, %v5382_v1 }
 0x46c   :  { %v1469_v56 = vsel %vm941_vm11, %v1457_v57, %v5384_v22  ;;  %v1471_v19 = vsel %vm941_vm11, %v5380_v13, %v1457_v57  ;;  %v6790_v57 = vld [vmem:[#allocation7_spill] sm:$0xff] }
 0x46d   :  { %v1501_v58 = vmul.f32 %v1483_v39, %v1469_v56  ;;  %1725 = vmatpush1.bf16.msra.mxu0 %v1678_v9  ;;  %1765 = vmatprep.subr.bf16.mxu1 %v1681_v25  ;;  %v1500_v14 = vmul.f32 %v1479_v52, %v1471_v19  ;;  %v1550_v39 = vmul.f32 %v1533_v44, %v1524_v26  ;;  %v6791_v56 = vld [vmem:[#allocation11_spill] sm:$0xff] }
 0x46e   :  { %1726 = vmatprep.subr.bf16.mxu0 %v1683_v29  ;;  %1766 = vmatpush1.bf16.msra.mxu1 %v1680_v23  ;;  %v1571_v48 = vpop.permute.xlu0 %1570  ;;  %v1578_v25 = vsel %vm1021_vm13, %v6790_v57, %v1563_v36 }
 0x46f   :  { %v1465_v6 = vpop.permute.xlu1 %1464  ;;  %1767 = vmatprep.subr.bf16.mxu1 %v1685_v51  ;;  %v1687_v53 = vpack.c.bf16 %v1501_v58, %v1497_v0  ;;  %v1686_v54 = vpack.c.bf16 %v1500_v14, %v1496_v18  ;;  %v6792_v0 = vld [vmem:[#allocation10_spill] sm:$0xff]  ;;  %v1580_v18 = vsel %vm1021_vm13, %v1571_v48, %v6790_v57 }
 0x470   :  { %v1467_v43 = vsel %vm941_vm11, %v5384_v22, %v1465_v6  ;;  %v1473_v40 = vsel %vm941_vm11, %v1465_v6, %v5380_v13  ;;  %v1522_v22 = vsel %vm981_vm12, %v1509_v16, %v5374_v12  ;;  %v6789_v13 = vpack.c.bf16 %v5190_v2, %v5180_v41  ;;  %v4146_v41 = vld [vmem:[%s6750_s0 + $0x1c] sm:$0xf] }
 0x471   :  { %v1502_v7 = vmul.f32 %v1487_v20, %v1467_v43  ;;  %v1503_v27 = vmul.f32 %v1491_v11, %v1473_v40  ;;  %1727 = vmatpush1.bf16.msra.mxu0 %v6788_v59  ;;  %v1551_v16 = vmul.f32 %v1537_v46, %v1522_v22  ;;  %v1587_v52 = vrot.slane %v4146_v41, %v4874_v33 }
 0x472   :  { %1728 = vmatprep.subr.bf16.mxu0 %v1687_v53  ;;  %1768 = vmatpush1.bf16.msra.mxu1 %v6789_v13  ;;  %v1591_v50 = vrot.slane %v4146_v41, %v4906_v62  ;;  %v1552_v20 = vmul.f32 %v1541_v10, %v1520_v30  ;;  %v1553_v11 = vmul.f32 %v1545_v47, %v1526_v24  ;;  %v6793_v13 = vld [vmem:[#allocation9_spill] sm:$0xff] }
 0x473   :  { %v1688_v32 = vpack.c.bf16 %v1502_v7, %v1498_v42  ;;  %v1511_v3 = vpop.permute.xlu1 %1510  ;;  %v1689_v29 = vpack.c.bf16 %v1503_v27, %v1499_v55  ;;  %v1595_v17 = vrot.slane %v4146_v41, %v4879_v35  ;;  %v1604_v58 = vmul.f32 %v1587_v52, %v1578_v25 }
 0x474   :  { %v1523_v61 = vsel %vm981_vm12, %v1511_v3, %v5392_v38  ;;  %v1525_v31 = vsel %vm981_vm12, %v5388_v21, %v1511_v3  ;;  %v1605_v28 = vmul.f32 %v1591_v50, %v1576_v37  ;;  %v1574_v53 = vsel %vm1021_vm13, %v5382_v1, %v1571_v48 }
 0x475   :  { %v1554_v2 = vmul.f32 %v1533_v44, %v1525_v31  ;;  %v1555_v4 = vmul.f32 %v1537_v46, %v1523_v61  ;;  %1729 = vmatpush1.bf16.msra.mxu0 %v1686_v54  ;;  %1769 = vmatprep.subr.bf16.mxu1 %v1689_v29  ;;  %v4147_v44 = vld [vmem:[%s6750_s0 + $0x20] sm:$0xf]  ;;  %v1617_v46 = vpop.permute.xlu0 %1616  ;;  %v1606_v7 = vmul.f32 %v1595_v17, %v1574_v53  ;;  %v6794_v54 = vld [vmem:[#allocation8_spill] sm:$0xff] }
 0x476   :  { %1770 = vmatpush1.bf16.msra.mxu1 %v1688_v32  ;;  %v1641_v55 = vrot.slane %v4147_v44, %v4874_v33  ;;  %v1645_v26 = vrot.slane %v4147_v44, %v4906_v62  ;;  %v1632_v32 = vsel %vm1061_vm14, %v6794_v54, %v1617_v46  ;;  %v1649_v61 = vrot.slane %v4147_v44, %v4879_v35 }
 0x477   :  { %v1690_v60 = vpack.c.bf16 %v1554_v2, %v1550_v39  ;;  %v1519_v5 = vpop.permute.xlu1 %1518  ;;  %v1691_v45 = vpack.c.bf16 %v1555_v4, %v1551_v16  ;;  %v1653_v31 = vrot.slane %v4147_v44, %v4909_v63  ;;  %v6795_v16 = vld [vmem:[#allocation13_spill] sm:$0xff]  ;;  %v6796_v2 = vld [vmem:[#allocation12_spill] sm:$0xff] }
 0x478   :  { %v1521_v51 = vsel %vm981_vm12, %v5392_v38, %v1519_v5  ;;  %v1527_v12 = vsel %vm981_vm12, %v1519_v5, %v5388_v21  ;;  %v1599_v21 = vrot.slane %v4146_v41, %v4909_v63  ;;  %v1658_v30 = vmul.f32 %v1641_v55, %v1632_v32 }
 0x479   :  { %v1556_v15 = vmul.f32 %v1541_v10, %v1521_v51  ;;  %v1557_v9 = vmul.f32 %v1545_v47, %v1527_v12  ;;  %1730 = vmatprep.subr.bf16.mxu0 %v1691_v45  ;;  %v1630_v10 = vsel %vm1061_vm14, %v1617_v46, %v6793_v13  ;;  %v1625_v3 = vpop.permute.xlu0 %1624 }
 0x47a   :  { %1731 = vmatpush1.bf16.msra.mxu0 %v1690_v60  ;;  %v1607_v27 = vmul.f32 %v1599_v21, %v1580_v18  ;;  %v1659_v24 = vmul.f32 %v1645_v26, %v1630_v10  ;;  %v1628_v5 = vsel %vm1061_vm14, %v6793_v13, %v1625_v3  ;;  %v1634_v45 = vsel %vm1061_vm14, %v1625_v3, %v6794_v54  ;;  %v1836_v54 = vld [vmem:[%s6750_s0] sm:$0xf]  ;;  %v4152_v3 = vld [vmem:[%s6750_s0 + $0x4] sm:$0xf] }
 0x47b   :  { %v1692_v49 = vpack.c.bf16 %v1556_v15, %v1552_v20  ;;  %v1565_v38 = vpop.permute.xlu1 %1564  ;;  %v1693_v23 = vpack.c.bf16 %v1557_v9, %v1553_v11  ;;  %v6797_v11 = vld [vmem:[#allocation6_spill] sm:$0xff]  ;;  %v1660_v9 = vmul.f32 %v1649_v61, %v1628_v5  ;;  %v1661_v37 = vmul.f32 %v1653_v31, %v1634_v45 }
 0x47c   :  { %v1577_v19 = vsel %vm1021_vm13, %v1565_v38, %v6791_v56  ;;  %v1579_v8 = vsel %vm1021_vm13, %v6792_v0, %v1565_v38  ;;  %v4148_v15 = vcombine.low %v6797_v11, %v6797_v11  ;;  %v1891_v5 = vrot.slane %v4152_v3, %v4909_v63 }
 0x47d   :  { %v1608_v14 = vmul.f32 %v1587_v52, %v1579_v8  ;;  %v1609_v6 = vmul.f32 %v1591_v50, %v1577_v19  ;;  %1771 = vmatprep.subr.bf16.mxu1 %v1693_v23  ;;  %v6798_v23 = vmov 0   ;;  %v1849_v45 = vrot.slane %v1836_v54, %v4879_v35 }
 0x47e   :  { %1772 = vmatpush1.bf16.msra.mxu1 %v1692_v49 }
 0x47f   :  { %v1694_v42 = vpack.c.bf16 %v1608_v14, %v1604_v58  ;;  %v1573_v43 = vpop.permute.xlu1 %1572  ;;  %v1695_v40 = vpack.c.bf16 %v1609_v6, %v1605_v28 }
 0x480   :  { %v1575_v36 = vsel %vm1021_vm13, %v6791_v56, %v1573_v43  ;;  %v1581_v1 = vsel %vm1021_vm13, %v1573_v43, %v6792_v0 }
 0x481   :  { %v1610_v59 = vmul.f32 %v1595_v17, %v1575_v36  ;;  %v1611_v22 = vmul.f32 %v1599_v21, %v1581_v1  ;;  %1732 = vmatprep.subr.bf16.mxu0 %v1695_v40 }
 0x482   :  { %1733 = vmatpush1.bf16.msra.mxu0 %v1694_v42 }
 0x483   :  { %v1696_v29 = vpack.c.bf16 %v1610_v59, %v1606_v7  ;;  %v1619_v39 = vpop.permute.xlu1 %1618  ;;  %v1697_v47 = vpack.c.bf16 %v1611_v22, %v1607_v27  ;;  %v4507_v27 = vmov 5   ;;  %v4508_v59 = vmov 6   ;;  %v2149_v22 = vld [vmem:[%s6751_s1] sm:$0xf] }
 0x484   :  { %v1631_v41 = vsel %vm1061_vm14, %v1619_v39, %v6795_v16  ;;  %v1633_v4 = vsel %vm1061_vm14, %v6796_v2, %v1619_v39  ;;  %4447 = vset.pattern.permute.xlu1 %v4507_v27  ;;  %4448 = vset.pattern.permute.xlu0 %v4508_v59  ;;  %v1845_v39 = vrot.slane %v1836_v54, %v4906_v62 }
 0x485   :  { %v1662_v48 = vmul.f32 %v1641_v55, %v1633_v4  ;;  %v1663_v60 = vmul.f32 %v1645_v26, %v1631_v41  ;;  %1773 = vmatprep.subr.bf16.mxu1 %v1697_v47  ;;  %v1883_v47 = vrot.slane %v4152_v3, %v4906_v62  ;;  %v1841_v41 = vrot.slane %v1836_v54, %v4874_v33 }
 0x486   :  { %1774 = vmatpush1.bf16.msra.mxu1 %v1696_v29 }
 0x487   :  { %v1698_v52 = vpack.c.bf16 %v1662_v48, %v1658_v30  ;;  %v1627_v50 = vpop.permute.xlu1 %1626  ;;  %v1699_v51 = vpack.c.bf16 %v1663_v60, %v1659_v24  ;;  %v1706_v17 = vpop.permute.xlu0 %1705  ;;  %v1887_v30 = vrot.slane %v4152_v3, %v4879_v35  ;;  %v1879_v60 = vrot.slane %v4152_v3, %v4874_v33 }
 0x488   :  { %v1629_v12 = vsel %vm1061_vm14, %v6795_v16, %v1627_v50  ;;  %v1635_v20 = vsel %vm1061_vm14, %v1627_v50, %v6796_v2  ;;  %v1853_v2 = vrot.slane %v1836_v54, %v4909_v63 }
 0x489   :  { %v1664_v57 = vmul.f32 %v1649_v61, %v1629_v12  ;;  %v1665_v25 = vmul.f32 %v1653_v31, %v1635_v20  ;;  %1734 = vmatprep.subr.bf16.mxu0 %v1699_v51 }
 0x48a   :  { %1735 = vmatpush1.bf16.msra.mxu0 %v1698_v52 }
 0x48b   :  { %v1700_v49 = vpack.c.bf16 %v1664_v57, %v1660_v9  ;;  %v1701_v38 = vpack.c.bf16 %v1665_v25, %v1661_v37 }
 0x48d   :  { %1751 = vmatmul.mubr.bf16.vlgmr.msra.gmra.mrb[16].mxu0 %v4148_v15  ;;  %1775 = vmatprep.subr.bf16.mxu1 %v1701_v38 }
 0x48e   :  { %1776 = vmatpush1.bf16.msra.mxu1 %v1700_v49  ;;  %2202 = vmatprep.mubr.bf16.mxu0 %v6798_v23 }
 0x491   :  { %1792 = vmatmul.mubr.bf16.vlgmr.msra.gmra.mrb[16].mxu1 %v4148_v15 }
 0x492   :  { %2243 = vmatprep.mubr.bf16.mxu1 %v6798_v23 }
 0x498   :  { %v1806_v56 = vpop.permute.xlu1 %1805 }
 0x560   :  { %v1752_v21 = vpop.f32.mrb[16].mxu0 }
 0x561   :  { %v1753_v19 = vadd.f32 %v1752_v21, %v1706_v17  ;;  %v1754_v0 = vpop.f32.mrb[17].mxu0 }
 0x562   :  { %v1755_v8 = vadd.f32 %v1754_v0, %v1706_v17  ;;  %v1756_v58 = vpop.f32.mrb[18].mxu0 }
 0x563   :  { %vm1800_vm4 = vcmp.ge.f32.partialorder %v1753_v19, 0.0  ;;  %v1808_v28 = vmul.f32 %v1806_v56, %v1753_v19  ;;  %v1757_v44 = vpop.f32.mrb[19].mxu0 }
 0x564   :  { %vm1801_vm5 = vcmp.ge.f32.partialorder %v1755_v8, 0.0  ;;  %v1809_v46 = vmul.f32 %v1806_v56, %v1755_v8  ;;  %v1793_v14 = vpop.f32.mrb[16].mxu1 }
 0x565   :  { %v5686_v6 = vsel %vm1800_vm4, %v1753_v19, %v1808_v28  ;;  %v1794_v53 = vadd.f32 %v1793_v14, %v1706_v17  ;;  %v1795_v18 = vpop.f32.mrb[17].mxu1  ;;  %v4153_v28 = vld [vmem:[%s6750_s0 + $0x8] sm:$0xf] }
 0x566   :  { %v5688_v42 = vsel %vm1801_vm5, %v1755_v8, %v1809_v46  ;;  %1816 = vst [vmem:[#allocation2] sm:$0xff] %v5686_v6  ;;  %v1796_v43 = vadd.f32 %v1795_v18, %v1706_v17  ;;  %v1797_v40 = vpop.f32.mrb[18].mxu1  ;;  %1824 = vrot.lane.b32.xlu1 %v5686_v6, %s4495_s4  ;;  %v4154_v46 = vld [vmem:[%s6750_s0 + $0xc] sm:$0xf] }
 0x567   :  { %1817 = vst [vmem:[#allocation2 + $0x8] sm:$0xff] %v5688_v42  ;;  %vm1802_vm8 = vcmp.ge.f32.partialorder %v1794_v53, 0.0  ;;  %v1810_v55 = vmul.f32 %v1806_v56, %v1794_v53  ;;  %v1798_v26 = vpop.f32.mrb[19].mxu1  ;;  %1826 = vrot.lane.b32.xlu0 %v5688_v42, %s4495_s4  ;;  %v1959_v18 = vrot.slane %v4154_v46, %v4906_v62  ;;  %v1967_v54 = vrot.slane %v4154_v46, %v4909_v63 }
 0x568   :  { %vm1803_vm15 = vcmp.ge.f32.partialorder %v1796_v43, 0.0  ;;  %v1811_v36 = vmul.f32 %v1806_v56, %v1796_v43  ;;  %v1917_v26 = vrot.slane %v4153_v28, %v4874_v33 }
 0x569   :  { %v5696_v1 = vsel %vm1802_vm8, %v1794_v53, %v1810_v55  ;;  %v1921_v53 = vrot.slane %v4153_v28, %v4906_v62 }
 0x56a   :  { %1818 = vst [vmem:[#allocation2 + $0x10] sm:$0xff] %v5696_v1  ;;  %v5699_v7 = vsel %vm1803_vm15, %v1796_v43, %v1811_v36  ;;  %1828 = vrot.lane.b32.xlu1 %v5696_v1, %s4495_s4  ;;  %v1929_v36 = vrot.slane %v4153_v28, %v4909_v63 }
 0x56b   :  { %1819 = vst [vmem:[#allocation2 + $0x18] sm:$0xff] %v5699_v7  ;;  %1830 = vrot.lane.b32.xlu0 %v5699_v7, %s4495_s4 }
 0x56e   :  { %1862 = vrot.lane.b32.xlu1 %v5686_v6, %s4496_s14 }
 0x56f   :  { %1864 = vrot.lane.b32.xlu0 %v5688_v42, %s4496_s14 }
 0x572   :  { %1866 = vrot.lane.b32.xlu1 %v5696_v1, %s4496_s14 }
 0x573   :  { %1868 = vrot.lane.b32.xlu0 %v5699_v7, %s4496_s14 }
 0x576   :  { %1900 = vrot.lane.b32.xlu1 %v5686_v6, %s4497_s18 }
 0x577   :  { %1902 = vrot.lane.b32.xlu0 %v5688_v42, %s4497_s18 }
 0x57a   :  { %1904 = vrot.lane.b32.xlu1 %v5696_v1, %s4497_s18 }
 0x57b   :  { %1906 = vrot.lane.b32.xlu0 %v5699_v7, %s4497_s18 }
 0x57e   :  { %1938 = vrot.lane.b32.xlu1 %v5686_v6, %s4498_s19 }
 0x57f   :  { %1940 = vrot.lane.b32.xlu0 %v5688_v42, %s4498_s19 }
 0x582   :  { %1942 = vrot.lane.b32.xlu1 %v5696_v1, %s4498_s19 }
 0x583   :  { %1944 = vrot.lane.b32.xlu0 %v5699_v7, %s4498_s19 }
 0x586   :  { %1976 = vrot.lane.b32.xlu1 %v5686_v6, %s4499_s20 }
 0x587   :  { %1978 = vrot.lane.b32.xlu0 %v5688_v42, %s4499_s20 }
 0x58a   :  { %1980 = vrot.lane.b32.xlu1 %v5696_v1, %s4499_s20 }
 0x58b   :  { %1982 = vrot.lane.b32.xlu0 %v5699_v7, %s4499_s20 }
 0x58e   :  { %2014 = vrot.lane.b32.xlu1 %v5686_v6, %s4500_s21 }
 0x58f   :  { %2016 = vrot.lane.b32.xlu0 %v5688_v42, %s4500_s21 }
 0x592   :  { %2018 = vrot.lane.b32.xlu1 %v5696_v1, %s4500_s21 }
 0x593   :  { %2020 = vrot.lane.b32.xlu0 %v5699_v7, %s4500_s21 }
 0x596   :  { %2052 = vrot.lane.b32.xlu1 %v5686_v6, %s4501_s2 }
 0x597   :  { %2054 = vrot.lane.b32.xlu0 %v5688_v42, %s4501_s2 }
 0x59a   :  { %2056 = vrot.lane.b32.xlu1 %v5696_v1, %s4501_s2 }
 0x59b   :  { %2058 = vrot.lane.b32.xlu0 %v5699_v7, %s4501_s2 }
 0x59e   :  { %2090 = vrot.lane.b32.xlu1 %v5686_v6, %s4502_s22 }
 0x59f   :  { %2092 = vrot.lane.b32.xlu0 %v5688_v42, %s4502_s22 }
 0x5a2   :  { %2094 = vrot.lane.b32.xlu1 %v5696_v1, %s4502_s22 }
 0x5a3   :  { %2096 = vrot.lane.b32.xlu0 %v5699_v7, %s4502_s22 }
 0x5a6   :  { %2152 = vperm.xlu1 %4447, %v2149_v22  }
 0x5a7   :  { %2257 = vperm.xlu0 %4448, %v2149_v22  }
 0x5aa   :  { %4450 = vset.pattern.permute.xlu1 %v4508_v59  ;;  %v1963_v59 = vrot.slane %v4154_v46, %v4879_v35 }
 0x5ab   :  { %4449 = vset.pattern.permute.xlu0 %v4507_v27 }
 0x5d8   :  { %v1825_v13 = vpop.permute.xlu1 %1824 }
 0x5d9   :  { %v1827_v10 = vpop.permute.xlu0 %1826 }
 0x5da   :  { %v1834_v61 = vsel %vm782_vm6, %v1825_v13, %v1827_v10 }
 0x5db   :  { %v1859_v24 = vmul.f32 %v1845_v39, %v1834_v61 }
 0x5dc   :  { %v1829_v32 = vpop.permute.xlu1 %1828 }
 0x5dd   :  { %v1831_v29 = vpop.permute.xlu0 %1830  ;;  %v1833_v12 = vsel %vm782_vm6, %v1827_v10, %v1829_v32  ;;  %v1955_v10 = vrot.slane %v4154_v46, %v4874_v33 }
 0x5de   :  { %v1832_v52 = vsel %vm782_vm6, %v1829_v32, %v1831_v29  ;;  %v1835_v50 = vsel %vm782_vm6, %v1831_v29, %v1825_v13  ;;  %v1860_v21 = vmul.f32 %v1849_v45, %v1833_v12  ;;  %v1925_v32 = vrot.slane %v4153_v28, %v4879_v35 }
 0x5df   :  { %v1858_v25 = vmul.f32 %v1841_v41, %v1835_v50  ;;  %v1861_v49 = vmul.f32 %v1853_v2, %v1832_v52 }
 0x5e0   :  { %v1863_v31 = vpop.permute.xlu1 %1862 }
 0x5e1   :  { %v1865_v16 = vpop.permute.xlu0 %1864 }
 0x5e2   :  { %v1872_v4 = vsel %vm821_vm7, %v1863_v31, %v1865_v16 }
 0x5e3   :  { %v1897_v48 = vmul.f32 %v1883_v47, %v1872_v4 }
 0x5e4   :  { %v1867_v51 = vpop.permute.xlu1 %1866 }
 0x5e5   :  { %v1871_v20 = vsel %vm821_vm7, %v1865_v16, %v1867_v51  ;;  %v1869_v11 = vpop.permute.xlu0 %1868  ;;  %v2129_v15 = vpack.c.bf16 %v1897_v48, %v1859_v24 }
 0x5e6   :  { %v1898_v9 = vmul.f32 %v1887_v30, %v1871_v20  ;;  %v1870_v37 = vsel %vm821_vm7, %v1867_v51, %v1869_v11  ;;  %v1873_v57 = vsel %vm821_vm7, %v1869_v11, %v1863_v31  ;;  %v4155_v30 = vld [vmem:[%s6750_s0 + $0x14] sm:$0xf] }
 0x5e7   :  { %v1896_v38 = vmul.f32 %v1879_v60, %v1873_v57  ;;  %v1899_v17 = vmul.f32 %v1891_v5, %v1870_v37  ;;  %2170 = vmatprep.subr.bf16.mxu0 %v2129_v15  ;;  %v1993_v51 = vrot.slane %v4155_v30, %v4874_v33  ;;  %v2001_v37 = vrot.slane %v4155_v30, %v4879_v35 }
 0x5e8   :  { %v1901_v56 = vpop.permute.xlu1 %1900  ;;  %v2130_v58 = vpack.c.bf16 %v1898_v9, %v1860_v21  ;;  %v1997_v9 = vrot.slane %v4155_v30, %v4906_v62  ;;  %v2005_v57 = vrot.slane %v4155_v30, %v4909_v63 }
 0x5e9   :  { %v2128_v19 = vpack.c.bf16 %v1896_v38, %v1858_v25  ;;  %v1903_v0 = vpop.permute.xlu0 %1902  ;;  %v2131_v8 = vpack.c.bf16 %v1899_v17, %v1861_v49 }
 0x5ea   :  { %v1910_v43 = vsel %vm861_vm9, %v1901_v56, %v1903_v0 }
 0x5eb   :  { %2171 = vmatpush1.bf16.msra.mxu0 %v2128_v19  ;;  %2211 = vmatprep.subr.bf16.mxu1 %v2131_v8  ;;  %v1935_v22 = vmul.f32 %v1921_v53, %v1910_v43 }
 0x5ec   :  { %2212 = vmatpush1.bf16.msra.mxu1 %v2130_v58  ;;  %v1905_v44 = vpop.permute.xlu1 %1904 }
 0x5ed   :  { %v1907_v14 = vpop.permute.xlu0 %1906  ;;  %v1909_v47 = vsel %vm861_vm9, %v1903_v0, %v1905_v44 }
 0x5ee   :  { %v1908_v3 = vsel %vm861_vm9, %v1905_v44, %v1907_v14  ;;  %v1911_v29 = vsel %vm861_vm9, %v1907_v14, %v1901_v56  ;;  %v1936_v45 = vmul.f32 %v1925_v32, %v1909_v47 }
 0x5ef   :  { %v1934_v24 = vmul.f32 %v1917_v26, %v1911_v29  ;;  %v1937_v48 = vmul.f32 %v1929_v36, %v1908_v3 }
 0x5f0   :  { %v1939_v40 = vpop.permute.xlu1 %1938 }
 0x5f1   :  { %v1941_v55 = vpop.permute.xlu0 %1940 }
 0x5f2   :  { %v1948_v27 = vsel %vm901_vm10, %v1939_v40, %v1941_v55 }
 0x5f3   :  { %v1973_v13 = vmul.f32 %v1959_v18, %v1948_v27 }
 0x5f4   :  { %v1943_v39 = vpop.permute.xlu1 %1942 }
 0x5f5   :  { %v1947_v61 = vsel %vm901_vm10, %v1941_v55, %v1943_v39  ;;  %v1945_v31 = vpop.permute.xlu0 %1944  ;;  %v2133_v16 = vpack.c.bf16 %v1973_v13, %v1935_v22  ;;  %v4158_v13 = vld [vmem:[%s6750_s0 + $0x20] sm:$0xf] }
 0x5f6   :  { %v1974_v41 = vmul.f32 %v1963_v59, %v1947_v61  ;;  %v1946_v2 = vsel %vm901_vm10, %v1943_v39, %v1945_v31  ;;  %v1949_v4 = vsel %vm901_vm10, %v1945_v31, %v1939_v40  ;;  %v4156_v40 = vld [vmem:[%s6750_s0 + $0x18] sm:$0xf] }
 0x5f7   :  { %v1972_v60 = vmul.f32 %v1955_v10, %v1949_v4  ;;  %v1975_v5 = vmul.f32 %v1967_v54, %v1946_v2  ;;  %2172 = vmatprep.subr.bf16.mxu0 %v2133_v16  ;;  %v2035_v55 = vrot.slane %v4156_v40, %v4906_v62  ;;  %v2039_v27 = vrot.slane %v4156_v40, %v4879_v35 }
 0x5f8   :  { %v1977_v52 = vpop.permute.xlu1 %1976  ;;  %v2134_v11 = vpack.c.bf16 %v1974_v41, %v1936_v45  ;;  %v2043_v54 = vrot.slane %v4156_v40, %v4909_v63  ;;  %v2107_v2 = vrot.slane %v4158_v13, %v4874_v33 }
 0x5f9   :  { %v2132_v50 = vpack.c.bf16 %v1972_v60, %v1934_v24  ;;  %v1979_v12 = vpop.permute.xlu0 %1978  ;;  %v2135_v20 = vpack.c.bf16 %v1975_v5, %v1937_v48 }
 0x5fa   :  { %v1986_v15 = vsel %vm941_vm11, %v1977_v52, %v1979_v12 }
 0x5fb   :  { %2173 = vmatpush1.bf16.msra.mxu0 %v2132_v50  ;;  %2213 = vmatprep.subr.bf16.mxu1 %v2135_v20  ;;  %v2010_v49 = vmul.f32 %v1993_v51, %v1986_v15 }
 0x5fc   :  { %2214 = vmatpush1.bf16.msra.mxu1 %v2134_v11  ;;  %v1981_v25 = vpop.permute.xlu1 %1980 }
 0x5fd   :  { %v1985_v38 = vsel %vm941_vm11, %v1979_v12, %v1981_v25  ;;  %v1983_v17 = vpop.permute.xlu0 %1982  ;;  %v2136_v44 = vpack.c.bf16 %v2010_v49, %v5686_v6  ;;  %v2119_v49 = vrot.slane %v4158_v13, %v4909_v63 }
 0x5fe   :  { %v2011_v21 = vmul.f32 %v1997_v9, %v1985_v38  ;;  %v1984_v56 = vsel %vm941_vm11, %v1981_v25, %v1983_v17  ;;  %v1987_v19 = vsel %vm941_vm11, %v1983_v17, %v1977_v52  ;;  %v2115_v25 = vrot.slane %v4158_v13, %v4879_v35 }
 0x5ff   :  { %v2012_v0 = vmul.f32 %v2001_v37, %v1984_v56  ;;  %v2013_v8 = vmul.f32 %v2005_v57, %v1987_v19  ;;  %v2111_v37 = vrot.slane %v4158_v13, %v4906_v62 }
 0x600   :  { %v2015_v58 = vpop.permute.xlu1 %2014  ;;  %v2137_v28 = vpack.c.bf16 %v2011_v21, %v5688_v42  ;;  %v4157_v42 = vld [vmem:[%s6750_s0 + $0x1c] sm:$0xf] }
 0x601   :  { %v2138_v46 = vpack.c.bf16 %v2012_v0, %v5696_v1  ;;  %v2017_v14 = vpop.permute.xlu0 %2016  ;;  %v2139_v53 = vpack.c.bf16 %v2013_v8, %v5699_v7  ;;  %v2031_v1 = vrot.slane %v4156_v40, %v4874_v33  ;;  %v2069_v7 = vrot.slane %v4157_v42, %v4874_v33 }
 0x602   :  { %2174 = vmatprep.subr.bf16.mxu0 %v2137_v28  ;;  %v2024_v36 = vsel %vm981_vm12, %v2015_v58, %v2017_v14  ;;  %v2073_v22 = vrot.slane %v4157_v42, %v4906_v62  ;;  %v2077_v32 = vrot.slane %v4157_v42, %v4879_v35  ;;  %v2081_v3 = vrot.slane %v4157_v42, %v4909_v63 }
 0x603   :  { %2175 = vmatpush1.bf16.msra.mxu0 %v2136_v44  ;;  %2215 = vmatprep.subr.bf16.mxu1 %v2139_v53  ;;  %v2048_v61 = vmul.f32 %v2031_v1, %v2024_v36 }
 0x604   :  { %2216 = vmatpush1.bf16.msra.mxu1 %v2138_v46  ;;  %v2019_v18 = vpop.permute.xlu1 %2018 }
 0x605   :  { %v2021_v43 = vpop.permute.xlu0 %2020  ;;  %v2023_v10 = vsel %vm981_vm12, %v2017_v14, %v2019_v18 }
 0x606   :  { %v2022_v29 = vsel %vm981_vm12, %v2019_v18, %v2021_v43  ;;  %v2025_v39 = vsel %vm981_vm12, %v2021_v43, %v2015_v58  ;;  %v2049_v4 = vmul.f32 %v2035_v55, %v2023_v10  ;;  %v2148_v43 = vld [vmem:[%s6758_s8] sm:$0x3]  ;;  %s4512_s8 = smov [#allocation3]  }
 0x607   :  { %v2050_v60 = vmul.f32 %v2039_v27, %v2022_v29  ;;  %v2051_v5 = vmul.f32 %v2043_v54, %v2025_v39 }
 0x608   :  { %v2053_v6 = vpop.permute.xlu1 %2052 }
 0x609   :  { %v2055_v26 = vpop.permute.xlu0 %2054 }
 0x60a   :  { %v2062_v59 = vsel %vm1021_vm13, %v2053_v6, %v2055_v26 }
 0x60b   :  { %v2086_v31 = vmul.f32 %v2069_v7, %v2062_v59 }
 0x60c   :  { %v2057_v47 = vpop.permute.xlu1 %2056 }
 0x60d   :  { %v2061_v16 = vsel %vm1021_vm13, %v2055_v26, %v2057_v47  ;;  %v2059_v41 = vpop.permute.xlu0 %2058  ;;  %v2140_v12 = vpack.c.bf16 %v2086_v31, %v2048_v61 }
 0x60e   :  { %v2087_v30 = vmul.f32 %v2073_v22, %v2061_v16  ;;  %v2060_v24 = vsel %vm1021_vm13, %v2057_v47, %v2059_v41  ;;  %v2063_v48 = vsel %vm1021_vm13, %v2059_v41, %v2053_v6 }
 0x60f   :  { %v2088_v45 = vmul.f32 %v2077_v32, %v2060_v24  ;;  %v2089_v52 = vmul.f32 %v2081_v3, %v2063_v48  ;;  %v2601_v24 = vld [vmem:[%s6751_s1 + $0x4] sm:$0xf] }
 0x610   :  { %v2091_v50 = vpop.permute.xlu1 %2090  ;;  %v2141_v51 = vpack.c.bf16 %v2087_v30, %v2049_v4 }
 0x611   :  { %v2142_v20 = vpack.c.bf16 %v2088_v45, %v2050_v60  ;;  %v2093_v11 = vpop.permute.xlu0 %2092  ;;  %v2143_v15 = vpack.c.bf16 %v2089_v52, %v2051_v5  ;;  %v2288_v52 = vld [vmem:[%s6750_s0] sm:$0xf] }
 0x612   :  { %v2100_v9 = vsel %vm1061_vm14, %v2091_v50, %v2093_v11  ;;  %2176 = vmatprep.subr.bf16.mxu0 %v2141_v51 }
 0x613   :  { %v2124_v57 = vmul.f32 %v2107_v2, %v2100_v9  ;;  %2177 = vmatpush1.bf16.msra.mxu0 %v2140_v12  ;;  %2217 = vmatprep.subr.bf16.mxu1 %v2143_v15  ;;  %v2293_v9 = vrot.slane %v2288_v52, %v4874_v33 }
 0x614   :  { %2218 = vmatpush1.bf16.msra.mxu1 %v2142_v20  ;;  %v2095_v38 = vpop.permute.xlu1 %2094  ;;  %v2297_v20 = vrot.slane %v2288_v52, %v4906_v62 }
 0x615   :  { %v2099_v17 = vsel %vm1061_vm14, %v2093_v11, %v2095_v38  ;;  %v2097_v21 = vpop.permute.xlu0 %2096  ;;  %v2144_v56 = vpack.c.bf16 %v2124_v57, %v2124_v57  ;;  %v2305_v57 = vrot.slane %v2288_v52, %v4909_v63 }
 0x616   :  { %v2125_v19 = vmul.f32 %v2111_v37, %v2099_v17  ;;  %v2098_v0 = vsel %vm1061_vm14, %v2095_v38, %v2097_v21  ;;  %v2101_v8 = vsel %vm1061_vm14, %v2097_v21, %v2091_v50  ;;  %v4163_v50 = vld [vmem:[%s6750_s0 + $0x4] sm:$0xf] }
 0x617   :  { %v2126_v58 = vmul.f32 %v2115_v25, %v2098_v0  ;;  %v2127_v28 = vmul.f32 %v2119_v49, %v2101_v8  ;;  %v2159_v53 = vsel %vm75_vm0, %v2144_v56, 0  ;;  %v2335_v11 = vrot.slane %v4163_v50, %v4906_v62 }
 0x618   :  { %v2145_v44 = vpack.c.bf16 %v2125_v19, %v2125_v19  ;;  %v2339_v25 = vrot.slane %v4163_v50, %v4879_v35  ;;  %v2331_v17 = vrot.slane %v4163_v50, %v4874_v33  ;;  %v2343_v0 = vrot.slane %v4163_v50, %v4909_v63 }
 0x619   :  { %v2146_v46 = vpack.c.bf16 %v2126_v58, %v2126_v58  ;;  %v2147_v14 = vpack.c.bf16 %v2127_v28, %v2127_v28  ;;  %v2301_v8 = vrot.slane %v2288_v52, %v4879_v35 }
 0x61a   :  { %4159 = vmatprep.subr.msk.bf16.mxu0 %vm75_vm0, %v2145_v44 }
 0x61b   :  { %2179 = vmatpush1.bf16.msra.mxu0 %v2159_v53  ;;  %4161 = vmatprep.subr.msk.bf16.mxu1 %vm75_vm0, %v2147_v14  ;;  %v2165_v18 = vsel %vm75_vm0, %v2146_v46, 0 }
 0x61c   :  { %2220 = vmatpush1.bf16.msra.mxu1 %v2165_v18 }
 0x61e   :  { %4160 = vmatmul.mubr.msk.bf16.vlgmr.msra.gmra.mrb[20].mxu0 %vm1119_vm1, %v2148_v43 }
 0x61f   :  { %4162 = vmatmul.mubr.msk.bf16.vlgmr.msra.gmra.mrb[20].mxu1 %vm1119_vm1, %v2148_v43  ;;  %2654 = vmatprep.mubr.bf16.mxu0 %v6798_v23 }
 0x620   :  { %2695 = vmatprep.mubr.bf16.mxu1 %v6798_v23 }
 0x625   :  { %v2153_v40 = vpop.permute.xlu1 %2152 }
 0x626   :  { %v2258_v6 = vpop.permute.xlu0 %2257 }
 0x6f1   :  { %v2204_v42 = vpop.f32.mrb[20].mxu0 }
 0x6f2   :  { %v2205_v1 = vadd.f32 %v2204_v42, %v2153_v40  ;;  %v2206_v55 = vpop.f32.mrb[21].mxu0  ;;  %v2245_v7 = vpop.f32.mrb[20].mxu1 }
 0x6f3   :  { %v2207_v26 = vadd.f32 %v2206_v55, %v2153_v40  ;;  %v2246_v36 = vadd.f32 %v2245_v7, %v2153_v40  ;;  %v2247_v27 = vpop.f32.mrb[21].mxu1  ;;  %v2208_v59 = vpop.f32.mrb[22].mxu0 }
 0x6f4   :  { %vm2252_vm2 = vcmp.ge.f32.partialorder %v2205_v1, 0.0  ;;  %v2260_v22 = vmul.f32 %v2258_v6, %v2205_v1  ;;  %v2248_v13 = vadd.f32 %v2247_v27, %v2153_v40  ;;  %v2209_v10 = vpop.f32.mrb[23].mxu0  ;;  %v2249_v54 = vpop.f32.mrb[22].mxu1 }
 0x6f5   :  { %vm2253_vm3 = vcmp.ge.f32.partialorder %v2207_v26, 0.0  ;;  %vm2254_vm4 = vcmp.ge.f32.partialorder %v2246_v36, 0.0  ;;  %v2261_v32 = vmul.f32 %v2258_v6, %v2207_v26  ;;  %v2262_v3 = vmul.f32 %v2258_v6, %v2246_v36  ;;  %v2250_v29 = vpop.f32.mrb[23].mxu1  ;;  %v4165_v10 = vld [vmem:[%s6750_s0 + $0xc] sm:$0xf] }
 0x6f6   :  { %v2264_v39 = vsel %vm2252_vm2, %v2205_v1, %v2260_v22  ;;  %vm2255_vm5 = vcmp.ge.f32.partialorder %v2248_v13, 0.0  ;;  %v2263_v47 = vmul.f32 %v2258_v6, %v2248_v13  ;;  %v2411_v29 = vrot.slane %v4165_v10, %v4906_v62 }
 0x6f7   :  { %v2265_v61 = vsel %vm2253_vm3, %v2207_v26, %v2261_v32  ;;  %v2266_v31 = vsel %vm2254_vm4, %v2246_v36, %v2262_v3  ;;  %2268 = vst [vmem:[#allocation2] sm:$0xf] %v2264_v39 }
 0x6f8   :  { %2269 = vst [vmem:[#allocation2 + $0x8] sm:$0xf] %v2265_v61  ;;  %2270 = vst [vmem:[#allocation2 + $0x10] sm:$0xf] %v2266_v31  ;;  %v2267_v16 = vsel %vm2255_vm5, %v2248_v13, %v2263_v47  ;;  %v4164_v13 = vld [vmem:[%s6750_s0 + $0x8] sm:$0xf] }
 0x6f9   :  { %2271 = vst [vmem:[#allocation2 + $0x18] sm:$0xf] %v2267_v16  ;;  %v2373_v3 = vrot.slane %v4164_v13, %v4906_v62  ;;  %v2369_v47 = vrot.slane %v4164_v13, %v4874_v33  ;;  %v2381_v31 = vrot.slane %v4164_v13, %v4909_v63  ;;  %v2415_v16 = vrot.slane %v4165_v10, %v4879_v35 }
 0x6fe   :  { %v5900_v41 = vld [vmem:[#allocation2] sm:$0xff] }
 0x6ff   :  { %2276 = vrot.lane.b32.xlu1 %v5900_v41, %s4495_s4  ;;  %v5904_v2 = vld [vmem:[#allocation2 + $0x10] sm:$0xff]  ;;  %v5908_v4 = vld [vmem:[#allocation2 + $0x8] sm:$0xff] }
 0x700   :  { %2280 = vrot.lane.b32.xlu0 %v5904_v2, %s4495_s4  ;;  %v5914_v30 = vld [vmem:[#allocation2 + $0x18] sm:$0xff] }
 0x703   :  { %2278 = vrot.lane.b32.xlu1 %v5908_v4, %s4495_s4 }
 0x704   :  { %2314 = vrot.lane.b32.xlu0 %v5900_v41, %s4496_s14 }
 0x707   :  { %2282 = vrot.lane.b32.xlu1 %v5914_v30, %s4495_s4 }
 0x708   :  { %2318 = vrot.lane.b32.xlu0 %v5904_v2, %s4496_s14 }
 0x70b   :  { %2316 = vrot.lane.b32.xlu1 %v5908_v4, %s4496_s14 }
 0x70c   :  { %2352 = vrot.lane.b32.xlu0 %v5900_v41, %s4497_s18 }
 0x70f   :  { %2320 = vrot.lane.b32.xlu1 %v5914_v30, %s4496_s14 }
 0x710   :  { %2356 = vrot.lane.b32.xlu0 %v5904_v2, %s4497_s18 }
 0x713   :  { %2354 = vrot.lane.b32.xlu1 %v5908_v4, %s4497_s18 }
 0x714   :  { %2390 = vrot.lane.b32.xlu0 %v5900_v41, %s4498_s19 }
 0x717   :  { %2358 = vrot.lane.b32.xlu1 %v5914_v30, %s4497_s18 }
 0x718   :  { %2394 = vrot.lane.b32.xlu0 %v5904_v2, %s4498_s19 }
 0x71b   :  { %2392 = vrot.lane.b32.xlu1 %v5908_v4, %s4498_s19 }
 0x71c   :  { %2428 = vrot.lane.b32.xlu0 %v5900_v41, %s4499_s20 }
 0x71f   :  { %2396 = vrot.lane.b32.xlu1 %v5914_v30, %s4498_s19 }
 0x720   :  { %2432 = vrot.lane.b32.xlu0 %v5904_v2, %s4499_s20 }
 0x723   :  { %2430 = vrot.lane.b32.xlu1 %v5908_v4, %s4499_s20 }
 0x724   :  { %2466 = vrot.lane.b32.xlu0 %v5900_v41, %s4500_s21 }
 0x727   :  { %2434 = vrot.lane.b32.xlu1 %v5914_v30, %s4499_s20 }
 0x728   :  { %2470 = vrot.lane.b32.xlu0 %v5904_v2, %s4500_s21 }
 0x72b   :  { %2468 = vrot.lane.b32.xlu1 %v5908_v4, %s4500_s21 }
 0x72c   :  { %2504 = vrot.lane.b32.xlu0 %v5900_v41, %s4501_s2 }
 0x72f   :  { %2472 = vrot.lane.b32.xlu1 %v5914_v30, %s4500_s21 }
 0x730   :  { %2508 = vrot.lane.b32.xlu0 %v5904_v2, %s4501_s2 }
 0x733   :  { %2506 = vrot.lane.b32.xlu1 %v5908_v4, %s4501_s2 }
 0x734   :  { %2542 = vrot.lane.b32.xlu0 %v5900_v41, %s4502_s22 }
 0x737   :  { %2510 = vrot.lane.b32.xlu1 %v5914_v30, %s4501_s2 }
 0x738   :  { %2546 = vrot.lane.b32.xlu0 %v5904_v2, %s4502_s22 }
 0x73b   :  { %2544 = vrot.lane.b32.xlu1 %v5908_v4, %s4502_s22 }
 0x73c   :  { %2604 = vperm.xlu0 %4449, %v2601_v24  }
 0x73f   :  { %2548 = vrot.lane.b32.xlu1 %v5914_v30, %s4502_s22 }
 0x743   :  { %2709 = vperm.xlu1 %4450, %v2601_v24  }
 0x771   :  { %v2277_v48 = vpop.permute.xlu1 %2276 }
 0x772   :  { %v2281_v60 = vpop.permute.xlu0 %2280 }
 0x775   :  { %v2279_v5 = vpop.permute.xlu1 %2278 }
 0x776   :  { %v2315_v45 = vpop.permute.xlu0 %2314  ;;  %v2286_v15 = vsel %vm782_vm6, %v2277_v48, %v2279_v5  ;;  %v2285_v44 = vsel %vm782_vm6, %v2279_v5, %v2281_v60  ;;  %v4166_v5 = vld [vmem:[%s6750_s0 + $0x14] sm:$0xf] }
 0x777   :  { %v2311_v21 = vmul.f32 %v2297_v20, %v2286_v15  ;;  %v2312_v7 = vmul.f32 %v2301_v8, %v2285_v44 }
 0x779   :  { %v2283_v51 = vpop.permute.xlu1 %2282 }
 0x77a   :  { %v2319_v12 = vpop.permute.xlu0 %2318  ;;  %v2284_v58 = vsel %vm782_vm6, %v2281_v60, %v2283_v51  ;;  %v2287_v28 = vsel %vm782_vm6, %v2283_v51, %v2277_v48  ;;  %v2407_v60 = vrot.slane %v4165_v10, %v4874_v33  ;;  %v2419_v51 = vrot.slane %v4165_v10, %v4909_v63 }
 0x77b   :  { %v2310_v42 = vmul.f32 %v2293_v9, %v2287_v28  ;;  %v2313_v6 = vmul.f32 %v2305_v57, %v2284_v58  ;;  %v2445_v57 = vrot.slane %v4166_v5, %v4874_v33 }
 0x77d   :  { %v2317_v37 = vpop.permute.xlu1 %2316 }
 0x77e   :  { %v2324_v49 = vsel %vm821_vm7, %v2315_v45, %v2317_v37  ;;  %v2353_v38 = vpop.permute.xlu0 %2352  ;;  %v2323_v56 = vsel %vm821_vm7, %v2317_v37, %v2319_v12 }
 0x77f   :  { %v2349_v19 = vmul.f32 %v2335_v11, %v2324_v49  ;;  %v2350_v53 = vmul.f32 %v2339_v25, %v2323_v56  ;;  %v2449_v56 = vrot.slane %v4166_v5, %v4906_v62 }
 0x781   :  { %v2321_v46 = vpop.permute.xlu1 %2320  ;;  %v2581_v14 = vpack.c.bf16 %v2349_v19, %v2311_v21  ;;  %v2582_v59 = vpack.c.bf16 %v2350_v53, %v2312_v7 }
 0x782   :  { %v2322_v18 = vsel %vm821_vm7, %v2319_v12, %v2321_v46  ;;  %v2325_v43 = vsel %vm821_vm7, %v2321_v46, %v2315_v45  ;;  %v2357_v40 = vpop.permute.xlu0 %2356  ;;  %v2377_v12 = vrot.slane %v4164_v13, %v4879_v35 }
 0x783   :  { %v2348_v1 = vmul.f32 %v2331_v17, %v2325_v43  ;;  %v2351_v55 = vmul.f32 %v2343_v0, %v2322_v18  ;;  %2622 = vmatprep.subr.bf16.mxu0 %v2581_v14 }
 0x785   :  { %v2580_v26 = vpack.c.bf16 %v2348_v1, %v2310_v42  ;;  %v2355_v36 = vpop.permute.xlu1 %2354  ;;  %v2583_v27 = vpack.c.bf16 %v2351_v55, %v2313_v6  ;;  %v2457_v1 = vrot.slane %v4166_v5, %v4909_v63 }
 0x786   :  { %v2391_v22 = vpop.permute.xlu0 %2390  ;;  %v2362_v39 = vsel %vm861_vm9, %v2353_v38, %v2355_v36  ;;  %v2361_v15 = vsel %vm861_vm9, %v2355_v36, %v2357_v40 }
 0x787   :  { %2623 = vmatpush1.bf16.msra.mxu0 %v2580_v26  ;;  %2663 = vmatprep.subr.bf16.mxu1 %v2583_v27  ;;  %v2387_v45 = vmul.f32 %v2373_v3, %v2362_v39  ;;  %v2388_v58 = vmul.f32 %v2377_v12, %v2361_v15  ;;  %v4168_v3 = vld [vmem:[%s6750_s0 + $0x1c] sm:$0xf] }
 0x788   :  { %2664 = vmatpush1.bf16.msra.mxu1 %v2582_v59 }
 0x789   :  { %v2359_v54 = vpop.permute.xlu1 %2358 }
 0x78a   :  { %v2395_v32 = vpop.permute.xlu0 %2394  ;;  %v2360_v20 = vsel %vm861_vm9, %v2357_v40, %v2359_v54  ;;  %v2363_v11 = vsel %vm861_vm9, %v2359_v54, %v2353_v38  ;;  %v2453_v40 = vrot.slane %v4166_v5, %v4879_v35 }
 0x78b   :  { %v2386_v19 = vmul.f32 %v2369_v47, %v2363_v11  ;;  %v2389_v0 = vmul.f32 %v2381_v31, %v2360_v20 }
 0x78d   :  { %v2393_v61 = vpop.permute.xlu1 %2392 }
 0x78e   :  { %v2400_v24 = vsel %vm901_vm10, %v2391_v22, %v2393_v61  ;;  %v2429_v48 = vpop.permute.xlu0 %2428  ;;  %v2399_v52 = vsel %vm901_vm10, %v2393_v61, %v2395_v32  ;;  %v2521_v61 = vrot.slane %v4168_v3, %v4874_v33 }
 0x78f   :  { %v2425_v50 = vmul.f32 %v2411_v29, %v2400_v24  ;;  %v2426_v25 = vmul.f32 %v2415_v16, %v2399_v52  ;;  %v2529_v52 = vrot.slane %v4168_v3, %v4879_v35 }
 0x791   :  { %v2397_v9 = vpop.permute.xlu1 %2396  ;;  %v2585_v37 = vpack.c.bf16 %v2425_v50, %v2387_v45  ;;  %v2586_v14 = vpack.c.bf16 %v2426_v25, %v2388_v58  ;;  %v2533_v50 = vrot.slane %v4168_v3, %v4909_v63 }
 0x792   :  { %v2398_v49 = vsel %vm901_vm10, %v2395_v32, %v2397_v9  ;;  %v2401_v17 = vsel %vm901_vm10, %v2397_v9, %v2391_v22  ;;  %v2433_v21 = vpop.permute.xlu0 %2432  ;;  %v4169_v9 = vld [vmem:[%s6750_s0 + $0x20] sm:$0xf] }
 0x793   :  { %v2424_v38 = vmul.f32 %v2407_v60, %v2401_v17  ;;  %v2427_v8 = vmul.f32 %v2419_v51, %v2398_v49  ;;  %2624 = vmatprep.subr.bf16.mxu0 %v2585_v37 }
 0x795   :  { %v2584_v28 = vpack.c.bf16 %v2424_v38, %v2386_v19  ;;  %v2431_v44 = vpop.permute.xlu1 %2430  ;;  %v2587_v46 = vpack.c.bf16 %v2427_v8, %v2389_v0  ;;  %v2559_v19 = vrot.slane %v4169_v9, %v4874_v33  ;;  %v2563_v0 = vrot.slane %v4169_v9, %v4906_v62 }
 0x796   :  { %v2437_v53 = vsel %vm941_vm11, %v2431_v44, %v2433_v21  ;;  %v2438_v18 = vsel %vm941_vm11, %v2429_v48, %v2431_v44  ;;  %v2467_v43 = vpop.permute.xlu0 %2466 }
 0x797   :  { %v2462_v42 = vmul.f32 %v2445_v57, %v2438_v18  ;;  %v2463_v6 = vmul.f32 %v2449_v56, %v2437_v53  ;;  %2625 = vmatpush1.bf16.msra.mxu0 %v2584_v28  ;;  %2665 = vmatprep.subr.bf16.mxu1 %v2587_v46 }
 0x798   :  { %2666 = vmatpush1.bf16.msra.mxu1 %v2586_v14 }
 0x799   :  { %v2588_v55 = vpack.c.bf16 %v2462_v42, %v5900_v41  ;;  %v2435_v7 = vpop.permute.xlu1 %2434  ;;  %v2589_v26 = vpack.c.bf16 %v2463_v6, %v5908_v4  ;;  %v4167_v4 = vld [vmem:[%s6750_s0 + $0x18] sm:$0xf]  ;;  %v2567_v6 = vrot.slane %v4169_v9, %v4879_v35 }
 0x79a   :  { %v2436_v36 = vsel %vm941_vm11, %v2433_v21, %v2435_v7  ;;  %v2439_v27 = vsel %vm941_vm11, %v2435_v7, %v2429_v48  ;;  %v2471_v59 = vpop.permute.xlu0 %2470  ;;  %v2483_v47 = vrot.slane %v4167_v4, %v4874_v33  ;;  %v2491_v24 = vrot.slane %v4167_v4, %v4879_v35 }
 0x79b   :  { %v2464_v22 = vmul.f32 %v2453_v40, %v2436_v36  ;;  %v2465_v13 = vmul.f32 %v2457_v1, %v2439_v27  ;;  %2626 = vmatprep.subr.bf16.mxu0 %v2589_v26  ;;  %v2495_v48 = vrot.slane %v4167_v4, %v4909_v63  ;;  %v2571_v1 = vrot.slane %v4169_v9, %v4909_v63 }
 0x79c   :  { %2627 = vmatpush1.bf16.msra.mxu0 %v2588_v55 }
 0x79d   :  { %v2590_v10 = vpack.c.bf16 %v2464_v22, %v5904_v2  ;;  %v2469_v54 = vpop.permute.xlu1 %2468  ;;  %v2591_v32 = vpack.c.bf16 %v2465_v13, %v5914_v30  ;;  %v2487_v2 = vrot.slane %v4167_v4, %v4906_v62  ;;  %v2525_v30 = vrot.slane %v4168_v3, %v4906_v62 }
 0x79e   :  { %v2505_v41 = vpop.permute.xlu0 %2504  ;;  %v2475_v31 = vsel %vm981_vm12, %v2469_v54, %v2471_v59  ;;  %v2476_v16 = vsel %vm981_vm12, %v2467_v43, %v2469_v54 }
 0x79f   :  { %2667 = vmatprep.subr.bf16.mxu1 %v2591_v32  ;;  %v2500_v51 = vmul.f32 %v2483_v47, %v2476_v16  ;;  %v2501_v12 = vmul.f32 %v2487_v2, %v2475_v31 }
 0x7a0   :  { %2668 = vmatpush1.bf16.msra.mxu1 %v2590_v10  ;;  %v2600_v10 = vld [vmem:[%s6759_s9] sm:$0x3] }
 0x7a1   :  { %v2473_v29 = vpop.permute.xlu1 %2472 }
 0x7a2   :  { %v2509_v39 = vpop.permute.xlu0 %2508  ;;  %v2474_v37 = vsel %vm981_vm12, %v2471_v59, %v2473_v29  ;;  %v2477_v57 = vsel %vm981_vm12, %v2473_v29, %v2467_v43 }
 0x7a3   :  { %v2502_v38 = vmul.f32 %v2491_v24, %v2474_v37  ;;  %v2503_v8 = vmul.f32 %v2495_v48, %v2477_v57 }
 0x7a5   :  { %v2507_v60 = vpop.permute.xlu1 %2506 }
 0x7a6   :  { %v2513_v5 = vsel %vm1021_vm13, %v2507_v60, %v2509_v39  ;;  %v2514_v45 = vsel %vm1021_vm13, %v2505_v41, %v2507_v60  ;;  %v2543_v15 = vpop.permute.xlu0 %2542 }
 0x7a7   :  { %v2538_v20 = vmul.f32 %v2521_v61, %v2514_v45  ;;  %v2539_v11 = vmul.f32 %v2525_v30, %v2513_v5 }
 0x7a9   :  { %v2592_v25 = vpack.c.bf16 %v2538_v20, %v2500_v51  ;;  %v2511_v49 = vpop.permute.xlu1 %2510  ;;  %v2593_v17 = vpack.c.bf16 %v2539_v11, %v2501_v12 }
 0x7aa   :  { %v2512_v21 = vsel %vm1021_vm13, %v2509_v39, %v2511_v49  ;;  %v2515_v56 = vsel %vm1021_vm13, %v2511_v49, %v2505_v41  ;;  %v2547_v46 = vpop.permute.xlu0 %2546 }
 0x7ab   :  { %v2540_v58 = vmul.f32 %v2529_v52, %v2512_v21  ;;  %v2541_v28 = vmul.f32 %v2533_v50, %v2515_v56  ;;  %2628 = vmatprep.subr.bf16.mxu0 %v2593_v17 }
 0x7ac   :  { %2629 = vmatpush1.bf16.msra.mxu0 %v2592_v25 }
 0x7ad   :  { %v2594_v44 = vpack.c.bf16 %v2540_v58, %v2502_v38  ;;  %v2545_v14 = vpop.permute.xlu1 %2544  ;;  %v2595_v53 = vpack.c.bf16 %v2541_v28, %v2503_v8  ;;  %v3065_v38 = vld [vmem:[%s6751_s1] sm:$0xf] }
 0x7ae   :  { %v2551_v18 = vsel %vm1061_vm14, %v2545_v14, %v2547_v46  ;;  %v2552_v43 = vsel %vm1061_vm14, %v2543_v15, %v2545_v14  ;;  %v2752_v28 = vld [vmem:[%s6750_s0] sm:$0xf] }
 0x7af   :  { %v2576_v40 = vmul.f32 %v2559_v19, %v2552_v43  ;;  %v2577_v42 = vmul.f32 %v2563_v0, %v2551_v18  ;;  %2669 = vmatprep.subr.bf16.mxu1 %v2595_v53  ;;  %v4509_v19 = vmov 7   ;;  %v4510_v0 = vmov 8  }
 0x7b0   :  { %2670 = vmatpush1.bf16.msra.mxu1 %v2594_v44  ;;  %4451 = vset.pattern.permute.xlu1 %v4509_v19  ;;  %v2761_v53 = vrot.slane %v2752_v28, %v4906_v62 }
 0x7b1   :  { %v2596_v55 = vpack.c.bf16 %v2576_v40, %v2576_v40  ;;  %v2597_v7 = vpack.c.bf16 %v2577_v42, %v2577_v42  ;;  %v2549_v26 = vpop.permute.xlu1 %2548  ;;  %4452 = vset.pattern.permute.xlu0 %v4510_v0 }
 0x7b2   :  { %v2550_v36 = vsel %vm1061_vm14, %v2547_v46, %v2549_v26  ;;  %v2553_v27 = vsel %vm1061_vm14, %v2549_v26, %v2543_v15  ;;  %v4174_v46 = vld [vmem:[%s6750_s0 + $0x4] sm:$0xf] }
 0x7b3   :  { %v2578_v59 = vmul.f32 %v2567_v6, %v2550_v36  ;;  %v2579_v22 = vmul.f32 %v2571_v1, %v2553_v27  ;;  %4170 = vmatprep.subr.msk.bf16.mxu0 %vm75_vm0, %v2597_v7  ;;  %v2611_v13 = vsel %vm75_vm0, %v2596_v55, 0  ;;  %v2799_v18 = vrot.slane %v4174_v46, %v4906_v62 }
 0x7b4   :  { %2631 = vmatpush1.bf16.msra.mxu0 %v2611_v13  ;;  %v2757_v6 = vrot.slane %v2752_v28, %v4874_v33  ;;  %v2769_v1 = vrot.slane %v2752_v28, %v4909_v63  ;;  %v2803_v7 = vrot.slane %v4174_v46, %v4879_v35  ;;  %v2795_v27 = vrot.slane %v4174_v46, %v4874_v33 }
 0x7b5   :  { %v2598_v54 = vpack.c.bf16 %v2578_v59, %v2578_v59  ;;  %v2599_v32 = vpack.c.bf16 %v2579_v22, %v2579_v22  ;;  %v2807_v59 = vrot.slane %v4174_v46, %v4909_v63  ;;  %v2765_v22 = vrot.slane %v2752_v28, %v4879_v35 }
 0x7b7   :  { %4171 = vmatmul.mubr.msk.bf16.vlgmr.msra.gmra.mrb[24].mxu0 %vm1119_vm1, %v2600_v10  ;;  %4172 = vmatprep.subr.msk.bf16.mxu1 %vm75_vm0, %v2599_v32  ;;  %v2617_v41 = vsel %vm75_vm0, %v2598_v54, 0 }
 0x7b8   :  { %2672 = vmatpush1.bf16.msra.mxu1 %v2617_v41  ;;  %3118 = vmatprep.mubr.bf16.mxu0 %v6798_v23 }
 0x7bb   :  { %4173 = vmatmul.mubr.msk.bf16.vlgmr.msra.gmra.mrb[24].mxu1 %vm1119_vm1, %v2600_v10  ;;  %v2605_v4 = vpop.permute.xlu0 %2604 }
 0x7bc   :  { %3159 = vmatprep.mubr.bf16.mxu1 %v6798_v23 }
 0x7c2   :  { %v2710_v29 = vpop.permute.xlu1 %2709 }
 0x88a   :  { %v2656_v3 = vpop.f32.mrb[24].mxu0 }
 0x88b   :  { %v2657_v39 = vadd.f32 %v2656_v3, %v2605_v4  ;;  %v2658_v47 = vpop.f32.mrb[25].mxu0 }
 0x88c   :  { %v2659_v2 = vadd.f32 %v2658_v47, %v2605_v4  ;;  %v2660_v61 = vpop.f32.mrb[26].mxu0 }
 0x88d   :  { %vm2704_vm8 = vcmp.ge.f32.partialorder %v2657_v39, 0.0  ;;  %v2712_v30 = vmul.f32 %v2710_v29, %v2657_v39  ;;  %v2661_v31 = vpop.f32.mrb[27].mxu0 }
 0x88e   :  { %vm2705_vm15 = vcmp.ge.f32.partialorder %v2659_v2, 0.0  ;;  %v2713_v16 = vmul.f32 %v2710_v29, %v2659_v2  ;;  %v2697_v24 = vpop.f32.mrb[24].mxu1 }
 0x88f   :  { %v2716_v48 = vsel %vm2704_vm8, %v2657_v39, %v2712_v30  ;;  %v2698_v60 = vadd.f32 %v2697_v24, %v2605_v4  ;;  %v2699_v5 = vpop.f32.mrb[25].mxu1 }
 0x890   :  { %v2717_v45 = vsel %vm2705_vm15, %v2659_v2, %v2713_v16  ;;  %v2724_v52 = vrot.slane %v2716_v48, 4  ;;  %v2700_v50 = vadd.f32 %v2699_v5, %v2605_v4  ;;  %v2701_v51 = vpop.f32.mrb[26].mxu1 }
 0x891   :  { %v2725_v12 = vrot.slane %v2717_v45, 4  ;;  %vm2706_vm2 = vcmp.ge.f32.partialorder %v2698_v60, 0.0  ;;  %v2714_v20 = vmul.f32 %v2710_v29, %v2698_v60  ;;  %v2702_v11 = vpop.f32.mrb[27].mxu1  ;;  %v4176_v51 = vld [vmem:[%s6750_s0 + $0xc] sm:$0xf] }
 0x892   :  { %2732 = vst [vmem:[#allocation2] sm:$0xf0] %v2724_v52  ;;  %vm2707_vm3 = vcmp.ge.f32.partialorder %v2700_v50, 0.0  ;;  %v2715_v15 = vmul.f32 %v2710_v29, %v2700_v50  ;;  %v4175_v52 = vld [vmem:[%s6750_s0 + $0x8] sm:$0xf]  ;;  %v2875_v11 = vrot.slane %v4176_v51, %v4906_v62  ;;  %v2883_v28 = vrot.slane %v4176_v51, %v4909_v63 }
 0x893   :  { %2733 = vst [vmem:[#allocation2 + $0x8] sm:$0xf0] %v2725_v12  ;;  %v2718_v9 = vsel %vm2706_vm2, %v2698_v60, %v2714_v20  ;;  %v2837_v20 = vrot.slane %v4175_v52, %v4906_v62 }
 0x894   :  { %v2726_v37 = vrot.slane %v2718_v9, 4  ;;  %v2719_v57 = vsel %vm2707_vm3, %v2700_v50, %v2715_v15 }
 0x895   :  { %v2727_v25 = vrot.slane %v2719_v57, 4  ;;  %v2833_v57 = vrot.slane %v4175_v52, %v4874_v33 }
 0x896   :  { %2734 = vst [vmem:[#allocation2 + $0x10] sm:$0xf0] %v2726_v37 }
 0x897   :  { %2735 = vst [vmem:[#allocation2 + $0x18] sm:$0xf0] %v2727_v25  ;;  %v2845_v25 = vrot.slane %v4175_v52, %v4909_v63 }
 0x899   :  { %v6110_v49 = vld [vmem:[#allocation2] sm:$0xff] }
 0x89a   :  { %2740 = vrot.lane.b32.xlu1 %v6110_v49, %s4495_s4  ;;  %v6114_v17 = vld [vmem:[#allocation2 + $0x8] sm:$0xff] }
 0x89b   :  { %2742 = vrot.lane.b32.xlu0 %v6114_v17, %s4495_s4 }
 0x89d   :  { %v6118_v21 = vld [vmem:[#allocation2 + $0x10] sm:$0xff] }
 0x89e   :  { %2744 = vrot.lane.b32.xlu1 %v6118_v21, %s4495_s4  ;;  %v6122_v56 = vld [vmem:[#allocation2 + $0x18] sm:$0xff] }
 0x89f   :  { %2746 = vrot.lane.b32.xlu0 %v6122_v56, %s4495_s4 }
 0x8a2   :  { %2778 = vrot.lane.b32.xlu1 %v6110_v49, %s4496_s14 }
 0x8a3   :  { %2780 = vrot.lane.b32.xlu0 %v6114_v17, %s4496_s14 }
 0x8a6   :  { %2782 = vrot.lane.b32.xlu1 %v6118_v21, %s4496_s14 }
 0x8a7   :  { %2784 = vrot.lane.b32.xlu0 %v6122_v56, %s4496_s14 }
 0x8aa   :  { %2816 = vrot.lane.b32.xlu1 %v6110_v49, %s4497_s18 }
 0x8ab   :  { %2818 = vrot.lane.b32.xlu0 %v6114_v17, %s4497_s18 }
 0x8ae   :  { %2820 = vrot.lane.b32.xlu1 %v6118_v21, %s4497_s18 }
 0x8af   :  { %2822 = vrot.lane.b32.xlu0 %v6122_v56, %s4497_s18 }
 0x8b2   :  { %2854 = vrot.lane.b32.xlu1 %v6110_v49, %s4498_s19 }
 0x8b3   :  { %2856 = vrot.lane.b32.xlu0 %v6114_v17, %s4498_s19 }
 0x8b6   :  { %2858 = vrot.lane.b32.xlu1 %v6118_v21, %s4498_s19 }
 0x8b7   :  { %2860 = vrot.lane.b32.xlu0 %v6122_v56, %s4498_s19 }
 0x8ba   :  { %2892 = vrot.lane.b32.xlu1 %v6110_v49, %s4499_s20 }
 0x8bb   :  { %2894 = vrot.lane.b32.xlu0 %v6114_v17, %s4499_s20 }
 0x8be   :  { %2896 = vrot.lane.b32.xlu1 %v6118_v21, %s4499_s20 }
 0x8bf   :  { %2898 = vrot.lane.b32.xlu0 %v6122_v56, %s4499_s20 }
 0x8c2   :  { %2930 = vrot.lane.b32.xlu1 %v6110_v49, %s4500_s21 }
 0x8c3   :  { %2932 = vrot.lane.b32.xlu0 %v6114_v17, %s4500_s21 }
 0x8c6   :  { %2934 = vrot.lane.b32.xlu1 %v6118_v21, %s4500_s21 }
 0x8c7   :  { %2936 = vrot.lane.b32.xlu0 %v6122_v56, %s4500_s21 }
 0x8ca   :  { %2968 = vrot.lane.b32.xlu1 %v6110_v49, %s4501_s2 }
 0x8cb   :  { %2970 = vrot.lane.b32.xlu0 %v6114_v17, %s4501_s2 }
 0x8ce   :  { %2972 = vrot.lane.b32.xlu1 %v6118_v21, %s4501_s2 }
 0x8cf   :  { %2974 = vrot.lane.b32.xlu0 %v6122_v56, %s4501_s2 }
 0x8d2   :  { %3006 = vrot.lane.b32.xlu1 %v6110_v49, %s4502_s22 }
 0x8d3   :  { %3008 = vrot.lane.b32.xlu0 %v6114_v17, %s4502_s22 }
 0x8d6   :  { %3010 = vrot.lane.b32.xlu1 %v6118_v21, %s4502_s22 }
 0x8d7   :  { %3012 = vrot.lane.b32.xlu0 %v6122_v56, %s4502_s22 }
 0x8da   :  { %3068 = vperm.xlu1 %4451, %v3065_v38  }
 0x8db   :  { %3173 = vperm.xlu0 %4452, %v3065_v38  }
 0x8de   :  { %4454 = vset.pattern.permute.xlu1 %v4510_v0  ;;  %v2879_v0 = vrot.slane %v4176_v51, %v4879_v35 }
 0x8df   :  { %4453 = vset.pattern.permute.xlu0 %v4509_v19 }
 0x90c   :  { %v2741_v8 = vpop.permute.xlu1 %2740 }
 0x90d   :  { %v2743_v58 = vpop.permute.xlu0 %2742 }
 0x90e   :  { %v2750_v43 = vsel %vm782_vm6, %v2741_v8, %v2743_v58 }
 0x90f   :  { %v2775_v26 = vmul.f32 %v2761_v53, %v2750_v43 }
 0x910   :  { %v2745_v44 = vpop.permute.xlu1 %2744 }
 0x911   :  { %v2747_v14 = vpop.permute.xlu0 %2746  ;;  %v2749_v32 = vsel %vm782_vm6, %v2743_v58, %v2745_v44  ;;  %v2871_v58 = vrot.slane %v4176_v51, %v4874_v33 }
 0x912   :  { %v2748_v13 = vsel %vm782_vm6, %v2745_v44, %v2747_v14  ;;  %v2751_v10 = vsel %vm782_vm6, %v2747_v14, %v2741_v8  ;;  %v2776_v16 = vmul.f32 %v2765_v22, %v2749_v32  ;;  %v2841_v44 = vrot.slane %v4175_v52, %v4879_v35 }
 0x913   :  { %v2774_v2 = vmul.f32 %v2757_v6, %v2751_v10  ;;  %v2777_v61 = vmul.f32 %v2769_v1, %v2748_v13 }
 0x914   :  { %v2779_v40 = vpop.permute.xlu1 %2778 }
 0x915   :  { %v2781_v42 = vpop.permute.xlu0 %2780 }
 0x916   :  { %v2788_v55 = vsel %vm821_vm7, %v2779_v40, %v2781_v42 }
 0x917   :  { %v2813_v36 = vmul.f32 %v2799_v18, %v2788_v55 }
 0x918   :  { %v2783_v54 = vpop.permute.xlu1 %2782 }
 0x919   :  { %v2787_v41 = vsel %vm821_vm7, %v2781_v42, %v2783_v54  ;;  %v2785_v4 = vpop.permute.xlu0 %2784  ;;  %v3045_v3 = vpack.c.bf16 %v2813_v36, %v2775_v26 }
 0x91a   :  { %v2814_v29 = vmul.f32 %v2803_v7, %v2787_v41  ;;  %v2786_v39 = vsel %vm821_vm7, %v2783_v54, %v2785_v4  ;;  %v2789_v47 = vsel %vm821_vm7, %v2785_v4, %v2779_v40  ;;  %v4177_v7 = vld [vmem:[%s6750_s0 + $0x14] sm:$0xf] }
 0x91b   :  { %v2812_v30 = vmul.f32 %v2795_v27, %v2789_v47  ;;  %v2815_v31 = vmul.f32 %v2807_v59, %v2786_v39  ;;  %3086 = vmatprep.subr.bf16.mxu0 %v3045_v3  ;;  %v2909_v54 = vrot.slane %v4177_v7, %v4874_v33  ;;  %v2917_v39 = vrot.slane %v4177_v7, %v4879_v35 }
 0x91c   :  { %v2817_v24 = vpop.permute.xlu1 %2816  ;;  %v3046_v45 = vpack.c.bf16 %v2814_v29, %v2776_v16  ;;  %v2913_v29 = vrot.slane %v4177_v7, %v4906_v62  ;;  %v2921_v47 = vrot.slane %v4177_v7, %v4909_v63 }
 0x91d   :  { %v3044_v48 = vpack.c.bf16 %v2812_v30, %v2774_v2  ;;  %v2819_v60 = vpop.permute.xlu0 %2818  ;;  %v3047_v5 = vpack.c.bf16 %v2815_v31, %v2777_v61 }
 0x91e   :  { %v2826_v15 = vsel %vm861_vm9, %v2817_v24, %v2819_v60 }
 0x91f   :  { %3087 = vmatpush1.bf16.msra.mxu0 %v3044_v48  ;;  %3127 = vmatprep.subr.bf16.mxu1 %v3047_v5  ;;  %v2851_v38 = vmul.f32 %v2837_v20, %v2826_v15 }
 0x920   :  { %3128 = vmatpush1.bf16.msra.mxu1 %v3046_v45  ;;  %v2821_v50 = vpop.permute.xlu1 %2820 }
 0x921   :  { %v2823_v12 = vpop.permute.xlu0 %2822  ;;  %v2825_v18 = vsel %vm861_vm9, %v2819_v60, %v2821_v50 }
 0x922   :  { %v2824_v46 = vsel %vm861_vm9, %v2821_v50, %v2823_v12  ;;  %v2827_v14 = vsel %vm861_vm9, %v2823_v12, %v2817_v24  ;;  %v2852_v22 = vmul.f32 %v2841_v44, %v2825_v18 }
 0x923   :  { %v2850_v26 = vmul.f32 %v2833_v57, %v2827_v14  ;;  %v2853_v36 = vmul.f32 %v2845_v25, %v2824_v46 }
 0x924   :  { %v2855_v9 = vpop.permute.xlu1 %2854 }
 0x925   :  { %v2857_v37 = vpop.permute.xlu0 %2856 }
 0x926   :  { %v2864_v19 = vsel %vm901_vm10, %v2855_v9, %v2857_v37 }
 0x927   :  { %v2889_v8 = vmul.f32 %v2875_v11, %v2864_v19 }
 0x928   :  { %v2859_v53 = vpop.permute.xlu1 %2858 }
 0x929   :  { %v2863_v43 = vsel %vm901_vm10, %v2857_v37, %v2859_v53  ;;  %v2861_v40 = vpop.permute.xlu0 %2860  ;;  %v3049_v42 = vpack.c.bf16 %v2889_v8, %v2851_v38  ;;  %v4180_v8 = vld [vmem:[%s6750_s0 + $0x20] sm:$0xf] }
 0x92a   :  { %v2890_v6 = vmul.f32 %v2879_v0, %v2863_v43  ;;  %v2862_v1 = vsel %vm901_vm10, %v2859_v53, %v2861_v40  ;;  %v2865_v55 = vsel %vm901_vm10, %v2861_v40, %v2855_v9  ;;  %v4178_v9 = vld [vmem:[%s6750_s0 + $0x18] sm:$0xf] }
 0x92b   :  { %v2888_v27 = vmul.f32 %v2871_v58, %v2865_v55  ;;  %v2891_v59 = vmul.f32 %v2883_v28, %v2862_v1  ;;  %3088 = vmatprep.subr.bf16.mxu0 %v3049_v42  ;;  %v2951_v37 = vrot.slane %v4178_v9, %v4906_v62  ;;  %v2955_v19 = vrot.slane %v4178_v9, %v4879_v35 }
 0x92c   :  { %v2893_v13 = vpop.permute.xlu1 %2892  ;;  %v3050_v4 = vpack.c.bf16 %v2890_v6, %v2852_v22  ;;  %v2959_v28 = vrot.slane %v4178_v9, %v4909_v63  ;;  %v3023_v1 = vrot.slane %v4180_v8, %v4874_v33 }
 0x92d   :  { %v3048_v10 = vpack.c.bf16 %v2888_v27, %v2850_v26  ;;  %v2895_v32 = vpop.permute.xlu0 %2894  ;;  %v3051_v41 = vpack.c.bf16 %v2891_v59, %v2853_v36 }
 0x92e   :  { %v2902_v3 = vsel %vm941_vm11, %v2893_v13, %v2895_v32 }
 0x92f   :  { %3089 = vmatpush1.bf16.msra.mxu0 %v3048_v10  ;;  %3129 = vmatprep.subr.bf16.mxu1 %v3051_v41  ;;  %v2926_v61 = vmul.f32 %v2909_v54, %v2902_v3 }
 0x930   :  { %3130 = vmatpush1.bf16.msra.mxu1 %v3050_v4  ;;  %v2897_v2 = vpop.permute.xlu1 %2896 }
 0x931   :  { %v2901_v30 = vsel %vm941_vm11, %v2895_v32, %v2897_v2  ;;  %v2899_v31 = vpop.permute.xlu0 %2898  ;;  %v3052_v50 = vpack.c.bf16 %v2926_v61, %v6110_v49  ;;  %v3035_v61 = vrot.slane %v4180_v8, %v4909_v63 }
 0x932   :  { %v2927_v16 = vmul.f32 %v2913_v29, %v2901_v30  ;;  %v2900_v24 = vsel %vm941_vm11, %v2897_v2, %v2899_v31  ;;  %v2903_v48 = vsel %vm941_vm11, %v2899_v31, %v2893_v13  ;;  %v3031_v2 = vrot.slane %v4180_v8, %v4879_v35 }
 0x933   :  { %v2928_v60 = vmul.f32 %v2917_v39, %v2900_v24  ;;  %v2929_v5 = vmul.f32 %v2921_v47, %v2903_v48  ;;  %v3027_v39 = vrot.slane %v4180_v8, %v4906_v62 }
 0x934   :  { %v2931_v45 = vpop.permute.xlu1 %2930  ;;  %v3053_v52 = vpack.c.bf16 %v2927_v16, %v6114_v17  ;;  %v4179_v17 = vld [vmem:[%s6750_s0 + $0x1c] sm:$0xf] }
 0x935   :  { %v3054_v51 = vpack.c.bf16 %v2928_v60, %v6118_v21  ;;  %v2933_v12 = vpop.permute.xlu0 %2932  ;;  %v3055_v20 = vpack.c.bf16 %v2929_v5, %v6122_v56  ;;  %v2947_v21 = vrot.slane %v4178_v9, %v4874_v33  ;;  %v2985_v56 = vrot.slane %v4179_v17, %v4874_v33 }
 0x936   :  { %3090 = vmatprep.subr.bf16.mxu0 %v3053_v52  ;;  %v2940_v25 = vsel %vm981_vm12, %v2931_v45, %v2933_v12  ;;  %v2989_v38 = vrot.slane %v4179_v17, %v4906_v62  ;;  %v2993_v44 = vrot.slane %v4179_v17, %v4879_v35  ;;  %v2997_v46 = vrot.slane %v4179_v17, %v4909_v63 }
 0x937   :  { %3091 = vmatpush1.bf16.msra.mxu0 %v3052_v50  ;;  %3131 = vmatprep.subr.bf16.mxu1 %v3055_v20  ;;  %v2964_v43 = vmul.f32 %v2947_v21, %v2940_v25 }
 0x938   :  { %3132 = vmatpush1.bf16.msra.mxu1 %v3054_v51  ;;  %v2935_v11 = vpop.permute.xlu1 %2934 }
 0x939   :  { %v2937_v15 = vpop.permute.xlu0 %2936  ;;  %v2939_v58 = vsel %vm981_vm12, %v2933_v12, %v2935_v11 }
 0x93a   :  { %v2938_v14 = vsel %vm981_vm12, %v2935_v11, %v2937_v15  ;;  %v2941_v53 = vsel %vm981_vm12, %v2937_v15, %v2931_v45  ;;  %v2965_v55 = vmul.f32 %v2951_v37, %v2939_v58  ;;  %v3064_v15 = vld [vmem:[%s6760_s10] sm:$0x3] }
 0x93b   :  { %v2966_v27 = vmul.f32 %v2955_v19, %v2938_v14  ;;  %v2967_v59 = vmul.f32 %v2959_v28, %v2941_v53 }
 0x93c   :  { %v2969_v49 = vpop.permute.xlu1 %2968 }
 0x93d   :  { %v2971_v57 = vpop.permute.xlu0 %2970 }
 0x93e   :  { %v2978_v0 = vsel %vm1021_vm13, %v2969_v49, %v2971_v57 }
 0x93f   :  { %v3002_v40 = vmul.f32 %v2985_v56, %v2978_v0 }
 0x940   :  { %v2973_v18 = vpop.permute.xlu1 %2972 }
 0x941   :  { %v2977_v42 = vsel %vm1021_vm13, %v2971_v57, %v2973_v18  ;;  %v2975_v6 = vpop.permute.xlu0 %2974  ;;  %v3056_v32 = vpack.c.bf16 %v3002_v40, %v2964_v43 }
 0x942   :  { %v3003_v7 = vmul.f32 %v2989_v38, %v2977_v42  ;;  %v2976_v26 = vsel %vm1021_vm13, %v2973_v18, %v2975_v6  ;;  %v2979_v36 = vsel %vm1021_vm13, %v2975_v6, %v2969_v49 }
 0x943   :  { %v3004_v22 = vmul.f32 %v2993_v44, %v2976_v26  ;;  %v3005_v13 = vmul.f32 %v2997_v46, %v2979_v36  ;;  %v3517_v26 = vld [vmem:[%s6751_s1 + $0x4] sm:$0xf] }
 0x944   :  { %v3007_v10 = vpop.permute.xlu1 %3006  ;;  %v3057_v54 = vpack.c.bf16 %v3003_v7, %v2965_v55 }
 0x945   :  { %v3058_v41 = vpack.c.bf16 %v3004_v22, %v2966_v27  ;;  %v3009_v4 = vpop.permute.xlu0 %3008  ;;  %v3059_v3 = vpack.c.bf16 %v3005_v13, %v2967_v59  ;;  %v3204_v13 = vld [vmem:[%s6750_s0] sm:$0xf] }
 0x946   :  { %v3016_v29 = vsel %vm1061_vm14, %v3007_v10, %v3009_v4  ;;  %3092 = vmatprep.subr.bf16.mxu0 %v3057_v54 }
 0x947   :  { %v3040_v47 = vmul.f32 %v3023_v1, %v3016_v29  ;;  %3093 = vmatpush1.bf16.msra.mxu0 %v3056_v32  ;;  %3133 = vmatprep.subr.bf16.mxu1 %v3059_v3  ;;  %v3209_v29 = vrot.slane %v3204_v13, %v4874_v33 }
 0x948   :  { %3134 = vmatpush1.bf16.msra.mxu1 %v3058_v41  ;;  %v3011_v30 = vpop.permute.xlu1 %3010  ;;  %v3213_v41 = vrot.slane %v3204_v13, %v4906_v62 }
 0x949   :  { %v3015_v31 = vsel %vm1061_vm14, %v3009_v4, %v3011_v30  ;;  %v3013_v16 = vpop.permute.xlu0 %3012  ;;  %v3060_v24 = vpack.c.bf16 %v3040_v47, %v3040_v47  ;;  %v3221_v47 = vrot.slane %v3204_v13, %v4909_v63 }
 0x94a   :  { %v3041_v48 = vmul.f32 %v3027_v39, %v3015_v31  ;;  %v3014_v60 = vsel %vm1061_vm14, %v3011_v30, %v3013_v16  ;;  %v3017_v5 = vsel %vm1061_vm14, %v3013_v16, %v3007_v10  ;;  %v4185_v10 = vld [vmem:[%s6750_s0 + $0x4] sm:$0xf] }
 0x94b   :  { %v3042_v45 = vmul.f32 %v3031_v2, %v3014_v60  ;;  %v3043_v52 = vmul.f32 %v3035_v61, %v3017_v5  ;;  %v3075_v20 = vsel %vm75_vm0, %v3060_v24, 0  ;;  %v3251_v4 = vrot.slane %v4185_v10, %v4906_v62 }
 0x94c   :  { %v3061_v50 = vpack.c.bf16 %v3041_v48, %v3041_v48  ;;  %v3255_v2 = vrot.slane %v4185_v10, %v4879_v35  ;;  %v3247_v31 = vrot.slane %v4185_v10, %v4874_v33  ;;  %v3259_v60 = vrot.slane %v4185_v10, %v4909_v63 }
 0x94d   :  { %v3062_v51 = vpack.c.bf16 %v3042_v45, %v3042_v45  ;;  %v3063_v12 = vpack.c.bf16 %v3043_v52, %v3043_v52  ;;  %v3217_v5 = vrot.slane %v3204_v13, %v4879_v35 }
 0x94e   :  { %4181 = vmatprep.subr.msk.bf16.mxu0 %vm75_vm0, %v3061_v50 }
 0x94f   :  { %3095 = vmatpush1.bf16.msra.mxu0 %v3075_v20  ;;  %4183 = vmatprep.subr.msk.bf16.mxu1 %vm75_vm0, %v3063_v12  ;;  %v3081_v11 = vsel %vm75_vm0, %v3062_v51, 0 }
 0x950   :  { %3136 = vmatpush1.bf16.msra.mxu1 %v3081_v11 }
 0x952   :  { %4182 = vmatmul.mubr.msk.bf16.vlgmr.msra.gmra.mrb[28].mxu0 %vm1119_vm1, %v3064_v15 }
 0x953   :  { %4184 = vmatmul.mubr.msk.bf16.vlgmr.msra.gmra.mrb[28].mxu1 %vm1119_vm1, %v3064_v15  ;;  %3570 = vmatprep.mubr.bf16.mxu0 %v6798_v23 }
 0x954   :  { %3611 = vmatprep.mubr.bf16.mxu1 %v6798_v23 }
 0x959   :  { %v3069_v9 = vpop.permute.xlu1 %3068 }
 0x95a   :  { %v3174_v49 = vpop.permute.xlu0 %3173 }
 0xa25   :  { %v3120_v17 = vpop.f32.mrb[28].mxu0 }
 0xa26   :  { %v3121_v21 = vadd.f32 %v3120_v17, %v3069_v9  ;;  %v3122_v37 = vpop.f32.mrb[29].mxu0  ;;  %v3161_v56 = vpop.f32.mrb[28].mxu1 }
 0xa27   :  { %v3123_v57 = vadd.f32 %v3122_v37, %v3069_v9  ;;  %v3162_v25 = vadd.f32 %v3161_v56, %v3069_v9  ;;  %v3163_v19 = vpop.f32.mrb[29].mxu1  ;;  %v3124_v0 = vpop.f32.mrb[30].mxu0 }
 0xa28   :  { %vm3168_vm4 = vcmp.ge.f32.partialorder %v3121_v21, 0.0  ;;  %v3176_v38 = vmul.f32 %v3174_v49, %v3121_v21  ;;  %v3164_v8 = vadd.f32 %v3163_v19, %v3069_v9  ;;  %v3125_v58 = vpop.f32.mrb[31].mxu0  ;;  %v3165_v28 = vpop.f32.mrb[30].mxu1 }
 0xa29   :  { %vm3169_vm5 = vcmp.ge.f32.partialorder %v3123_v57, 0.0  ;;  %vm3170_vm8 = vcmp.ge.f32.partialorder %v3162_v25, 0.0  ;;  %v3177_v44 = vmul.f32 %v3174_v49, %v3123_v57  ;;  %v3178_v46 = vmul.f32 %v3174_v49, %v3162_v25  ;;  %v3166_v14 = vpop.f32.mrb[31].mxu1  ;;  %v4187_v58 = vld [vmem:[%s6750_s0 + $0xc] sm:$0xf] }
 0xa2a   :  { %v3180_v53 = vsel %vm3168_vm4, %v3121_v21, %v3176_v38  ;;  %vm3171_vm15 = vcmp.ge.f32.partialorder %v3164_v8, 0.0  ;;  %v3179_v18 = vmul.f32 %v3174_v49, %v3164_v8  ;;  %v3327_v14 = vrot.slane %v4187_v58, %v4906_v62 }
 0xa2b   :  { %v3181_v43 = vsel %vm3169_vm5, %v3123_v57, %v3177_v44  ;;  %v3182_v40 = vsel %vm3170_vm8, %v3162_v25, %v3178_v46  ;;  %3184 = vst [vmem:[#allocation2] sm:$0xf] %v3180_v53 }
 0xa2c   :  { %3185 = vst [vmem:[#allocation2 + $0x8] sm:$0xf] %v3181_v43  ;;  %3186 = vst [vmem:[#allocation2 + $0x10] sm:$0xf] %v3182_v40  ;;  %v3183_v42 = vsel %vm3171_vm15, %v3164_v8, %v3179_v18  ;;  %v4186_v8 = vld [vmem:[%s6750_s0 + $0x8] sm:$0xf] }
 0xa2d   :  { %3187 = vst [vmem:[#allocation2 + $0x18] sm:$0xf] %v3183_v42  ;;  %v3289_v46 = vrot.slane %v4186_v8, %v4906_v62  ;;  %v3285_v18 = vrot.slane %v4186_v8, %v4874_v33  ;;  %v3297_v40 = vrot.slane %v4186_v8, %v4909_v63  ;;  %v3331_v42 = vrot.slane %v4187_v58, %v4879_v35 }
 0xa32   :  { %v6320_v6 = vld [vmem:[#allocation2] sm:$0xff] }
 0xa33   :  { %3192 = vrot.lane.b32.xlu1 %v6320_v6, %s4495_s4  ;;  %v6324_v1 = vld [vmem:[#allocation2 + $0x10] sm:$0xff]  ;;  %v6328_v55 = vld [vmem:[#allocation2 + $0x8] sm:$0xff] }
 0xa34   :  { %3196 = vrot.lane.b32.xlu0 %v6324_v1, %s4495_s4  ;;  %v6334_v7 = vld [vmem:[#allocation2 + $0x18] sm:$0xff] }
 0xa37   :  { %3194 = vrot.lane.b32.xlu1 %v6328_v55, %s4495_s4 }
 0xa38   :  { %3230 = vrot.lane.b32.xlu0 %v6320_v6, %s4496_s14 }
 0xa3b   :  { %3198 = vrot.lane.b32.xlu1 %v6334_v7, %s4495_s4 }
 0xa3c   :  { %3234 = vrot.lane.b32.xlu0 %v6324_v1, %s4496_s14 }
 0xa3f   :  { %3232 = vrot.lane.b32.xlu1 %v6328_v55, %s4496_s14 }
 0xa40   :  { %3268 = vrot.lane.b32.xlu0 %v6320_v6, %s4497_s18 }
 0xa43   :  { %3236 = vrot.lane.b32.xlu1 %v6334_v7, %s4496_s14 }
 0xa44   :  { %3272 = vrot.lane.b32.xlu0 %v6324_v1, %s4497_s18 }
 0xa47   :  { %3270 = vrot.lane.b32.xlu1 %v6328_v55, %s4497_s18 }
 0xa48   :  { %3306 = vrot.lane.b32.xlu0 %v6320_v6, %s4498_s19 }
 0xa4b   :  { %3274 = vrot.lane.b32.xlu1 %v6334_v7, %s4497_s18 }
 0xa4c   :  { %3310 = vrot.lane.b32.xlu0 %v6324_v1, %s4498_s19 }
 0xa4f   :  { %3308 = vrot.lane.b32.xlu1 %v6328_v55, %s4498_s19 }
 0xa50   :  { %3344 = vrot.lane.b32.xlu0 %v6320_v6, %s4499_s20 }
 0xa53   :  { %3312 = vrot.lane.b32.xlu1 %v6334_v7, %s4498_s19 }
 0xa54   :  { %3348 = vrot.lane.b32.xlu0 %v6324_v1, %s4499_s20 }
 0xa57   :  { %3346 = vrot.lane.b32.xlu1 %v6328_v55, %s4499_s20 }
 0xa58   :  { %3382 = vrot.lane.b32.xlu0 %v6320_v6, %s4500_s21 }
 0xa5b   :  { %3350 = vrot.lane.b32.xlu1 %v6334_v7, %s4499_s20 }
 0xa5c   :  { %3386 = vrot.lane.b32.xlu0 %v6324_v1, %s4500_s21 }
 0xa5f   :  { %3384 = vrot.lane.b32.xlu1 %v6328_v55, %s4500_s21 }
 0xa60   :  { %3420 = vrot.lane.b32.xlu0 %v6320_v6, %s4501_s2 }
 0xa63   :  { %3388 = vrot.lane.b32.xlu1 %v6334_v7, %s4500_s21 }
 0xa64   :  { %3424 = vrot.lane.b32.xlu0 %v6324_v1, %s4501_s2 }
 0xa67   :  { %3422 = vrot.lane.b32.xlu1 %v6328_v55, %s4501_s2 }
 0xa68   :  { %3458 = vrot.lane.b32.xlu0 %v6320_v6, %s4502_s22 }
 0xa6b   :  { %3426 = vrot.lane.b32.xlu1 %v6334_v7, %s4501_s2 }
 0xa6c   :  { %3462 = vrot.lane.b32.xlu0 %v6324_v1, %s4502_s22 }
 0xa6f   :  { %3460 = vrot.lane.b32.xlu1 %v6328_v55, %s4502_s22 }
 0xa70   :  { %3520 = vperm.xlu0 %4453, %v3517_v26  }
 0xa73   :  { %3464 = vrot.lane.b32.xlu1 %v6334_v7, %s4502_s22 }
 0xa77   :  { %3625 = vperm.xlu1 %4454, %v3517_v26  }
 0xaa5   :  { %v3193_v36 = vpop.permute.xlu1 %3192 }
 0xaa6   :  { %v3197_v27 = vpop.permute.xlu0 %3196 }
 0xaa9   :  { %v3195_v59 = vpop.permute.xlu1 %3194 }
 0xaaa   :  { %v3231_v22 = vpop.permute.xlu0 %3230  ;;  %v3202_v3 = vsel %vm782_vm6, %v3193_v36, %v3195_v59  ;;  %v3201_v50 = vsel %vm782_vm6, %v3195_v59, %v3197_v27  ;;  %v4188_v59 = vld [vmem:[%s6750_s0 + $0x14] sm:$0xf] }
 0xaab   :  { %v3227_v16 = vmul.f32 %v3213_v41, %v3202_v3  ;;  %v3228_v56 = vmul.f32 %v3217_v5, %v3201_v50 }
 0xaad   :  { %v3199_v54 = vpop.permute.xlu1 %3198 }
 0xaae   :  { %v3235_v32 = vpop.permute.xlu0 %3234  ;;  %v3200_v45 = vsel %vm782_vm6, %v3197_v27, %v3199_v54  ;;  %v3203_v52 = vsel %vm782_vm6, %v3199_v54, %v3193_v36  ;;  %v3323_v27 = vrot.slane %v4187_v58, %v4874_v33  ;;  %v3335_v54 = vrot.slane %v4187_v58, %v4909_v63 }
 0xaaf   :  { %v3226_v17 = vmul.f32 %v3209_v29, %v3203_v52  ;;  %v3229_v49 = vmul.f32 %v3221_v47, %v3200_v45  ;;  %v3361_v47 = vrot.slane %v4188_v59, %v4874_v33 }
 0xab1   :  { %v3233_v39 = vpop.permute.xlu1 %3232 }
 0xab2   :  { %v3240_v61 = vsel %vm821_vm7, %v3231_v22, %v3233_v39  ;;  %v3269_v30 = vpop.permute.xlu0 %3268  ;;  %v3239_v24 = vsel %vm821_vm7, %v3233_v39, %v3235_v32 }
 0xab3   :  { %v3265_v48 = vmul.f32 %v3251_v4, %v3240_v61  ;;  %v3266_v20 = vmul.f32 %v3255_v2, %v3239_v24  ;;  %v3365_v24 = vrot.slane %v4188_v59, %v4906_v62 }
 0xab5   :  { %v3237_v51 = vpop.permute.xlu1 %3236  ;;  %v3497_v12 = vpack.c.bf16 %v3265_v48, %v3227_v16  ;;  %v3498_v0 = vpack.c.bf16 %v3266_v20, %v3228_v56 }
 0xab6   :  { %v3238_v11 = vsel %vm821_vm7, %v3235_v32, %v3237_v51  ;;  %v3241_v15 = vsel %vm821_vm7, %v3237_v51, %v3231_v22  ;;  %v3273_v9 = vpop.permute.xlu0 %3272  ;;  %v3293_v32 = vrot.slane %v4186_v8, %v4879_v35 }
 0xab7   :  { %v3264_v21 = vmul.f32 %v3247_v31, %v3241_v15  ;;  %v3267_v37 = vmul.f32 %v3259_v60, %v3238_v11  ;;  %3538 = vmatprep.subr.bf16.mxu0 %v3497_v12 }
 0xab9   :  { %v3496_v57 = vpack.c.bf16 %v3264_v21, %v3226_v17  ;;  %v3271_v25 = vpop.permute.xlu1 %3270  ;;  %v3499_v19 = vpack.c.bf16 %v3267_v37, %v3229_v49  ;;  %v3373_v21 = vrot.slane %v4188_v59, %v4909_v63 }
 0xaba   :  { %v3307_v38 = vpop.permute.xlu0 %3306  ;;  %v3278_v53 = vsel %vm861_vm9, %v3269_v30, %v3271_v25  ;;  %v3277_v3 = vsel %vm861_vm9, %v3271_v25, %v3273_v9 }
 0xabb   :  { %3539 = vmatpush1.bf16.msra.mxu0 %v3496_v57  ;;  %3579 = vmatprep.subr.bf16.mxu1 %v3499_v19  ;;  %v3303_v22 = vmul.f32 %v3289_v46, %v3278_v53  ;;  %v3304_v45 = vmul.f32 %v3293_v32, %v3277_v3  ;;  %v4190_v46 = vld [vmem:[%s6750_s0 + $0x1c] sm:$0xf] }
 0xabc   :  { %3580 = vmatpush1.bf16.msra.mxu1 %v3498_v0 }
 0xabd   :  { %v3275_v28 = vpop.permute.xlu1 %3274 }
 0xabe   :  { %v3311_v44 = vpop.permute.xlu0 %3310  ;;  %v3276_v41 = vsel %vm861_vm9, %v3273_v9, %v3275_v28  ;;  %v3279_v4 = vsel %vm861_vm9, %v3275_v28, %v3269_v30  ;;  %v3369_v9 = vrot.slane %v4188_v59, %v4879_v35 }
 0xabf   :  { %v3302_v48 = vmul.f32 %v3285_v18, %v3279_v4  ;;  %v3305_v60 = vmul.f32 %v3297_v40, %v3276_v41 }
 0xac1   :  { %v3309_v43 = vpop.permute.xlu1 %3308 }
 0xac2   :  { %v3316_v26 = vsel %vm901_vm10, %v3307_v38, %v3309_v43  ;;  %v3345_v36 = vpop.permute.xlu0 %3344  ;;  %v3315_v13 = vsel %vm901_vm10, %v3309_v43, %v3311_v44  ;;  %v3437_v43 = vrot.slane %v4190_v46, %v4874_v33 }
 0xac3   :  { %v3341_v10 = vmul.f32 %v3327_v14, %v3316_v26  ;;  %v3342_v2 = vmul.f32 %v3331_v42, %v3315_v13  ;;  %v3445_v13 = vrot.slane %v4190_v46, %v4879_v35 }
 0xac5   :  { %v3313_v29 = vpop.permute.xlu1 %3312  ;;  %v3501_v39 = vpack.c.bf16 %v3341_v10, %v3303_v22  ;;  %v3502_v12 = vpack.c.bf16 %v3342_v2, %v3304_v45  ;;  %v3449_v10 = vrot.slane %v4190_v46, %v4909_v63 }
 0xac6   :  { %v3314_v61 = vsel %vm901_vm10, %v3311_v44, %v3313_v29  ;;  %v3317_v31 = vsel %vm901_vm10, %v3313_v29, %v3307_v38  ;;  %v3349_v16 = vpop.permute.xlu0 %3348  ;;  %v4191_v29 = vld [vmem:[%s6750_s0 + $0x20] sm:$0xf] }
 0xac7   :  { %v3340_v30 = vmul.f32 %v3323_v27, %v3317_v31  ;;  %v3343_v5 = vmul.f32 %v3335_v54, %v3314_v61  ;;  %3540 = vmatprep.subr.bf16.mxu0 %v3501_v39 }
 0xac9   :  { %v3500_v52 = vpack.c.bf16 %v3340_v30, %v3302_v48  ;;  %v3347_v50 = vpop.permute.xlu1 %3346  ;;  %v3503_v51 = vpack.c.bf16 %v3343_v5, %v3305_v60  ;;  %v3475_v48 = vrot.slane %v4191_v29, %v4874_v33  ;;  %v3479_v60 = vrot.slane %v4191_v29, %v4906_v62 }
 0xaca   :  { %v3353_v20 = vsel %vm941_vm11, %v3347_v50, %v3349_v16  ;;  %v3354_v11 = vsel %vm941_vm11, %v3345_v36, %v3347_v50  ;;  %v3383_v15 = vpop.permute.xlu0 %3382 }
 0xacb   :  { %v3378_v17 = vmul.f32 %v3361_v47, %v3354_v11  ;;  %v3379_v49 = vmul.f32 %v3365_v24, %v3353_v20  ;;  %3541 = vmatpush1.bf16.msra.mxu0 %v3500_v52  ;;  %3581 = vmatprep.subr.bf16.mxu1 %v3503_v51 }
 0xacc   :  { %3582 = vmatpush1.bf16.msra.mxu1 %v3502_v12 }
 0xacd   :  { %v3504_v37 = vpack.c.bf16 %v3378_v17, %v6320_v6  ;;  %v3351_v56 = vpop.permute.xlu1 %3350  ;;  %v3505_v57 = vpack.c.bf16 %v3379_v49, %v6328_v55  ;;  %v4189_v55 = vld [vmem:[%s6750_s0 + $0x18] sm:$0xf]  ;;  %v3483_v49 = vrot.slane %v4191_v29, %v4879_v35 }
 0xace   :  { %v3352_v25 = vsel %vm941_vm11, %v3349_v16, %v3351_v56  ;;  %v3355_v19 = vsel %vm941_vm11, %v3351_v56, %v3345_v36  ;;  %v3387_v0 = vpop.permute.xlu0 %3386  ;;  %v3399_v18 = vrot.slane %v4189_v55, %v4874_v33  ;;  %v3407_v26 = vrot.slane %v4189_v55, %v4879_v35 }
 0xacf   :  { %v3380_v38 = vmul.f32 %v3369_v9, %v3352_v25  ;;  %v3381_v8 = vmul.f32 %v3373_v21, %v3355_v19  ;;  %3542 = vmatprep.subr.bf16.mxu0 %v3505_v57  ;;  %v3411_v36 = vrot.slane %v4189_v55, %v4909_v63  ;;  %v3487_v21 = vrot.slane %v4191_v29, %v4909_v63 }
 0xad0   :  { %3543 = vmatpush1.bf16.msra.mxu0 %v3504_v37 }
 0xad1   :  { %v3506_v58 = vpack.c.bf16 %v3380_v38, %v6324_v1  ;;  %v3385_v28 = vpop.permute.xlu1 %3384  ;;  %v3507_v44 = vpack.c.bf16 %v3381_v8, %v6334_v7  ;;  %v3403_v1 = vrot.slane %v4189_v55, %v4906_v62  ;;  %v3441_v7 = vrot.slane %v4190_v46, %v4906_v62 }
 0xad2   :  { %v3421_v6 = vpop.permute.xlu0 %3420  ;;  %v3391_v40 = vsel %vm981_vm12, %v3385_v28, %v3387_v0  ;;  %v3392_v42 = vsel %vm981_vm12, %v3383_v15, %v3385_v28 }
 0xad3   :  { %3583 = vmatprep.subr.bf16.mxu1 %v3507_v44  ;;  %v3416_v54 = vmul.f32 %v3399_v18, %v3392_v42  ;;  %v3417_v32 = vmul.f32 %v3403_v1, %v3391_v40 }
 0xad4   :  { %3584 = vmatpush1.bf16.msra.mxu1 %v3506_v58  ;;  %v3516_v58 = vld [vmem:[%s6761_s11] sm:$0x3] }
 0xad5   :  { %v3389_v14 = vpop.permute.xlu1 %3388 }
 0xad6   :  { %v3425_v53 = vpop.permute.xlu0 %3424  ;;  %v3390_v39 = vsel %vm981_vm12, %v3387_v0, %v3389_v14  ;;  %v3393_v47 = vsel %vm981_vm12, %v3389_v14, %v3383_v15 }
 0xad7   :  { %v3418_v30 = vmul.f32 %v3407_v26, %v3390_v39  ;;  %v3419_v5 = vmul.f32 %v3411_v36, %v3393_v47 }
 0xad9   :  { %v3423_v27 = vpop.permute.xlu1 %3422 }
 0xada   :  { %v3429_v59 = vsel %vm1021_vm13, %v3423_v27, %v3425_v53  ;;  %v3430_v22 = vsel %vm1021_vm13, %v3421_v6, %v3423_v27  ;;  %v3459_v3 = vpop.permute.xlu0 %3458 }
 0xadb   :  { %v3454_v41 = vmul.f32 %v3437_v43, %v3430_v22  ;;  %v3455_v4 = vmul.f32 %v3441_v7, %v3429_v59 }
 0xadd   :  { %v3508_v2 = vpack.c.bf16 %v3454_v41, %v3416_v54  ;;  %v3427_v61 = vpop.permute.xlu1 %3426  ;;  %v3509_v31 = vpack.c.bf16 %v3455_v4, %v3417_v32 }
 0xade   :  { %v3428_v16 = vsel %vm1021_vm13, %v3425_v53, %v3427_v61  ;;  %v3431_v24 = vsel %vm1021_vm13, %v3427_v61, %v3421_v6  ;;  %v3463_v51 = vpop.permute.xlu0 %3462 }
 0xadf   :  { %v3456_v45 = vmul.f32 %v3445_v13, %v3428_v16  ;;  %v3457_v52 = vmul.f32 %v3449_v10, %v3431_v24  ;;  %3544 = vmatprep.subr.bf16.mxu0 %v3509_v31  ;;  %v4511_v24 = vmov 9  }
 0xae0   :  { %3545 = vmatpush1.bf16.msra.mxu0 %v3508_v2  ;;  %4455 = vset.pattern.permute.xlu1 %v4511_v24 }
 0xae1   :  { %v3510_v50 = vpack.c.bf16 %v3456_v45, %v3418_v30  ;;  %v3461_v12 = vpop.permute.xlu1 %3460  ;;  %v3511_v20 = vpack.c.bf16 %v3457_v52, %v3419_v5  ;;  %4456 = vset.pattern.permute.xlu0 %v4511_v24  ;;  %v3669_v5 = vld [vmem:[%s6750_s0] sm:$0xf]  ;;  %v4196_v52 = vld [vmem:[%s6750_s0 + $0x4] sm:$0xf] }
 0xae2   :  { %v3467_v11 = vsel %vm1061_vm14, %v3461_v12, %v3463_v51  ;;  %v3468_v15 = vsel %vm1061_vm14, %v3459_v3, %v3461_v12  ;;  %v3716_v12 = vrot.slane %v4196_v52, %v4906_v62 }
 0xae3   :  { %v3492_v9 = vmul.f32 %v3475_v48, %v3468_v15  ;;  %v3493_v17 = vmul.f32 %v3479_v60, %v3467_v11  ;;  %3585 = vmatprep.subr.bf16.mxu1 %v3511_v20  ;;  %v4086_v48 = vld [vmem:[%s6751_s1] sm:$0xff] }
 0xae4   :  { %3586 = vmatpush1.bf16.msra.mxu1 %v3510_v50 }
 0xae5   :  { %v3512_v37 = vpack.c.bf16 %v3492_v9, %v3492_v9  ;;  %v3513_v56 = vpack.c.bf16 %v3493_v17, %v3493_v17  ;;  %v3465_v57 = vpop.permute.xlu1 %3464  ;;  %v3674_v9 = vrot.slane %v3669_v5, %v4874_v33  ;;  %v3686_v17 = vrot.slane %v3669_v5, %v4909_v63 }
 0xae6   :  { %v3466_v25 = vsel %vm1061_vm14, %v3463_v51, %v3465_v57  ;;  %v3469_v19 = vsel %vm1061_vm14, %v3465_v57, %v3459_v3  ;;  %v3678_v51 = vrot.slane %v3669_v5, %v4906_v62  ;;  %v3712_v57 = vrot.slane %v4196_v52, %v4874_v33 }
 0xae7   :  { %v3494_v0 = vmul.f32 %v3483_v49, %v3466_v25  ;;  %v3495_v38 = vmul.f32 %v3487_v21, %v3469_v19  ;;  %4192 = vmatprep.subr.msk.bf16.mxu0 %vm75_vm0, %v3513_v56  ;;  %v3527_v8 = vsel %vm75_vm0, %v3512_v37, 0  ;;  %v3720_v21 = vrot.slane %v4196_v52, %v4879_v35 }
 0xae8   :  { %3547 = vmatpush1.bf16.msra.mxu0 %v3527_v8  ;;  %v3724_v25 = vrot.slane %v4196_v52, %v4909_v63  ;;  %v3682_v19 = vrot.slane %v3669_v5, %v4879_v35 }
 0xae9   :  { %v3514_v28 = vpack.c.bf16 %v3494_v0, %v3494_v0  ;;  %v3515_v44 = vpack.c.bf16 %v3495_v38, %v3495_v38 }
 0xaeb   :  { %4193 = vmatmul.mubr.msk.bf16.vlgmr.msra.gmra.mrb[32].mxu0 %vm1119_vm1, %v3516_v58  ;;  %4194 = vmatprep.subr.msk.bf16.mxu1 %vm75_vm0, %v3515_v44  ;;  %v3533_v6 = vsel %vm75_vm0, %v3514_v28, 0 }
 0xaec   :  { %3588 = vmatpush1.bf16.msra.mxu1 %v3533_v6  ;;  %4028 = vmatprep.mubr.bf16.mxu0 %v6798_v23 }
 0xaef   :  { %4195 = vmatmul.mubr.msk.bf16.vlgmr.msra.gmra.mrb[32].mxu1 %vm1119_vm1, %v3516_v58  ;;  %v3521_v55 = vpop.permute.xlu0 %3520 }
 0xaf0   :  { %4069 = vmatprep.mubr.bf16.mxu1 %v6798_v23 }
 0xaf6   :  { %v3626_v14 = vpop.permute.xlu1 %3625 }
 0xbbe   :  { %v3572_v46 = vpop.f32.mrb[32].mxu0 }
 0xbbf   :  { %v3573_v53 = vadd.f32 %v3572_v46, %v3521_v55  ;;  %v3574_v18 = vpop.f32.mrb[33].mxu0 }
 0xbc0   :  { %v3575_v1 = vadd.f32 %v3574_v18, %v3521_v55  ;;  %v3576_v43 = vpop.f32.mrb[34].mxu0 }
 0xbc1   :  { %vm3620_vm2 = vcmp.ge.f32.partialorder %v3573_v53, 0.0  ;;  %v3628_v7 = vmul.f32 %v3626_v14, %v3573_v53  ;;  %v3577_v40 = vpop.f32.mrb[35].mxu0 }
 0xbc2   :  { %vm3621_vm3 = vcmp.ge.f32.partialorder %v3575_v1, 0.0  ;;  %v3629_v42 = vmul.f32 %v3626_v14, %v3575_v1  ;;  %v3613_v26 = vpop.f32.mrb[32].mxu1 }
 0xbc3   :  { %v3632_v36 = vsel %vm3620_vm2, %v3573_v53, %v3628_v7  ;;  %v3614_v27 = vadd.f32 %v3613_v26, %v3521_v55  ;;  %v3615_v59 = vpop.f32.mrb[33].mxu1 }
 0xbc4   :  { %v3633_v22 = vsel %vm3621_vm3, %v3575_v1, %v3629_v42  ;;  %v3640_v13 = vrot.slane %v3632_v36, 4  ;;  %v3616_v10 = vadd.f32 %v3615_v59, %v3521_v55  ;;  %v3617_v23 = vpop.f32.mrb[34].mxu1  ;;  %v4197_v59 = vld [vmem:[%s6750_s0 + $0x8] sm:$0xf] }
 0xbc5   :  { %v3641_v54 = vrot.slane %v3633_v22, 4  ;;  %vm3622_vm4 = vcmp.ge.f32.partialorder %v3614_v27, 0.0  ;;  %v3630_v32 = vmul.f32 %v3626_v14, %v3614_v27  ;;  %v3618_v41 = vpop.f32.mrb[35].mxu1  ;;  %v3754_v23 = vrot.slane %v4197_v59, %v4906_v62 }
 0xbc6   :  { %3648 = vst [vmem:[#allocation2] sm:$0xf0] %v3640_v13  ;;  %vm3623_vm5 = vcmp.ge.f32.partialorder %v3616_v10, 0.0  ;;  %v3631_v4 = vmul.f32 %v3626_v14, %v3616_v10  ;;  %v4198_v13 = vld [vmem:[%s6750_s0 + $0xc] sm:$0xf]  ;;  %v3758_v5 = vrot.slane %v4197_v59, %v4879_v35 }
 0xbc7   :  { %3649 = vst [vmem:[#allocation2 + $0x8] sm:$0xf0] %v3641_v54  ;;  %v3634_v3 = vsel %vm3622_vm4, %v3614_v27, %v3630_v32  ;;  %v3792_v54 = vrot.slane %v4198_v13, %v4906_v62 }
 0xbc8   :  { %v3642_v29 = vrot.slane %v3634_v3, 4  ;;  %v3635_v39 = vsel %vm3623_vm5, %v3616_v10, %v3631_v4  ;;  %v3750_v3 = vrot.slane %v4197_v59, %v4874_v33 }
 0xbc9   :  { %v3643_v47 = vrot.slane %v3635_v39, 4 }
 0xbca   :  { %3650 = vst [vmem:[#allocation2 + $0x10] sm:$0xf0] %v3642_v29  ;;  %v3762_v29 = vrot.slane %v4197_v59, %v4909_v63 }
 0xbcb   :  { %3651 = vst [vmem:[#allocation2 + $0x18] sm:$0xf0] %v3643_v47  ;;  %v3796_v47 = vrot.slane %v4198_v13, %v4879_v35 }
 0xbcd   :  { %v6530_v2 = vld [vmem:[#allocation2] sm:$0xff] }
 0xbce   :  { %3657 = vrot.lane.b32.xlu1 %v6530_v2, %s4495_s4  ;;  %v6534_v61 = vld [vmem:[#allocation2 + $0x8] sm:$0xff] }
 0xbcf   :  { %3659 = vrot.lane.b32.xlu0 %v6534_v61, %s4495_s4 }
 0xbd1   :  { %v6538_v31 = vld [vmem:[#allocation2 + $0x10] sm:$0xff] }
 0xbd2   :  { %3661 = vrot.lane.b32.xlu1 %v6538_v31, %s4495_s4  ;;  %v6542_v16 = vld [vmem:[#allocation2 + $0x18] sm:$0xff] }
 0xbd3   :  { %3663 = vrot.lane.b32.xlu0 %v6542_v16, %s4495_s4 }
 0xbd6   :  { %3695 = vrot.lane.b32.xlu1 %v6530_v2, %s4496_s14 }
 0xbd7   :  { %3697 = vrot.lane.b32.xlu0 %v6534_v61, %s4496_s14 }
 0xbda   :  { %3699 = vrot.lane.b32.xlu1 %v6538_v31, %s4496_s14 }
 0xbdb   :  { %3701 = vrot.lane.b32.xlu0 %v6542_v16, %s4496_s14 }
 0xbde   :  { %3733 = vrot.lane.b32.xlu1 %v6530_v2, %s4497_s18 }
 0xbdf   :  { %3735 = vrot.lane.b32.xlu0 %v6534_v61, %s4497_s18 }
 0xbe2   :  { %3737 = vrot.lane.b32.xlu1 %v6538_v31, %s4497_s18 }
 0xbe3   :  { %3739 = vrot.lane.b32.xlu0 %v6542_v16, %s4497_s18 }
 0xbe6   :  { %3771 = vrot.lane.b32.xlu1 %v6530_v2, %s4498_s19 }
 0xbe7   :  { %3773 = vrot.lane.b32.xlu0 %v6534_v61, %s4498_s19 }
 0xbea   :  { %3775 = vrot.lane.b32.xlu1 %v6538_v31, %s4498_s19 }
 0xbeb   :  { %3777 = vrot.lane.b32.xlu0 %v6542_v16, %s4498_s19 }
 0xbee   :  { %3809 = vrot.lane.b32.xlu1 %v6530_v2, %s4499_s20 }
 0xbef   :  { %3811 = vrot.lane.b32.xlu0 %v6534_v61, %s4499_s20 }
 0xbf2   :  { %3813 = vrot.lane.b32.xlu1 %v6538_v31, %s4499_s20 }
 0xbf3   :  { %3815 = vrot.lane.b32.xlu0 %v6542_v16, %s4499_s20 }
 0xbf6   :  { %3847 = vrot.lane.b32.xlu1 %v6530_v2, %s4500_s21 }
 0xbf7   :  { %3849 = vrot.lane.b32.xlu0 %v6534_v61, %s4500_s21 }
 0xbfa   :  { %3851 = vrot.lane.b32.xlu1 %v6538_v31, %s4500_s21 }
 0xbfb   :  { %3853 = vrot.lane.b32.xlu0 %v6542_v16, %s4500_s21 }
 0xbfe   :  { %3885 = vrot.lane.b32.xlu1 %v6530_v2, %s4501_s2 }
 0xbff   :  { %3887 = vrot.lane.b32.xlu0 %v6534_v61, %s4501_s2 }
 0xc02   :  { %3889 = vrot.lane.b32.xlu1 %v6538_v31, %s4501_s2 }
 0xc03   :  { %3891 = vrot.lane.b32.xlu0 %v6542_v16, %s4501_s2 }
 0xc06   :  { %3923 = vrot.lane.b32.xlu1 %v6530_v2, %s4502_s22 }
 0xc07   :  { %3925 = vrot.lane.b32.xlu0 %v6534_v61, %s4502_s22 }
 0xc0a   :  { %3927 = vrot.lane.b32.xlu1 %v6538_v31, %s4502_s22 }
 0xc0b   :  { %3929 = vrot.lane.b32.xlu0 %v6542_v16, %s4502_s22 }
 0xc0e   :  { %4089 = vperm.xlu1 %4455, %v4086_v48  }
 0xc40   :  { %v3658_v60 = vpop.permute.xlu1 %3657 }
 0xc41   :  { %v3660_v30 = vpop.permute.xlu0 %3659 }
 0xc42   :  { %v3667_v20 = vsel %vm782_vm6, %v3658_v60, %v3660_v30 }
 0xc43   :  { %v3692_v37 = vmul.f32 %v3678_v51, %v3667_v20 }
 0xc44   :  { %v3662_v45 = vpop.permute.xlu1 %3661 }
 0xc45   :  { %v3664_v50 = vpop.permute.xlu0 %3663  ;;  %v3666_v58 = vsel %vm782_vm6, %v3660_v30, %v3662_v45  ;;  %v3800_v30 = vrot.slane %v4198_v13, %v4909_v63 }
 0xc46   :  { %v3665_v0 = vsel %vm782_vm6, %v3662_v45, %v3664_v50  ;;  %v3668_v38 = vsel %vm782_vm6, %v3664_v50, %v3658_v60  ;;  %v3693_v7 = vmul.f32 %v3682_v19, %v3666_v58  ;;  %v3788_v60 = vrot.slane %v4198_v13, %v4874_v33 }
 0xc47   :  { %v3691_v53 = vmul.f32 %v3674_v9, %v3668_v38  ;;  %v3694_v18 = vmul.f32 %v3686_v17, %v3665_v0 }
 0xc48   :  { %v3696_v11 = vpop.permute.xlu1 %3695 }
 0xc49   :  { %v3698_v15 = vpop.permute.xlu0 %3697 }
 0xc4a   :  { %v3705_v49 = vsel %vm821_vm7, %v3696_v11, %v3698_v15 }
 0xc4b   :  { %v3730_v56 = vmul.f32 %v3716_v12, %v3705_v49  ;;  %v4199_v49 = vld [vmem:[%s6750_s0 + $0x14] sm:$0xf] }
 0xc4c   :  { %v3700_v8 = vpop.permute.xlu1 %3699  ;;  %v3826_v38 = vrot.slane %v4199_v49, %v4874_v33 }
 0xc4d   :  { %v3704_v28 = vsel %vm821_vm7, %v3698_v15, %v3700_v8  ;;  %v3702_v44 = vpop.permute.xlu0 %3701  ;;  %v3962_v6 = vpack.c.bf16 %v3730_v56, %v3692_v37 }
 0xc4e   :  { %v3731_v55 = vmul.f32 %v3720_v21, %v3704_v28  ;;  %v3703_v46 = vsel %vm821_vm7, %v3700_v8, %v3702_v44  ;;  %v3706_v14 = vsel %vm821_vm7, %v3702_v44, %v3696_v11 }
 0xc4f   :  { %v3729_v1 = vmul.f32 %v3712_v57, %v3706_v14  ;;  %v3732_v43 = vmul.f32 %v3724_v25, %v3703_v46  ;;  %3996 = vmatprep.subr.bf16.mxu0 %v3962_v6  ;;  %v3830_v6 = vrot.slane %v4199_v49, %v4906_v62  ;;  %v3838_v46 = vrot.slane %v4199_v49, %v4909_v63 }
 0xc50   :  { %v3734_v40 = vpop.permute.xlu1 %3733  ;;  %v3963_v27 = vpack.c.bf16 %v3731_v55, %v3693_v7  ;;  %v3834_v55 = vrot.slane %v4199_v49, %v4879_v35 }
 0xc51   :  { %v3961_v42 = vpack.c.bf16 %v3729_v1, %v3691_v53  ;;  %v3736_v26 = vpop.permute.xlu0 %3735  ;;  %v3964_v36 = vpack.c.bf16 %v3732_v43, %v3694_v18 }
 0xc52   :  { %v3743_v32 = vsel %vm861_vm9, %v3734_v40, %v3736_v26 }
 0xc53   :  { %3997 = vmatpush1.bf16.msra.mxu0 %v3961_v42  ;;  %4037 = vmatprep.subr.bf16.mxu1 %v3964_v36  ;;  %v3768_v24 = vmul.f32 %v3754_v23, %v3743_v32  ;;  %v4200_v32 = vld [vmem:[%s6750_s0 + $0x18] sm:$0xf] }
 0xc54   :  { %4038 = vmatpush1.bf16.msra.mxu1 %v3963_v27  ;;  %v3738_v22 = vpop.permute.xlu1 %3737 }
 0xc55   :  { %v3740_v10 = vpop.permute.xlu0 %3739  ;;  %v3742_v51 = vsel %vm861_vm9, %v3736_v26, %v3738_v22 }
 0xc56   :  { %v3741_v45 = vsel %vm861_vm9, %v3738_v22, %v3740_v10  ;;  %v3744_v52 = vsel %vm861_vm9, %v3740_v10, %v3734_v40  ;;  %v3769_v25 = vmul.f32 %v3758_v5, %v3742_v51 }
 0xc57   :  { %v3767_v21 = vmul.f32 %v3750_v3, %v3744_v52  ;;  %v3770_v37 = vmul.f32 %v3762_v29, %v3741_v45  ;;  %v3872_v29 = vrot.slane %v4200_v32, %v4879_v35 }
 0xc58   :  { %v3772_v41 = vpop.permute.xlu1 %3771 }
 0xc59   :  { %v3774_v4 = vpop.permute.xlu0 %3773 }
 0xc5a   :  { %v3781_v39 = vsel %vm901_vm10, %v3772_v41, %v3774_v4 }
 0xc5b   :  { %v3806_v48 = vmul.f32 %v3792_v54, %v3781_v39 }
 0xc5c   :  { %v3776_v50 = vpop.permute.xlu1 %3775 }
 0xc5d   :  { %v3780_v12 = vsel %vm901_vm10, %v3774_v4, %v3776_v50  ;;  %v3778_v20 = vpop.permute.xlu0 %3777  ;;  %v3966_v11 = vpack.c.bf16 %v3806_v48, %v3768_v24  ;;  %v4202_v24 = vld [vmem:[%s6750_s0 + $0x20] sm:$0xf] }
 0xc5e   :  { %v3807_v15 = vmul.f32 %v3796_v47, %v3780_v12  ;;  %v3779_v9 = vsel %vm901_vm10, %v3776_v50, %v3778_v20  ;;  %v3782_v17 = vsel %vm901_vm10, %v3778_v20, %v3772_v41  ;;  %v3868_v41 = vrot.slane %v4200_v32, %v4906_v62 }
 0xc5f   :  { %v3805_v56 = vmul.f32 %v3788_v60, %v3782_v17  ;;  %v3808_v57 = vmul.f32 %v3800_v30, %v3779_v9  ;;  %3998 = vmatprep.subr.bf16.mxu0 %v3966_v11  ;;  %v3876_v60 = vrot.slane %v4200_v32, %v4909_v63 }
 0xc60   :  { %v3810_v19 = vpop.permute.xlu1 %3809  ;;  %v3967_v28 = vpack.c.bf16 %v3807_v15, %v3769_v25  ;;  %v3940_v15 = vrot.slane %v4202_v24, %v4874_v33 }
 0xc61   :  { %v3965_v0 = vpack.c.bf16 %v3805_v56, %v3767_v21  ;;  %v3812_v8 = vpop.permute.xlu0 %3811  ;;  %v3968_v58 = vpack.c.bf16 %v3808_v57, %v3770_v37 }
 0xc62   :  { %v3819_v44 = vsel %vm941_vm11, %v3810_v19, %v3812_v8 }
 0xc63   :  { %3999 = vmatpush1.bf16.msra.mxu0 %v3965_v0  ;;  %4039 = vmatprep.subr.bf16.mxu1 %v3968_v58  ;;  %v3843_v53 = vmul.f32 %v3826_v38, %v3819_v44  ;;  %v3944_v44 = vrot.slane %v4202_v24, %v4906_v62 }
 0xc64   :  { %4040 = vmatpush1.bf16.msra.mxu1 %v3967_v28  ;;  %v3814_v14 = vpop.permute.xlu1 %3813 }
 0xc65   :  { %v3818_v18 = vsel %vm941_vm11, %v3812_v8, %v3814_v14  ;;  %v3816_v1 = vpop.permute.xlu0 %3815  ;;  %v3969_v59 = vpack.c.bf16 %v3843_v53, %v6530_v2 }
 0xc66   :  { %v3844_v43 = vmul.f32 %v3830_v6, %v3818_v18  ;;  %v3817_v7 = vsel %vm941_vm11, %v3814_v14, %v3816_v1  ;;  %v3820_v40 = vsel %vm941_vm11, %v3816_v1, %v3810_v19 }
 0xc67   :  { %v3845_v42 = vmul.f32 %v3834_v55, %v3817_v7  ;;  %v3846_v26 = vmul.f32 %v3838_v46, %v3820_v40  ;;  %v3948_v55 = vrot.slane %v4202_v24, %v4879_v35  ;;  %v3952_v46 = vrot.slane %v4202_v24, %v4909_v63 }
 0xc68   :  { %v3848_v36 = vpop.permute.xlu1 %3847  ;;  %v3970_v27 = vpack.c.bf16 %v3844_v43, %v6534_v61  ;;  %v4201_v61 = vld [vmem:[%s6750_s0 + $0x1c] sm:$0xf] }
 0xc69   :  { %v3971_v22 = vpack.c.bf16 %v3845_v42, %v6538_v31  ;;  %v3850_v13 = vpop.permute.xlu0 %3849  ;;  %v3972_v10 = vpack.c.bf16 %v3846_v26, %v6542_v16  ;;  %v3864_v31 = vrot.slane %v4200_v32, %v4874_v33  ;;  %v3902_v16 = vrot.slane %v4201_v61, %v4874_v33 }
 0xc6a   :  { %4000 = vmatprep.subr.bf16.mxu0 %v3970_v27  ;;  %v3857_v3 = vsel %vm981_vm12, %v3848_v36, %v3850_v13  ;;  %v3906_v47 = vrot.slane %v4201_v61, %v4906_v62  ;;  %v3910_v30 = vrot.slane %v4201_v61, %v4879_v35  ;;  %v3914_v5 = vrot.slane %v4201_v61, %v4909_v63  ;;  %v4080_v61 = vld [vmem:[#allocation3 + $0x10] sm:$0xff] }
 0xc6b   :  { %4001 = vmatpush1.bf16.msra.mxu0 %v3969_v59  ;;  %4041 = vmatprep.subr.bf16.mxu1 %v3972_v10  ;;  %v3881_v51 = vmul.f32 %v3864_v31, %v3857_v3  ;;  %v3652_v59 = vld [vmem:[%s6762_s12] sm:$0xf]  ;;  %s4106_s12 = sshll.u32 %s4512_s8, 4  ;;  %s4107_s12 = int_to_ptr.vmem [resolvable:$true] %s4106_s12 }
 0xc6c   :  { %4042 = vmatpush1.bf16.msra.mxu1 %v3971_v22  ;;  %v3852_v23 = vpop.permute.xlu1 %3851  ;;  %v4078_v22 = vld [vmem:[#allocation3] sm:$0xff]  ;;  %s4468_s24 = scalar_lea.vmem %s4107_s12, 512  ;;  %p4473_p1 = scmp.lt.s32.totalorder %s4107_s12, %s4107_s12 }
 0xc6d   :  { %v3854_v54 = vpop.permute.xlu0 %3853  ;;  %v3856_v48 = vsel %vm981_vm12, %v3850_v13, %v3852_v23  ;;  %p4469_p0 = scmp.ne.s32.totalorder %s4107_s12, %s4468_s24  ;;  %p4474_p2 = scmp.lt.s32.totalorder %s4468_s24, %s4468_s24 }
 0xc6e   :  { %v3855_v45 = vsel %vm981_vm12, %v3852_v23, %v3854_v54  ;;  %v3858_v52 = vsel %vm981_vm12, %v3854_v54, %v3848_v36  ;;  %v3882_v9 = vmul.f32 %v3868_v41, %v3856_v48  ;;  %v4079_v54 = vld [vmem:[#allocation3 + $0x8] sm:$0xff] }
 0xc6f   :  { %v3883_v37 = vmul.f32 %v3872_v29, %v3855_v45  ;;  %v3884_v56 = vmul.f32 %v3876_v60, %v3858_v52  ;;  %p4475_p3 = por %p4474_p2, %p4473_p1 }
 0xc70   :  { %v3886_v2 = vpop.permute.xlu1 %3885 }
 0xc71   :  { %v3888_v4 = vpop.permute.xlu0 %3887  ;;  %p4476_p4 = pnand %p4475_p3, %p4469_p0 }
 0xc72   :  { %v3895_v39 = vsel %vm1021_vm13, %v3886_v2, %v3888_v4 }
 0xc73   :  { %v3919_v12 = vmul.f32 %v3902_v16, %v3895_v39  ;;  %v4081_v16 = vld [vmem:[#allocation3 + $0x18] sm:$0xff] }
 0xc74   :  { %v3890_v50 = vpop.permute.xlu1 %3889 }
 0xc75   :  { %v3894_v20 = vsel %vm1021_vm13, %v3888_v4, %v3890_v50  ;;  %v3892_v11 = vpop.permute.xlu0 %3891  ;;  %v3973_v38 = vpack.c.bf16 %v3919_v12, %v3881_v51 }
 0xc76   :  { %v3920_v17 = vmul.f32 %v3906_v47, %v3894_v20  ;;  %v3893_v49 = vsel %vm1021_vm13, %v3890_v50, %v3892_v11  ;;  %v3896_v21 = vsel %vm1021_vm13, %v3892_v11, %v3886_v2 }
 0xc77   :  { %v3921_v57 = vmul.f32 %v3910_v30, %v3893_v49  ;;  %v3922_v25 = vmul.f32 %v3914_v5, %v3896_v21 }
 0xc78   :  { %v3924_v19 = vpop.permute.xlu1 %3923  ;;  %v3974_v0 = vpack.c.bf16 %v3920_v17, %v3882_v9 }
 0xc79   :  { %v3975_v8 = vpack.c.bf16 %v3921_v57, %v3883_v37  ;;  %v3926_v58 = vpop.permute.xlu0 %3925  ;;  %v3976_v28 = vpack.c.bf16 %v3922_v25, %v3884_v56 }
 0xc7a   :  { %v3933_v33 = vsel %vm1061_vm14, %v3924_v19, %v3926_v58  ;;  %4002 = vmatprep.subr.bf16.mxu0 %v3974_v0 }
 0xc7b   :  { %v3957_v6 = vmul.f32 %v3940_v15, %v3933_v33  ;;  %4003 = vmatpush1.bf16.msra.mxu0 %v3973_v38  ;;  %4043 = vmatprep.subr.bf16.mxu1 %v3976_v28 }
 0xc7c   :  { %4044 = vmatpush1.bf16.msra.mxu1 %v3975_v8  ;;  %v3928_v14 = vpop.permute.xlu1 %3927 }
 0xc7d   :  { %v3932_v53 = vsel %vm1061_vm14, %v3926_v58, %v3928_v14  ;;  %v3930_v18 = vpop.permute.xlu0 %3929  ;;  %v3977_v1 = vpack.c.bf16 %v3957_v6, %v3957_v6 }
 0xc7e   :  { %v3958_v43 = vmul.f32 %v3944_v44, %v3932_v53  ;;  %v3931_v7 = vsel %vm1061_vm14, %v3928_v14, %v3930_v18  ;;  %v3934_v62 = vsel %vm1061_vm14, %v3930_v18, %v3924_v19 }
 0xc7f   :  { %v3959_v40 = vmul.f32 %v3948_v55, %v3931_v7  ;;  %v3960_v42 = vmul.f32 %v3952_v46, %v3934_v62  ;;  %v3985_v63 = vsel %vm75_vm0, %v3977_v1, 0 }
 0xc80   :  { %v3978_v26 = vpack.c.bf16 %v3958_v43, %v3958_v43 }
 0xc81   :  { %v3979_v35 = vpack.c.bf16 %v3959_v40, %v3959_v40  ;;  %v3980_v36 = vpack.c.bf16 %v3960_v42, %v3960_v42 }
 0xc82   :  { %4203 = vmatprep.subr.msk.bf16.mxu0 %vm75_vm0, %v3978_v26 }
 0xc83   :  { %4005 = vmatpush1.bf16.msra.mxu0 %v3985_v63  ;;  %4205 = vmatprep.subr.msk.bf16.mxu1 %vm75_vm0, %v3980_v36  ;;  %v3991_v27 = vsel %vm75_vm0, %v3979_v35, 0 }
 0xc84   :  { %4046 = vmatpush1.bf16.msra.mxu1 %v3991_v27 }
 0xc86   :  { %4204 = vmatmul.mubr.msk.bf16.vlgmr.msra.gmra.mrb[36].mxu0 %vm1119_vm1, %v3652_v59 }
 0xc87   :  { %4206 = vmatmul.mubr.msk.bf16.vlgmr.msra.gmra.mrb[36].mxu1 %vm1119_vm1, %v3652_v59 }
 0xc8d   :  { %v4090_v13 = vpop.permute.xlu1 %4089 }
 0xd59   :  { %v4030_v34 = vpop.f32.mrb[36].mxu0 }
 0xd5a   :  { %v4082_v10 = vadd.f32 %v4078_v22, %v4030_v34  ;;  %v4032_v23 = vpop.f32.mrb[37].mxu0  ;;  %v4071_v32 = vpop.f32.mrb[36].mxu1 }
 0xd5b   :  { %v4083_v2 = vadd.f32 %v4079_v54, %v4032_v23  ;;  %v4084_v31 = vadd.f32 %v4080_v61, %v4071_v32  ;;  %v4073_v41 = vpop.f32.mrb[37].mxu1  ;;  %v4034_v4 = vpop.f32.mrb[38].mxu0 }
 0xd5c   :  { %v4085_v3 = vadd.f32 %v4081_v16, %v4073_v41  ;;  %v4092_v29 = vadd.f32 %v4090_v13, %v4082_v10  ;;  %v4075_v39 = vpop.f32.mrb[38].mxu1  ;;  %v4035_v47 = vpop.f32.mrb[39].mxu0 }
 0xd5d   :  { %v4093_v24 = vadd.f32 %v4090_v13, %v4083_v2  ;;  %v4094_v48 = vadd.f32 %v4090_v13, %v4084_v31  ;;  %v4076_v60 = vpop.f32.mrb[39].mxu1 }
 0xd5e   :  { %v4095_v30 = vadd.f32 %v4090_v13, %v4085_v3  ;;  %4096 = vst [vmem:[#allocation3] sm:$0xff] %v4092_v29 }
 0xd5f   :  { %4097 = vst [vmem:[#allocation3 + $0x8] sm:$0xff] %v4093_v24  ;;  %4098 = vst [vmem:[#allocation3 + $0x10] sm:$0xff] %v4094_v48 }
 0xd60   :  { %4099 = vst [vmem:[#allocation3 + $0x18] sm:$0xff] %v4095_v30 }
 0xd61   :  { %4479 = shalt.err (!%p4476_p4)
}
 0xd62   :  { %s4480_s9 = scalar_lea.hbm %s6765_s15, 512 }
 0xd63   :  { %p4481_p5 = scmp.ne.s32.totalorder %s6765_s15, %s4480_s9  ;;  %p4484_p6 = scmp.lt.u32.totalorder %s4480_s9, %s6765_s15 }
 0xd65   :  { %p4486_p7 = pnand %p4484_p6, %p4481_p5 }
 0xd67   :  { %4489 = shalt.err (!%p4486_p7)
}
 0xd68   :  { %4109 = dma.vmem_to_hbm [thread:$0]  %s4107_s12, 512, %s6765_s15, [#allocation4]  }
 0xd69   :  { %4490 = dma.done.wait [#allocation4], 512  }
 0xd6a   :  { %4491 = vsyncadd [#allocation4], 4294966784 }
 0xd6b   :  { %4113 = vsyncpa [#allocation4], 1 }

</bundles_post_ra>
